<compile_context>
chip_gen: v7x
topology: tpu7x:2x2x1
jax: 0.10.0
libtpu: 0.0.40
codegen_flags: <defaults>
</compile_context>

<pallas_src>
import numpy as np

import jax
import jax.numpy as jnp
from jax import lax
from jax.experimental import pallas as pl
from jax.experimental.pallas import tpu as pltpu

BN_EPS = 1e-5
LEAK = 0.2


# ------------------------------ Pallas kernel ------------------------------ #

def _conv_block(y_prev, r_ref, w_ref, s_ref):
    """One 4x4 / stride-2 / pad-1 conv layer on a VMEM-resident activation.

    y_prev: (M_in, C_in)     bf16  previous activation, rows = spatial positions
    r_ref : (16*M_out, M_in) bf16  constant 0/1 tap-selection matrix (row
                                   t*M_out+m picks the input pixel feeding tap t
                                   of output position m; all-zero row == padding)
    w_ref : (16*C_in, C_out) bf16  conv weight, (ky,kx,ci)-major, BN scale folded
    s_ref : (1, C_out)       f32   folded conv-bias / BN shift
    returns (M_out, C_out) f32 after shift + leaky_relu(0.2).
    """
    c_in = w_ref.shape[0] // 16
    c_out = w_ref.shape[1]
    m_out = r_ref.shape[0] // 16

    # Gather all 16 taps with one MXU matmul (exact: at most one 1.0 per row).
    taps = jnp.dot(r_ref[...], y_prev, preferred_element_type=jnp.float32)
    taps = taps.astype(jnp.bfloat16)                      # (16*M_out, C_in)

    acc = jnp.zeros((m_out, c_out), jnp.float32)
    for t in range(16):                                   # static unroll
        acc += jnp.dot(taps[t * m_out:(t + 1) * m_out, :],
                       w_ref[t * c_in:(t + 1) * c_in, :],
                       preferred_element_type=jnp.float32)
    y = acc + s_ref[...]
    return jnp.where(y >= 0, y, LEAK * y)


def _final_conv(y_prev, w_ref, s_ref):
    """conv4: 4x4 / stride-1 / pad-0 on the 4x4 map -> single output position."""
    c_in = w_ref.shape[0] // 16
    acc = jnp.zeros((1, w_ref.shape[1]), jnp.float32)
    for t in range(16):                                   # tap t == row t of the 4x4 map
        acc += jnp.dot(y_prev[t:t + 1, :],
                       w_ref[t * c_in:(t + 1) * c_in, :],
                       preferred_element_type=jnp.float32)
    return acc + s_ref[...]                               # conv4 has no activation


def _encoder_kernel(p1_ref, r2_ref, r3_ref,
                    w1_ref, w2_ref, w3_ref, w4_ref,
                    s1_ref, s2_ref, s3_ref, s4_ref,
                    o_ref):
    # layer 1 (patches precomputed in the wrapper; channels is tiny)
    y = jnp.dot(p1_ref[0], w1_ref[...], preferred_element_type=jnp.float32)
    y = y + s1_ref[...]
    y = jnp.where(y >= 0, y, LEAK * y)                    # (OH1*OW1, d/2) f32

    # layers 2 and 3: fully VMEM-resident, selection-matmul im2col
    y = _conv_block(y.astype(jnp.bfloat16), r2_ref, w2_ref, s2_ref)
    y = _conv_block(y.astype(jnp.bfloat16), r3_ref, w3_ref, s3_ref)

    # layer 4: 4x4 map -> 1x1 latent
    o_ref[0] = _final_conv(y.astype(jnp.bfloat16), w4_ref, s4_ref)


# --------------------------- wrapper-side plumbing ------------------------- #

def _tap_selector_stack(oh_in, ow_in):
    """Constant (16*M_out, M_in) 0/1 selector for a 4x4 / stride-2 / pad-1 conv."""
    oh_out, ow_out = oh_in // 2, ow_in // 2
    m_out, m_in = oh_out * ow_out, oh_in * ow_in
    sel = np.zeros((16 * m_out, m_in), np.float32)
    for ky in range(4):
        for kx in range(4):
            t = ky * 4 + kx
            for i2 in range(oh_out):
                i1 = 2 * i2 + ky - 1                      # input row, pre-pad coords
                if not 0 <= i1 < oh_in:
                    continue
                for j2 in range(ow_out):
                    j1 = 2 * j2 + kx - 1
                    if 0 <= j1 < ow_in:
                        sel[t * m_out + i2 * ow_out + j2, i1 * ow_in + j1] = 1.0
    return sel


def _first_layer_patches(x_nhwc):
    """im2col for conv1_1 (4x4 / stride-2 / pad-1): (N,H,W,C) -> (N, OH*OW, 16*C)."""
    n, h, w, c = x_nhwc.shape
    xp = jnp.pad(x_nhwc, ((0, 0), (1, 1), (1, 1), (0, 0)))
    oh, ow = h // 2, w // 2
    taps = []
    for ky in range(4):
        for kx in range(4):
            taps.append(xp[:, ky:ky + 2 * oh - 1:2, kx:kx + 2 * ow - 1:2, :])
    patches = jnp.stack(taps, axis=3)                     # (N, OH, OW, 16, C)
    return patches.reshape(n, oh * ow, 16 * c)


def _fold(w, bias, bn):
    """Conv weight -> (16*Ci, Co) bf16 matmul layout with BN scale folded in,
    plus the (1, Co) f32 shift (= folded conv bias + eval-mode BN shift)."""
    co = w.shape[0]
    w_mat = jnp.transpose(w, (2, 3, 1, 0)).reshape(-1, co)       # (ky,kx,ci)-major
    if bn is None:
        scale, shift = jnp.ones((co,), jnp.float32), bias
    else:
        gamma, beta, mean, var = bn
        scale = gamma * lax.rsqrt(var + BN_EPS)
        shift = (bias - mean) * scale + beta
    w_mat = (w_mat * scale[None, :]).astype(jnp.bfloat16)
    return w_mat, shift.reshape(1, co).astype(jnp.float32)


def _pinned(a):
    return pl.BlockSpec(a.shape, lambda i, _z=(0,) * a.ndim: _z)


def encoder_forward(x_nchw, params):
    """Encoder forward (architecture=None): (N, C, H, W) f32 -> (N, zsize, 1, 1)."""
    n, c, h, w = x_nchw.shape
    # TODO(synk): the fused kernel supports the stock Encoder geometry only
    # (32x32 input -> 4x4 map before conv4 -> 1x1 latent).
    assert h == 32 and w == 32, "fused Encoder kernel expects 32x32 inputs"

    zsize = params["w4"].shape[0]
    w1, s1 = _fold(params["w1"], params["b1"], None)
    w2, s2 = _fold(params["w2"], params["b2"], params["bn2"])
    w3, s3 = _fold(params["w3"], params["b3"], params["bn3"])
    w4, s4 = _fold(params["w4"], params["b4"], None)

    # layer-1 patches (wrapper-side; only a few KiB since C == channels)
    x_nhwc = jnp.transpose(x_nchw, (0, 2, 3, 1))
    p1 = _first_layer_patches(x_nhwc).astype(jnp.bfloat16)        # (N, 256, 16*C)

    # constant tap selectors for the VMEM-resident layers (compile-time constants)
    r2 = jnp.asarray(_tap_selector_stack(h // 2, w // 2), jnp.bfloat16)   # (1024, 256)
    r3 = jnp.asarray(_tap_selector_stack(h // 4, w // 4), jnp.bfloat16)   # (256, 64)

    m1, k1 = p1.shape[1], p1.shape[2]
    out = pl.pallas_call(
        _encoder_kernel,
        out_shape=jax.ShapeDtypeStruct((n, 1, zsize), jnp.float32),
        grid=(n,),
        in_specs=[pl.BlockSpec((1, m1, k1), lambda i: (i, 0, 0)),
                  _pinned(r2), _pinned(r3),
                  _pinned(w1), _pinned(w2), _pinned(w3), _pinned(w4),
                  _pinned(s1), _pinned(s2), _pinned(s3), _pinned(s4)],
        out_specs=pl.BlockSpec((1, 1, zsize), lambda i: (i, 0, 0)),
        compiler_params=pltpu.CompilerParams(
            dimension_semantics=("parallel",)),
    )(p1, r2, r3, w1, w2, w3, w4, s1, s2, s3, s4)
    return out.reshape(n, zsize, 1, 1)


# --------------------------------- reference -------------------------------- #

def encoder_reference(x_nchw, params):
    """Independent XLA (lax.conv) reference with the same folded bf16 numerics."""
    def fold(w, b, bn):
        if bn is None:
            scale, shift = jnp.ones((w.shape[0],), jnp.float32), b
        else:
            gamma, beta, mean, var = bn
            scale = gamma * lax.rsqrt(var + BN_EPS)
            shift = (b - mean) * scale + beta
        w_hwio = jnp.transpose(w, (2, 3, 1, 0)) * scale
        return w_hwio.astype(jnp.bfloat16), shift

    def conv(h, w_hwio, shift, stride, pad):
        y = lax.conv_general_dilated(
            h.astype(jnp.bfloat16), w_hwio, (stride, stride),
            [(pad, pad), (pad, pad)],
            dimension_numbers=("NHWC", "HWIO", "NHWC"),
            preferred_element_type=jnp.float32)
        return y + shift

    def lrelu(y):
        return jnp.where(y >= 0, y, LEAK * y)

    x = jnp.transpose(x_nchw, (0, 2, 3, 1))
    h = lrelu(conv(x, *fold(params["w1"], params["b1"], None), 2, 1))
    h = lrelu(conv(h, *fold(params["w2"], params["b2"], params["bn2"]), 2, 1))
    h = lrelu(conv(h, *fold(params["w3"], params["b3"], params["bn3"]), 2, 1))
    h = conv(h, *fold(params["w4"], params["b4"], None), 1, 0)
    return jnp.transpose(h, (0, 3, 1, 2))


# ----------------------------------- test ----------------------------------- #

if __name__ == "__main__":
    N, C, H, W = 2, 1, 32, 32          # 32x32 -> 16 -> 8 -> 4 -> 1x1 latent
    d, zsize = 16, 32                  # small d for a fast test

    key = jax.random.PRNGKey(0)
    keys = jax.random.split(key, 11)
    x = jax.random.normal(keys[0], (N, C, H, W), jnp.float32)

    def conv_w(k, co, ci, ks):
        return jax.random.normal(k, (co, ci, ks, ks), jnp.float32) / jnp.sqrt(ci * ks * ks)

    def bn_params(k, ch):
        k1, k2, k3, k4 = jax.random.split(k, 4)
        gamma = 1.0 + 0.2 * jax.random.normal(k1, (ch,), jnp.float32)
        beta = 0.1 * jax.random.normal(k2, (ch,), jnp.float32)
        mean = 0.1 * jax.random.normal(k3, (ch,), jnp.float32)
        var = jax.random.uniform(k4, (ch,), jnp.float32, minval=0.5, maxval=1.5)
        return gamma, beta, mean, var

    params = {
        "w1": conv_w(keys[1], d // 2, C, 4),
        "b1": 0.1 * jax.random.normal(keys[2], (d // 2,), jnp.float32),
        "w2": conv_w(keys[3], d * 2, d // 2, 4),
        "b2": 0.1 * jax.random.normal(keys[4], (d * 2,), jnp.float32),
        "bn2": bn_params(keys[5], d * 2),
        "w3": conv_w(keys[6], d * 4, d * 2, 4),
        "b3": 0.1 * jax.random.normal(keys[7], (d * 4,), jnp.float32),
        "bn3": bn_params(keys[8], d * 4),
        "w4": conv_w(keys[9], zsize, d * 4, 4),
        "b4": 0.1 * jax.random.normal(keys[10], (zsize,), jnp.float32),
    }

    out = jax.jit(encoder_forward)(x, params)
    out = jax.block_until_ready(out)

    ref = encoder_reference(x, params)
    assert out.shape == (N, zsize, 1, 1), out.shape
    max_err = float(jnp.max(jnp.abs(out - ref)))
    assert jnp.allclose(out, ref, atol=3e-3, rtol=1e-2), ("max |err|", max_err)

    print("KERNEL_OK")
</pallas_src>

<mosaic_0001>
module attributes {stable_mosaic.version = 11 : i64} {
  func.func @_encoder_kernel(%arg0: i32, %arg1: memref<1x256x16xbf16, #tpu.memory_space<vmem>>, %arg2: memref<1024x256xbf16, #tpu.memory_space<vmem>>, %arg3: memref<256x64xbf16, #tpu.memory_space<vmem>>, %arg4: memref<16x8xbf16, #tpu.memory_space<vmem>>, %arg5: memref<128x32xbf16, #tpu.memory_space<vmem>>, %arg6: memref<512x64xbf16, #tpu.memory_space<vmem>>, %arg7: memref<1024x32xbf16, #tpu.memory_space<vmem>>, %arg8: memref<1x8xf32, #tpu.memory_space<vmem>>, %arg9: memref<1x32xf32, #tpu.memory_space<vmem>>, %arg10: memref<1x64xf32, #tpu.memory_space<vmem>>, %arg11: memref<1x32xf32, #tpu.memory_space<vmem>>, %arg12: memref<1x1x32xf32, #tpu.memory_space<vmem>>) attributes {dimension_semantics = [#tpu.dimension_semantics<parallel>], iteration_bounds = array<i64: 2>, scalar_prefetch = 0 : i64, scratch_operands = 0 : i64, tpu.core_type = #tpu.core_type<tc>, window_params = [{transform_indices = @transform_0, window_bounds = array<i64: 1, 256, 16>}, {pipeline_mode = #tpu.pipeline_mode<synchronous>, transform_indices = @transform_1, window_bounds = array<i64: 1024, 256>}, {pipeline_mode = #tpu.pipeline_mode<synchronous>, transform_indices = @transform_2, window_bounds = array<i64: 256, 64>}, {pipeline_mode = #tpu.pipeline_mode<synchronous>, transform_indices = @transform_3, window_bounds = array<i64: 16, 8>}, {pipeline_mode = #tpu.pipeline_mode<synchronous>, transform_indices = @transform_4, window_bounds = array<i64: 128, 32>}, {pipeline_mode = #tpu.pipeline_mode<synchronous>, transform_indices = @transform_5, window_bounds = array<i64: 512, 64>}, {pipeline_mode = #tpu.pipeline_mode<synchronous>, transform_indices = @transform_6, window_bounds = array<i64: 1024, 32>}, {pipeline_mode = #tpu.pipeline_mode<synchronous>, transform_indices = @transform_7, window_bounds = array<i64: 1, 8>}, {pipeline_mode = #tpu.pipeline_mode<synchronous>, transform_indices = @transform_8, window_bounds = array<i64: 1, 32>}, {pipeline_mode = #tpu.pipeline_mode<synchronous>, transform_indices = @transform_9, window_bounds = array<i64: 1, 64>}, {pipeline_mode = #tpu.pipeline_mode<synchronous>, transform_indices = @transform_10, window_bounds = array<i64: 1, 32>}, {transform_indices = @transform_11, window_bounds = array<i64: 1, 1, 32>}]} {
    %c0 = arith.constant 0 : index
    %c0_0 = arith.constant 0 : index
    %c0_1 = arith.constant 0 : index
    %0 = vector.load %arg1[%c0, %c0_0, %c0_1] : memref<1x256x16xbf16, #tpu.memory_space<vmem>>, vector<1x256x16xbf16>
    %1 = vector.shape_cast %0 : vector<1x256x16xbf16> to vector<256x16xbf16>
    %c0_2 = arith.constant 0 : index
    %c0_3 = arith.constant 0 : index
    %2 = vector.load %arg4[%c0_2, %c0_3] : memref<16x8xbf16, #tpu.memory_space<vmem>>, vector<16x8xbf16>
    %cst = arith.constant dense<0.000000e+00> : vector<256x8xf32>
    %3 = tpu.matmul %1, %2, %cst {dimension_numbers = #tpu.dot_dimension_numbers<[1], [0], [0], [1], [0, 0, 1, 1], [], []>} : vector<256x16xbf16>, vector<16x8xbf16>, vector<256x8xf32> -> vector<256x8xf32>
    %c0_4 = arith.constant 0 : index
    %c0_5 = arith.constant 0 : index
    %4 = vector.load %arg8[%c0_4, %c0_5] : memref<1x8xf32, #tpu.memory_space<vmem>>, vector<1x8xf32>
    %5 = vector.broadcast %4 : vector<1x8xf32> to vector<256x8xf32>
    %6 = arith.addf %3, %5 : vector<256x8xf32>
    %cst_6 = arith.constant 0.000000e+00 : f32
    %7 = vector.broadcast %cst_6 : f32 to vector<256x8xf32>
    %8 = arith.cmpf oge, %6, %7 : vector<256x8xf32>
    %cst_7 = arith.constant 2.000000e-01 : f32
    %9 = vector.broadcast %cst_7 : f32 to vector<256x8xf32>
    %10 = arith.mulf %9, %6 : vector<256x8xf32>
    %11 = arith.select %8, %6, %10 : vector<256x8xi1>, vector<256x8xf32>
    %12 = arith.truncf %11 : vector<256x8xf32> to vector<256x8xbf16>
    %c0_8 = arith.constant 0 : index
    %c0_9 = arith.constant 0 : index
    %13 = vector.load %arg2[%c0_8, %c0_9] : memref<1024x256xbf16, #tpu.memory_space<vmem>>, vector<1024x256xbf16>
    %cst_10 = arith.constant dense<0.000000e+00> : vector<1024x8xf32>
    %14 = tpu.matmul %13, %12, %cst_10 {dimension_numbers = #tpu.dot_dimension_numbers<[1], [0], [0], [1], [0, 0, 1, 1], [], []>} : vector<1024x256xbf16>, vector<256x8xbf16>, vector<1024x8xf32> -> vector<1024x8xf32>
    %15 = arith.truncf %14 : vector<1024x8xf32> to vector<1024x8xbf16>
    %cst_11 = arith.constant 0.000000e+00 : f32
    %16 = vector.broadcast %cst_11 : f32 to vector<64x32xf32>
    %17 = vector.extract_strided_slice %15 {offsets = [0, 0], sizes = [64, 8], strides = [1, 1]} : vector<1024x8xbf16> to vector<64x8xbf16>
    %c0_12 = arith.constant 0 : index
    %c0_13 = arith.constant 0 : index
    %18 = vector.load %arg5[%c0_12, %c0_13] : memref<128x32xbf16, #tpu.memory_space<vmem>>, vector<8x32xbf16>
    %cst_14 = arith.constant dense<0.000000e+00> : vector<64x32xf32>
    %19 = tpu.matmul %17, %18, %cst_14 {dimension_numbers = #tpu.dot_dimension_numbers<[1], [0], [0], [1], [0, 0, 1, 1], [], []>} : vector<64x8xbf16>, vector<8x32xbf16>, vector<64x32xf32> -> vector<64x32xf32>
    %20 = arith.addf %16, %19 : vector<64x32xf32>
    %21 = vector.extract_strided_slice %15 {offsets = [64, 0], sizes = [64, 8], strides = [1, 1]} : vector<1024x8xbf16> to vector<64x8xbf16>
    %c8 = arith.constant 8 : index
    %c0_15 = arith.constant 0 : index
    %22 = vector.load %arg5[%c8, %c0_15] : memref<128x32xbf16, #tpu.memory_space<vmem>>, vector<8x32xbf16>
    %cst_16 = arith.constant dense<0.000000e+00> : vector<64x32xf32>
    %23 = tpu.matmul %21, %22, %cst_16 {dimension_numbers = #tpu.dot_dimension_numbers<[1], [0], [0], [1], [0, 0, 1, 1], [], []>} : vector<64x8xbf16>, vector<8x32xbf16>, vector<64x32xf32> -> vector<64x32xf32>
    %24 = arith.addf %20, %23 : vector<64x32xf32>
    %25 = vector.extract_strided_slice %15 {offsets = [128, 0], sizes = [64, 8], strides = [1, 1]} : vector<1024x8xbf16> to vector<64x8xbf16>
    %c16 = arith.constant 16 : index
    %c0_17 = arith.constant 0 : index
    %26 = vector.load %arg5[%c16, %c0_17] : memref<128x32xbf16, #tpu.memory_space<vmem>>, vector<8x32xbf16>
    %cst_18 = arith.constant dense<0.000000e+00> : vector<64x32xf32>
    %27 = tpu.matmul %25, %26, %cst_18 {dimension_numbers = #tpu.dot_dimension_numbers<[1], [0], [0], [1], [0, 0, 1, 1], [], []>} : vector<64x8xbf16>, vector<8x32xbf16>, vector<64x32xf32> -> vector<64x32xf32>
    %28 = arith.addf %24, %27 : vector<64x32xf32>
    %29 = vector.extract_strided_slice %15 {offsets = [192, 0], sizes = [64, 8], strides = [1, 1]} : vector<1024x8xbf16> to vector<64x8xbf16>
    %c24 = arith.constant 24 : index
    %c0_19 = arith.constant 0 : index
    %30 = vector.load %arg5[%c24, %c0_19] : memref<128x32xbf16, #tpu.memory_space<vmem>>, vector<8x32xbf16>
    %cst_20 = arith.constant dense<0.000000e+00> : vector<64x32xf32>
    %31 = tpu.matmul %29, %30, %cst_20 {dimension_numbers = #tpu.dot_dimension_numbers<[1], [0], [0], [1], [0, 0, 1, 1], [], []>} : vector<64x8xbf16>, vector<8x32xbf16>, vector<64x32xf32> -> vector<64x32xf32>
    %32 = arith.addf %28, %31 : vector<64x32xf32>
    %33 = vector.extract_strided_slice %15 {offsets = [256, 0], sizes = [64, 8], strides = [1, 1]} : vector<1024x8xbf16> to vector<64x8xbf16>
    %c32 = arith.constant 32 : index
    %c0_21 = arith.constant 0 : index
    %34 = vector.load %arg5[%c32, %c0_21] : memref<128x32xbf16, #tpu.memory_space<vmem>>, vector<8x32xbf16>
    %cst_22 = arith.constant dense<0.000000e+00> : vector<64x32xf32>
    %35 = tpu.matmul %33, %34, %cst_22 {dimension_numbers = #tpu.dot_dimension_numbers<[1], [0], [0], [1], [0, 0, 1, 1], [], []>} : vector<64x8xbf16>, vector<8x32xbf16>, vector<64x32xf32> -> vector<64x32xf32>
    %36 = arith.addf %32, %35 : vector<64x32xf32>
    %37 = vector.extract_strided_slice %15 {offsets = [320, 0], sizes = [64, 8], strides = [1, 1]} : vector<1024x8xbf16> to vector<64x8xbf16>
    %c40 = arith.constant 40 : index
    %c0_23 = arith.constant 0 : index
    %38 = vector.load %arg5[%c40, %c0_23] : memref<128x32xbf16, #tpu.memory_space<vmem>>, vector<8x32xbf16>
    %cst_24 = arith.constant dense<0.000000e+00> : vector<64x32xf32>
    %39 = tpu.matmul %37, %38, %cst_24 {dimension_numbers = #tpu.dot_dimension_numbers<[1], [0], [0], [1], [0, 0, 1, 1], [], []>} : vector<64x8xbf16>, vector<8x32xbf16>, vector<64x32xf32> -> vector<64x32xf32>
    %40 = arith.addf %36, %39 : vector<64x32xf32>
    %41 = vector.extract_strided_slice %15 {offsets = [384, 0], sizes = [64, 8], strides = [1, 1]} : vector<1024x8xbf16> to vector<64x8xbf16>
    %c48 = arith.constant 48 : index
    %c0_25 = arith.constant 0 : index
    %42 = vector.load %arg5[%c48, %c0_25] : memref<128x32xbf16, #tpu.memory_space<vmem>>, vector<8x32xbf16>
    %cst_26 = arith.constant dense<0.000000e+00> : vector<64x32xf32>
    %43 = tpu.matmul %41, %42, %cst_26 {dimension_numbers = #tpu.dot_dimension_numbers<[1], [0], [0], [1], [0, 0, 1, 1], [], []>} : vector<64x8xbf16>, vector<8x32xbf16>, vector<64x32xf32> -> vector<64x32xf32>
    %44 = arith.addf %40, %43 : vector<64x32xf32>
    %45 = vector.extract_strided_slice %15 {offsets = [448, 0], sizes = [64, 8], strides = [1, 1]} : vector<1024x8xbf16> to vector<64x8xbf16>
    %c56 = arith.constant 56 : index
    %c0_27 = arith.constant 0 : index
    %46 = vector.load %arg5[%c56, %c0_27] : memref<128x32xbf16, #tpu.memory_space<vmem>>, vector<8x32xbf16>
    %cst_28 = arith.constant dense<0.000000e+00> : vector<64x32xf32>
    %47 = tpu.matmul %45, %46, %cst_28 {dimension_numbers = #tpu.dot_dimension_numbers<[1], [0], [0], [1], [0, 0, 1, 1], [], []>} : vector<64x8xbf16>, vector<8x32xbf16>, vector<64x32xf32> -> vector<64x32xf32>
    %48 = arith.addf %44, %47 : vector<64x32xf32>
    %49 = vector.extract_strided_slice %15 {offsets = [512, 0], sizes = [64, 8], strides = [1, 1]} : vector<1024x8xbf16> to vector<64x8xbf16>
    %c64 = arith.constant 64 : index
    %c0_29 = arith.constant 0 : index
    %50 = vector.load %arg5[%c64, %c0_29] : memref<128x32xbf16, #tpu.memory_space<vmem>>, vector<8x32xbf16>
    %cst_30 = arith.constant dense<0.000000e+00> : vector<64x32xf32>
    %51 = tpu.matmul %49, %50, %cst_30 {dimension_numbers = #tpu.dot_dimension_numbers<[1], [0], [0], [1], [0, 0, 1, 1], [], []>} : vector<64x8xbf16>, vector<8x32xbf16>, vector<64x32xf32> -> vector<64x32xf32>
    %52 = arith.addf %48, %51 : vector<64x32xf32>
    %53 = vector.extract_strided_slice %15 {offsets = [576, 0], sizes = [64, 8], strides = [1, 1]} : vector<1024x8xbf16> to vector<64x8xbf16>
    %c72 = arith.constant 72 : index
    %c0_31 = arith.constant 0 : index
    %54 = vector.load %arg5[%c72, %c0_31] : memref<128x32xbf16, #tpu.memory_space<vmem>>, vector<8x32xbf16>
    %cst_32 = arith.constant dense<0.000000e+00> : vector<64x32xf32>
    %55 = tpu.matmul %53, %54, %cst_32 {dimension_numbers = #tpu.dot_dimension_numbers<[1], [0], [0], [1], [0, 0, 1, 1], [], []>} : vector<64x8xbf16>, vector<8x32xbf16>, vector<64x32xf32> -> vector<64x32xf32>
    %56 = arith.addf %52, %55 : vector<64x32xf32>
    %57 = vector.extract_strided_slice %15 {offsets = [640, 0], sizes = [64, 8], strides = [1, 1]} : vector<1024x8xbf16> to vector<64x8xbf16>
    %c80 = arith.constant 80 : index
    %c0_33 = arith.constant 0 : index
    %58 = vector.load %arg5[%c80, %c0_33] : memref<128x32xbf16, #tpu.memory_space<vmem>>, vector<8x32xbf16>
    %cst_34 = arith.constant dense<0.000000e+00> : vector<64x32xf32>
    %59 = tpu.matmul %57, %58, %cst_34 {dimension_numbers = #tpu.dot_dimension_numbers<[1], [0], [0], [1], [0, 0, 1, 1], [], []>} : vector<64x8xbf16>, vector<8x32xbf16>, vector<64x32xf32> -> vector<64x32xf32>
    %60 = arith.addf %56, %59 : vector<64x32xf32>
    %61 = vector.extract_strided_slice %15 {offsets = [704, 0], sizes = [64, 8], strides = [1, 1]} : vector<1024x8xbf16> to vector<64x8xbf16>
    %c88 = arith.constant 88 : index
    %c0_35 = arith.constant 0 : index
    %62 = vector.load %arg5[%c88, %c0_35] : memref<128x32xbf16, #tpu.memory_space<vmem>>, vector<8x32xbf16>
    %cst_36 = arith.constant dense<0.000000e+00> : vector<64x32xf32>
    %63 = tpu.matmul %61, %62, %cst_36 {dimension_numbers = #tpu.dot_dimension_numbers<[1], [0], [0], [1], [0, 0, 1, 1], [], []>} : vector<64x8xbf16>, vector<8x32xbf16>, vector<64x32xf32> -> vector<64x32xf32>
    %64 = arith.addf %60, %63 : vector<64x32xf32>
    %65 = vector.extract_strided_slice %15 {offsets = [768, 0], sizes = [64, 8], strides = [1, 1]} : vector<1024x8xbf16> to vector<64x8xbf16>
    %c96 = arith.constant 96 : index
    %c0_37 = arith.constant 0 : index
    %66 = vector.load %arg5[%c96, %c0_37] : memref<128x32xbf16, #tpu.memory_space<vmem>>, vector<8x32xbf16>
    %cst_38 = arith.constant dense<0.000000e+00> : vector<64x32xf32>
    %67 = tpu.matmul %65, %66, %cst_38 {dimension_numbers = #tpu.dot_dimension_numbers<[1], [0], [0], [1], [0, 0, 1, 1], [], []>} : vector<64x8xbf16>, vector<8x32xbf16>, vector<64x32xf32> -> vector<64x32xf32>
    %68 = arith.addf %64, %67 : vector<64x32xf32>
    %69 = vector.extract_strided_slice %15 {offsets = [832, 0], sizes = [64, 8], strides = [1, 1]} : vector<1024x8xbf16> to vector<64x8xbf16>
    %c104 = arith.constant 104 : index
    %c0_39 = arith.constant 0 : index
    %70 = vector.load %arg5[%c104, %c0_39] : memref<128x32xbf16, #tpu.memory_space<vmem>>, vector<8x32xbf16>
    %cst_40 = arith.constant dense<0.000000e+00> : vector<64x32xf32>
    %71 = tpu.matmul %69, %70, %cst_40 {dimension_numbers = #tpu.dot_dimension_numbers<[1], [0], [0], [1], [0, 0, 1, 1], [], []>} : vector<64x8xbf16>, vector<8x32xbf16>, vector<64x32xf32> -> vector<64x32xf32>
    %72 = arith.addf %68, %71 : vector<64x32xf32>
    %73 = vector.extract_strided_slice %15 {offsets = [896, 0], sizes = [64, 8], strides = [1, 1]} : vector<1024x8xbf16> to vector<64x8xbf16>
    %c112 = arith.constant 112 : index
    %c0_41 = arith.constant 0 : index
    %74 = vector.load %arg5[%c112, %c0_41] : memref<128x32xbf16, #tpu.memory_space<vmem>>, vector<8x32xbf16>
    %cst_42 = arith.constant dense<0.000000e+00> : vector<64x32xf32>
    %75 = tpu.matmul %73, %74, %cst_42 {dimension_numbers = #tpu.dot_dimension_numbers<[1], [0], [0], [1], [0, 0, 1, 1], [], []>} : vector<64x8xbf16>, vector<8x32xbf16>, vector<64x32xf32> -> vector<64x32xf32>
    %76 = arith.addf %72, %75 : vector<64x32xf32>
    %77 = vector.extract_strided_slice %15 {offsets = [960, 0], sizes = [64, 8], strides = [1, 1]} : vector<1024x8xbf16> to vector<64x8xbf16>
    %c120 = arith.constant 120 : index
    %c0_43 = arith.constant 0 : index
    %78 = vector.load %arg5[%c120, %c0_43] : memref<128x32xbf16, #tpu.memory_space<vmem>>, vector<8x32xbf16>
    %cst_44 = arith.constant dense<0.000000e+00> : vector<64x32xf32>
    %79 = tpu.matmul %77, %78, %cst_44 {dimension_numbers = #tpu.dot_dimension_numbers<[1], [0], [0], [1], [0, 0, 1, 1], [], []>} : vector<64x8xbf16>, vector<8x32xbf16>, vector<64x32xf32> -> vector<64x32xf32>
    %80 = arith.addf %76, %79 : vector<64x32xf32>
    %c0_45 = arith.constant 0 : index
    %c0_46 = arith.constant 0 : index
    %81 = vector.load %arg9[%c0_45, %c0_46] : memref<1x32xf32, #tpu.memory_space<vmem>>, vector<1x32xf32>
    %82 = vector.broadcast %81 : vector<1x32xf32> to vector<64x32xf32>
    %83 = arith.addf %80, %82 : vector<64x32xf32>
    %cst_47 = arith.constant 0.000000e+00 : f32
    %84 = vector.broadcast %cst_47 : f32 to vector<64x32xf32>
    %85 = arith.cmpf oge, %83, %84 : vector<64x32xf32>
    %cst_48 = arith.constant 2.000000e-01 : f32
    %86 = vector.broadcast %cst_48 : f32 to vector<64x32xf32>
    %87 = arith.mulf %86, %83 : vector<64x32xf32>
    %88 = arith.select %85, %83, %87 : vector<64x32xi1>, vector<64x32xf32>
    %89 = arith.truncf %88 : vector<64x32xf32> to vector<64x32xbf16>
    %c0_49 = arith.constant 0 : index
    %c0_50 = arith.constant 0 : index
    %90 = vector.load %arg3[%c0_49, %c0_50] : memref<256x64xbf16, #tpu.memory_space<vmem>>, vector<256x64xbf16>
    %cst_51 = arith.constant dense<0.000000e+00> : vector<256x32xf32>
    %91 = tpu.matmul %90, %89, %cst_51 {dimension_numbers = #tpu.dot_dimension_numbers<[1], [0], [0], [1], [0, 0, 1, 1], [], []>} : vector<256x64xbf16>, vector<64x32xbf16>, vector<256x32xf32> -> vector<256x32xf32>
    %92 = arith.truncf %91 : vector<256x32xf32> to vector<256x32xbf16>
    %cst_52 = arith.constant 0.000000e+00 : f32
    %93 = vector.broadcast %cst_52 : f32 to vector<16x64xf32>
    %94 = vector.extract_strided_slice %92 {offsets = [0, 0], sizes = [16, 32], strides = [1, 1]} : vector<256x32xbf16> to vector<16x32xbf16>
    %c0_53 = arith.constant 0 : index
    %c0_54 = arith.constant 0 : index
    %95 = vector.load %arg6[%c0_53, %c0_54] : memref<512x64xbf16, #tpu.memory_space<vmem>>, vector<32x64xbf16>
    %cst_55 = arith.constant dense<0.000000e+00> : vector<16x64xf32>
    %96 = tpu.matmul %94, %95, %cst_55 {dimension_numbers = #tpu.dot_dimension_numbers<[1], [0], [0], [1], [0, 0, 1, 1], [], []>} : vector<16x32xbf16>, vector<32x64xbf16>, vector<16x64xf32> -> vector<16x64xf32>
    %97 = arith.addf %93, %96 : vector<16x64xf32>
    %98 = vector.extract_strided_slice %92 {offsets = [16, 0], sizes = [16, 32], strides = [1, 1]} : vector<256x32xbf16> to vector<16x32xbf16>
    %c32_56 = arith.constant 32 : index
    %c0_57 = arith.constant 0 : index
    %99 = vector.load %arg6[%c32_56, %c0_57] : memref<512x64xbf16, #tpu.memory_space<vmem>>, vector<32x64xbf16>
    %cst_58 = arith.constant dense<0.000000e+00> : vector<16x64xf32>
    %100 = tpu.matmul %98, %99, %cst_58 {dimension_numbers = #tpu.dot_dimension_numbers<[1], [0], [0], [1], [0, 0, 1, 1], [], []>} : vector<16x32xbf16>, vector<32x64xbf16>, vector<16x64xf32> -> vector<16x64xf32>
    %101 = arith.addf %97, %100 : vector<16x64xf32>
    %102 = vector.extract_strided_slice %92 {offsets = [32, 0], sizes = [16, 32], strides = [1, 1]} : vector<256x32xbf16> to vector<16x32xbf16>
    %c64_59 = arith.constant 64 : index
    %c0_60 = arith.constant 0 : index
    %103 = vector.load %arg6[%c64_59, %c0_60] : memref<512x64xbf16, #tpu.memory_space<vmem>>, vector<32x64xbf16>
    %cst_61 = arith.constant dense<0.000000e+00> : vector<16x64xf32>
    %104 = tpu.matmul %102, %103, %cst_61 {dimension_numbers = #tpu.dot_dimension_numbers<[1], [0], [0], [1], [0, 0, 1, 1], [], []>} : vector<16x32xbf16>, vector<32x64xbf16>, vector<16x64xf32> -> vector<16x64xf32>
    %105 = arith.addf %101, %104 : vector<16x64xf32>
    %106 = vector.extract_strided_slice %92 {offsets = [48, 0], sizes = [16, 32], strides = [1, 1]} : vector<256x32xbf16> to vector<16x32xbf16>
    %c96_62 = arith.constant 96 : index
    %c0_63 = arith.constant 0 : index
    %107 = vector.load %arg6[%c96_62, %c0_63] : memref<512x64xbf16, #tpu.memory_space<vmem>>, vector<32x64xbf16>
    %cst_64 = arith.constant dense<0.000000e+00> : vector<16x64xf32>
    %108 = tpu.matmul %106, %107, %cst_64 {dimension_numbers = #tpu.dot_dimension_numbers<[1], [0], [0], [1], [0, 0, 1, 1], [], []>} : vector<16x32xbf16>, vector<32x64xbf16>, vector<16x64xf32> -> vector<16x64xf32>
    %109 = arith.addf %105, %108 : vector<16x64xf32>
    %110 = vector.extract_strided_slice %92 {offsets = [64, 0], sizes = [16, 32], strides = [1, 1]} : vector<256x32xbf16> to vector<16x32xbf16>
    %c128 = arith.constant 128 : index
    %c0_65 = arith.constant 0 : index
    %111 = vector.load %arg6[%c128, %c0_65] : memref<512x64xbf16, #tpu.memory_space<vmem>>, vector<32x64xbf16>
    %cst_66 = arith.constant dense<0.000000e+00> : vector<16x64xf32>
    %112 = tpu.matmul %110, %111, %cst_66 {dimension_numbers = #tpu.dot_dimension_numbers<[1], [0], [0], [1], [0, 0, 1, 1], [], []>} : vector<16x32xbf16>, vector<32x64xbf16>, vector<16x64xf32> -> vector<16x64xf32>
    %113 = arith.addf %109, %112 : vector<16x64xf32>
    %114 = vector.extract_strided_slice %92 {offsets = [80, 0], sizes = [16, 32], strides = [1, 1]} : vector<256x32xbf16> to vector<16x32xbf16>
    %c160 = arith.constant 160 : index
    %c0_67 = arith.constant 0 : index
    %115 = vector.load %arg6[%c160, %c0_67] : memref<512x64xbf16, #tpu.memory_space<vmem>>, vector<32x64xbf16>
    %cst_68 = arith.constant dense<0.000000e+00> : vector<16x64xf32>
    %116 = tpu.matmul %114, %115, %cst_68 {dimension_numbers = #tpu.dot_dimension_numbers<[1], [0], [0], [1], [0, 0, 1, 1], [], []>} : vector<16x32xbf16>, vector<32x64xbf16>, vector<16x64xf32> -> vector<16x64xf32>
    %117 = arith.addf %113, %116 : vector<16x64xf32>
    %118 = vector.extract_strided_slice %92 {offsets = [96, 0], sizes = [16, 32], strides = [1, 1]} : vector<256x32xbf16> to vector<16x32xbf16>
    %c192 = arith.constant 192 : index
    %c0_69 = arith.constant 0 : index
    %119 = vector.load %arg6[%c192, %c0_69] : memref<512x64xbf16, #tpu.memory_space<vmem>>, vector<32x64xbf16>
    %cst_70 = arith.constant dense<0.000000e+00> : vector<16x64xf32>
    %120 = tpu.matmul %118, %119, %cst_70 {dimension_numbers = #tpu.dot_dimension_numbers<[1], [0], [0], [1], [0, 0, 1, 1], [], []>} : vector<16x32xbf16>, vector<32x64xbf16>, vector<16x64xf32> -> vector<16x64xf32>
    %121 = arith.addf %117, %120 : vector<16x64xf32>
    %122 = vector.extract_strided_slice %92 {offsets = [112, 0], sizes = [16, 32], strides = [1, 1]} : vector<256x32xbf16> to vector<16x32xbf16>
    %c224 = arith.constant 224 : index
    %c0_71 = arith.constant 0 : index
    %123 = vector.load %arg6[%c224, %c0_71] : memref<512x64xbf16, #tpu.memory_space<vmem>>, vector<32x64xbf16>
    %cst_72 = arith.constant dense<0.000000e+00> : vector<16x64xf32>
    %124 = tpu.matmul %122, %123, %cst_72 {dimension_numbers = #tpu.dot_dimension_numbers<[1], [0], [0], [1], [0, 0, 1, 1], [], []>} : vector<16x32xbf16>, vector<32x64xbf16>, vector<16x64xf32> -> vector<16x64xf32>
    %125 = arith.addf %121, %124 : vector<16x64xf32>
    %126 = vector.extract_strided_slice %92 {offsets = [128, 0], sizes = [16, 32], strides = [1, 1]} : vector<256x32xbf16> to vector<16x32xbf16>
    %c256 = arith.constant 256 : index
    %c0_73 = arith.constant 0 : index
    %127 = vector.load %arg6[%c256, %c0_73] : memref<512x64xbf16, #tpu.memory_space<vmem>>, vector<32x64xbf16>
    %cst_74 = arith.constant dense<0.000000e+00> : vector<16x64xf32>
    %128 = tpu.matmul %126, %127, %cst_74 {dimension_numbers = #tpu.dot_dimension_numbers<[1], [0], [0], [1], [0, 0, 1, 1], [], []>} : vector<16x32xbf16>, vector<32x64xbf16>, vector<16x64xf32> -> vector<16x64xf32>
    %129 = arith.addf %125, %128 : vector<16x64xf32>
    %130 = vector.extract_strided_slice %92 {offsets = [144, 0], sizes = [16, 32], strides = [1, 1]} : vector<256x32xbf16> to vector<16x32xbf16>
    %c288 = arith.constant 288 : index
    %c0_75 = arith.constant 0 : index
    %131 = vector.load %arg6[%c288, %c0_75] : memref<512x64xbf16, #tpu.memory_space<vmem>>, vector<32x64xbf16>
    %cst_76 = arith.constant dense<0.000000e+00> : vector<16x64xf32>
    %132 = tpu.matmul %130, %131, %cst_76 {dimension_numbers = #tpu.dot_dimension_numbers<[1], [0], [0], [1], [0, 0, 1, 1], [], []>} : vector<16x32xbf16>, vector<32x64xbf16>, vector<16x64xf32> -> vector<16x64xf32>
    %133 = arith.addf %129, %132 : vector<16x64xf32>
    %134 = vector.extract_strided_slice %92 {offsets = [160, 0], sizes = [16, 32], strides = [1, 1]} : vector<256x32xbf16> to vector<16x32xbf16>
    %c320 = arith.constant 320 : index
    %c0_77 = arith.constant 0 : index
    %135 = vector.load %arg6[%c320, %c0_77] : memref<512x64xbf16, #tpu.memory_space<vmem>>, vector<32x64xbf16>
    %cst_78 = arith.constant dense<0.000000e+00> : vector<16x64xf32>
    %136 = tpu.matmul %134, %135, %cst_78 {dimension_numbers = #tpu.dot_dimension_numbers<[1], [0], [0], [1], [0, 0, 1, 1], [], []>} : vector<16x32xbf16>, vector<32x64xbf16>, vector<16x64xf32> -> vector<16x64xf32>
    %137 = arith.addf %133, %136 : vector<16x64xf32>
    %138 = vector.extract_strided_slice %92 {offsets = [176, 0], sizes = [16, 32], strides = [1, 1]} : vector<256x32xbf16> to vector<16x32xbf16>
    %c352 = arith.constant 352 : index
    %c0_79 = arith.constant 0 : index
    %139 = vector.load %arg6[%c352, %c0_79] : memref<512x64xbf16, #tpu.memory_space<vmem>>, vector<32x64xbf16>
    %cst_80 = arith.constant dense<0.000000e+00> : vector<16x64xf32>
    %140 = tpu.matmul %138, %139, %cst_80 {dimension_numbers = #tpu.dot_dimension_numbers<[1], [0], [0], [1], [0, 0, 1, 1], [], []>} : vector<16x32xbf16>, vector<32x64xbf16>, vector<16x64xf32> -> vector<16x64xf32>
    %141 = arith.addf %137, %140 : vector<16x64xf32>
    %142 = vector.extract_strided_slice %92 {offsets = [192, 0], sizes = [16, 32], strides = [1, 1]} : vector<256x32xbf16> to vector<16x32xbf16>
    %c384 = arith.constant 384 : index
    %c0_81 = arith.constant 0 : index
    %143 = vector.load %arg6[%c384, %c0_81] : memref<512x64xbf16, #tpu.memory_space<vmem>>, vector<32x64xbf16>
    %cst_82 = arith.constant dense<0.000000e+00> : vector<16x64xf32>
    %144 = tpu.matmul %142, %143, %cst_82 {dimension_numbers = #tpu.dot_dimension_numbers<[1], [0], [0], [1], [0, 0, 1, 1], [], []>} : vector<16x32xbf16>, vector<32x64xbf16>, vector<16x64xf32> -> vector<16x64xf32>
    %145 = arith.addf %141, %144 : vector<16x64xf32>
    %146 = vector.extract_strided_slice %92 {offsets = [208, 0], sizes = [16, 32], strides = [1, 1]} : vector<256x32xbf16> to vector<16x32xbf16>
    %c416 = arith.constant 416 : index
    %c0_83 = arith.constant 0 : index
    %147 = vector.load %arg6[%c416, %c0_83] : memref<512x64xbf16, #tpu.memory_space<vmem>>, vector<32x64xbf16>
    %cst_84 = arith.constant dense<0.000000e+00> : vector<16x64xf32>
    %148 = tpu.matmul %146, %147, %cst_84 {dimension_numbers = #tpu.dot_dimension_numbers<[1], [0], [0], [1], [0, 0, 1, 1], [], []>} : vector<16x32xbf16>, vector<32x64xbf16>, vector<16x64xf32> -> vector<16x64xf32>
    %149 = arith.addf %145, %148 : vector<16x64xf32>
    %150 = vector.extract_strided_slice %92 {offsets = [224, 0], sizes = [16, 32], strides = [1, 1]} : vector<256x32xbf16> to vector<16x32xbf16>
    %c448 = arith.constant 448 : index
    %c0_85 = arith.constant 0 : index
    %151 = vector.load %arg6[%c448, %c0_85] : memref<512x64xbf16, #tpu.memory_space<vmem>>, vector<32x64xbf16>
    %cst_86 = arith.constant dense<0.000000e+00> : vector<16x64xf32>
    %152 = tpu.matmul %150, %151, %cst_86 {dimension_numbers = #tpu.dot_dimension_numbers<[1], [0], [0], [1], [0, 0, 1, 1], [], []>} : vector<16x32xbf16>, vector<32x64xbf16>, vector<16x64xf32> -> vector<16x64xf32>
    %153 = arith.addf %149, %152 : vector<16x64xf32>
    %154 = vector.extract_strided_slice %92 {offsets = [240, 0], sizes = [16, 32], strides = [1, 1]} : vector<256x32xbf16> to vector<16x32xbf16>
    %c480 = arith.constant 480 : index
    %c0_87 = arith.constant 0 : index
    %155 = vector.load %arg6[%c480, %c0_87] : memref<512x64xbf16, #tpu.memory_space<vmem>>, vector<32x64xbf16>
    %cst_88 = arith.constant dense<0.000000e+00> : vector<16x64xf32>
    %156 = tpu.matmul %154, %155, %cst_88 {dimension_numbers = #tpu.dot_dimension_numbers<[1], [0], [0], [1], [0, 0, 1, 1], [], []>} : vector<16x32xbf16>, vector<32x64xbf16>, vector<16x64xf32> -> vector<16x64xf32>
    %157 = arith.addf %153, %156 : vector<16x64xf32>
    %c0_89 = arith.constant 0 : index
    %c0_90 = arith.constant 0 : index
    %158 = vector.load %arg10[%c0_89, %c0_90] : memref<1x64xf32, #tpu.memory_space<vmem>>, vector<1x64xf32>
    %159 = vector.broadcast %158 : vector<1x64xf32> to vector<16x64xf32>
    %160 = arith.addf %157, %159 : vector<16x64xf32>
    %cst_91 = arith.constant 0.000000e+00 : f32
    %161 = vector.broadcast %cst_91 : f32 to vector<16x64xf32>
    %162 = arith.cmpf oge, %160, %161 : vector<16x64xf32>
    %cst_92 = arith.constant 2.000000e-01 : f32
    %163 = vector.broadcast %cst_92 : f32 to vector<16x64xf32>
    %164 = arith.mulf %163, %160 : vector<16x64xf32>
    %165 = arith.select %162, %160, %164 : vector<16x64xi1>, vector<16x64xf32>
    %166 = arith.truncf %165 : vector<16x64xf32> to vector<16x64xbf16>
    %cst_93 = arith.constant 0.000000e+00 : f32
    %167 = vector.broadcast %cst_93 : f32 to vector<1x32xf32>
    %168 = vector.extract_strided_slice %166 {offsets = [0, 0], sizes = [1, 64], strides = [1, 1]} : vector<16x64xbf16> to vector<1x64xbf16>
    %c0_94 = arith.constant 0 : index
    %c0_95 = arith.constant 0 : index
    %169 = vector.load %arg7[%c0_94, %c0_95] : memref<1024x32xbf16, #tpu.memory_space<vmem>>, vector<64x32xbf16>
    %cst_96 = arith.constant dense<0.000000e+00> : vector<1x32xf32>
    %170 = tpu.matmul %168, %169, %cst_96 {dimension_numbers = #tpu.dot_dimension_numbers<[1], [0], [0], [1], [0, 0, 1, 1], [], []>} : vector<1x64xbf16>, vector<64x32xbf16>, vector<1x32xf32> -> vector<1x32xf32>
    %171 = arith.addf %167, %170 : vector<1x32xf32>
    %172 = vector.extract_strided_slice %166 {offsets = [1, 0], sizes = [1, 64], strides = [1, 1]} : vector<16x64xbf16> to vector<1x64xbf16>
    %c64_97 = arith.constant 64 : index
    %c0_98 = arith.constant 0 : index
    %173 = vector.load %arg7[%c64_97, %c0_98] : memref<1024x32xbf16, #tpu.memory_space<vmem>>, vector<64x32xbf16>
    %cst_99 = arith.constant dense<0.000000e+00> : vector<1x32xf32>
    %174 = tpu.matmul %172, %173, %cst_99 {dimension_numbers = #tpu.dot_dimension_numbers<[1], [0], [0], [1], [0, 0, 1, 1], [], []>} : vector<1x64xbf16>, vector<64x32xbf16>, vector<1x32xf32> -> vector<1x32xf32>
    %175 = arith.addf %171, %174 : vector<1x32xf32>
    %176 = vector.extract_strided_slice %166 {offsets = [2, 0], sizes = [1, 64], strides = [1, 1]} : vector<16x64xbf16> to vector<1x64xbf16>
    %c128_100 = arith.constant 128 : index
    %c0_101 = arith.constant 0 : index
    %177 = vector.load %arg7[%c128_100, %c0_101] : memref<1024x32xbf16, #tpu.memory_space<vmem>>, vector<64x32xbf16>
    %cst_102 = arith.constant dense<0.000000e+00> : vector<1x32xf32>
    %178 = tpu.matmul %176, %177, %cst_102 {dimension_numbers = #tpu.dot_dimension_numbers<[1], [0], [0], [1], [0, 0, 1, 1], [], []>} : vector<1x64xbf16>, vector<64x32xbf16>, vector<1x32xf32> -> vector<1x32xf32>
    %179 = arith.addf %175, %178 : vector<1x32xf32>
    %180 = vector.extract_strided_slice %166 {offsets = [3, 0], sizes = [1, 64], strides = [1, 1]} : vector<16x64xbf16> to vector<1x64xbf16>
    %c192_103 = arith.constant 192 : index
    %c0_104 = arith.constant 0 : index
    %181 = vector.load %arg7[%c192_103, %c0_104] : memref<1024x32xbf16, #tpu.memory_space<vmem>>, vector<64x32xbf16>
    %cst_105 = arith.constant dense<0.000000e+00> : vector<1x32xf32>
    %182 = tpu.matmul %180, %181, %cst_105 {dimension_numbers = #tpu.dot_dimension_numbers<[1], [0], [0], [1], [0, 0, 1, 1], [], []>} : vector<1x64xbf16>, vector<64x32xbf16>, vector<1x32xf32> -> vector<1x32xf32>
    %183 = arith.addf %179, %182 : vector<1x32xf32>
    %184 = vector.extract_strided_slice %166 {offsets = [4, 0], sizes = [1, 64], strides = [1, 1]} : vector<16x64xbf16> to vector<1x64xbf16>
    %c256_106 = arith.constant 256 : index
    %c0_107 = arith.constant 0 : index
    %185 = vector.load %arg7[%c256_106, %c0_107] : memref<1024x32xbf16, #tpu.memory_space<vmem>>, vector<64x32xbf16>
    %cst_108 = arith.constant dense<0.000000e+00> : vector<1x32xf32>
    %186 = tpu.matmul %184, %185, %cst_108 {dimension_numbers = #tpu.dot_dimension_numbers<[1], [0], [0], [1], [0, 0, 1, 1], [], []>} : vector<1x64xbf16>, vector<64x32xbf16>, vector<1x32xf32> -> vector<1x32xf32>
    %187 = arith.addf %183, %186 : vector<1x32xf32>
    %188 = vector.extract_strided_slice %166 {offsets = [5, 0], sizes = [1, 64], strides = [1, 1]} : vector<16x64xbf16> to vector<1x64xbf16>
    %c320_109 = arith.constant 320 : index
    %c0_110 = arith.constant 0 : index
    %189 = vector.load %arg7[%c320_109, %c0_110] : memref<1024x32xbf16, #tpu.memory_space<vmem>>, vector<64x32xbf16>
    %cst_111 = arith.constant dense<0.000000e+00> : vector<1x32xf32>
    %190 = tpu.matmul %188, %189, %cst_111 {dimension_numbers = #tpu.dot_dimension_numbers<[1], [0], [0], [1], [0, 0, 1, 1], [], []>} : vector<1x64xbf16>, vector<64x32xbf16>, vector<1x32xf32> -> vector<1x32xf32>
    %191 = arith.addf %187, %190 : vector<1x32xf32>
    %192 = vector.extract_strided_slice %166 {offsets = [6, 0], sizes = [1, 64], strides = [1, 1]} : vector<16x64xbf16> to vector<1x64xbf16>
    %c384_112 = arith.constant 384 : index
    %c0_113 = arith.constant 0 : index
    %193 = vector.load %arg7[%c384_112, %c0_113] : memref<1024x32xbf16, #tpu.memory_space<vmem>>, vector<64x32xbf16>
    %cst_114 = arith.constant dense<0.000000e+00> : vector<1x32xf32>
    %194 = tpu.matmul %192, %193, %cst_114 {dimension_numbers = #tpu.dot_dimension_numbers<[1], [0], [0], [1], [0, 0, 1, 1], [], []>} : vector<1x64xbf16>, vector<64x32xbf16>, vector<1x32xf32> -> vector<1x32xf32>
    %195 = arith.addf %191, %194 : vector<1x32xf32>
    %196 = vector.extract_strided_slice %166 {offsets = [7, 0], sizes = [1, 64], strides = [1, 1]} : vector<16x64xbf16> to vector<1x64xbf16>
    %c448_115 = arith.constant 448 : index
    %c0_116 = arith.constant 0 : index
    %197 = vector.load %arg7[%c448_115, %c0_116] : memref<1024x32xbf16, #tpu.memory_space<vmem>>, vector<64x32xbf16>
    %cst_117 = arith.constant dense<0.000000e+00> : vector<1x32xf32>
    %198 = tpu.matmul %196, %197, %cst_117 {dimension_numbers = #tpu.dot_dimension_numbers<[1], [0], [0], [1], [0, 0, 1, 1], [], []>} : vector<1x64xbf16>, vector<64x32xbf16>, vector<1x32xf32> -> vector<1x32xf32>
    %199 = arith.addf %195, %198 : vector<1x32xf32>
    %200 = vector.extract_strided_slice %166 {offsets = [8, 0], sizes = [1, 64], strides = [1, 1]} : vector<16x64xbf16> to vector<1x64xbf16>
    %c512 = arith.constant 512 : index
    %c0_118 = arith.constant 0 : index
    %201 = vector.load %arg7[%c512, %c0_118] : memref<1024x32xbf16, #tpu.memory_space<vmem>>, vector<64x32xbf16>
    %cst_119 = arith.constant dense<0.000000e+00> : vector<1x32xf32>
    %202 = tpu.matmul %200, %201, %cst_119 {dimension_numbers = #tpu.dot_dimension_numbers<[1], [0], [0], [1], [0, 0, 1, 1], [], []>} : vector<1x64xbf16>, vector<64x32xbf16>, vector<1x32xf32> -> vector<1x32xf32>
    %203 = arith.addf %199, %202 : vector<1x32xf32>
    %204 = vector.extract_strided_slice %166 {offsets = [9, 0], sizes = [1, 64], strides = [1, 1]} : vector<16x64xbf16> to vector<1x64xbf16>
    %c576 = arith.constant 576 : index
    %c0_120 = arith.constant 0 : index
    %205 = vector.load %arg7[%c576, %c0_120] : memref<1024x32xbf16, #tpu.memory_space<vmem>>, vector<64x32xbf16>
    %cst_121 = arith.constant dense<0.000000e+00> : vector<1x32xf32>
    %206 = tpu.matmul %204, %205, %cst_121 {dimension_numbers = #tpu.dot_dimension_numbers<[1], [0], [0], [1], [0, 0, 1, 1], [], []>} : vector<1x64xbf16>, vector<64x32xbf16>, vector<1x32xf32> -> vector<1x32xf32>
    %207 = arith.addf %203, %206 : vector<1x32xf32>
    %208 = vector.extract_strided_slice %166 {offsets = [10, 0], sizes = [1, 64], strides = [1, 1]} : vector<16x64xbf16> to vector<1x64xbf16>
    %c640 = arith.constant 640 : index
    %c0_122 = arith.constant 0 : index
    %209 = vector.load %arg7[%c640, %c0_122] : memref<1024x32xbf16, #tpu.memory_space<vmem>>, vector<64x32xbf16>
    %cst_123 = arith.constant dense<0.000000e+00> : vector<1x32xf32>
    %210 = tpu.matmul %208, %209, %cst_123 {dimension_numbers = #tpu.dot_dimension_numbers<[1], [0], [0], [1], [0, 0, 1, 1], [], []>} : vector<1x64xbf16>, vector<64x32xbf16>, vector<1x32xf32> -> vector<1x32xf32>
    %211 = arith.addf %207, %210 : vector<1x32xf32>
    %212 = vector.extract_strided_slice %166 {offsets = [11, 0], sizes = [1, 64], strides = [1, 1]} : vector<16x64xbf16> to vector<1x64xbf16>
    %c704 = arith.constant 704 : index
    %c0_124 = arith.constant 0 : index
    %213 = vector.load %arg7[%c704, %c0_124] : memref<1024x32xbf16, #tpu.memory_space<vmem>>, vector<64x32xbf16>
    %cst_125 = arith.constant dense<0.000000e+00> : vector<1x32xf32>
    %214 = tpu.matmul %212, %213, %cst_125 {dimension_numbers = #tpu.dot_dimension_numbers<[1], [0], [0], [1], [0, 0, 1, 1], [], []>} : vector<1x64xbf16>, vector<64x32xbf16>, vector<1x32xf32> -> vector<1x32xf32>
    %215 = arith.addf %211, %214 : vector<1x32xf32>
    %216 = vector.extract_strided_slice %166 {offsets = [12, 0], sizes = [1, 64], strides = [1, 1]} : vector<16x64xbf16> to vector<1x64xbf16>
    %c768 = arith.constant 768 : index
    %c0_126 = arith.constant 0 : index
    %217 = vector.load %arg7[%c768, %c0_126] : memref<1024x32xbf16, #tpu.memory_space<vmem>>, vector<64x32xbf16>
    %cst_127 = arith.constant dense<0.000000e+00> : vector<1x32xf32>
    %218 = tpu.matmul %216, %217, %cst_127 {dimension_numbers = #tpu.dot_dimension_numbers<[1], [0], [0], [1], [0, 0, 1, 1], [], []>} : vector<1x64xbf16>, vector<64x32xbf16>, vector<1x32xf32> -> vector<1x32xf32>
    %219 = arith.addf %215, %218 : vector<1x32xf32>
    %220 = vector.extract_strided_slice %166 {offsets = [13, 0], sizes = [1, 64], strides = [1, 1]} : vector<16x64xbf16> to vector<1x64xbf16>
    %c832 = arith.constant 832 : index
    %c0_128 = arith.constant 0 : index
    %221 = vector.load %arg7[%c832, %c0_128] : memref<1024x32xbf16, #tpu.memory_space<vmem>>, vector<64x32xbf16>
    %cst_129 = arith.constant dense<0.000000e+00> : vector<1x32xf32>
    %222 = tpu.matmul %220, %221, %cst_129 {dimension_numbers = #tpu.dot_dimension_numbers<[1], [0], [0], [1], [0, 0, 1, 1], [], []>} : vector<1x64xbf16>, vector<64x32xbf16>, vector<1x32xf32> -> vector<1x32xf32>
    %223 = arith.addf %219, %222 : vector<1x32xf32>
    %224 = vector.extract_strided_slice %166 {offsets = [14, 0], sizes = [1, 64], strides = [1, 1]} : vector<16x64xbf16> to vector<1x64xbf16>
    %c896 = arith.constant 896 : index
    %c0_130 = arith.constant 0 : index
    %225 = vector.load %arg7[%c896, %c0_130] : memref<1024x32xbf16, #tpu.memory_space<vmem>>, vector<64x32xbf16>
    %cst_131 = arith.constant dense<0.000000e+00> : vector<1x32xf32>
    %226 = tpu.matmul %224, %225, %cst_131 {dimension_numbers = #tpu.dot_dimension_numbers<[1], [0], [0], [1], [0, 0, 1, 1], [], []>} : vector<1x64xbf16>, vector<64x32xbf16>, vector<1x32xf32> -> vector<1x32xf32>
    %227 = arith.addf %223, %226 : vector<1x32xf32>
    %228 = vector.extract_strided_slice %166 {offsets = [15, 0], sizes = [1, 64], strides = [1, 1]} : vector<16x64xbf16> to vector<1x64xbf16>
    %c960 = arith.constant 960 : index
    %c0_132 = arith.constant 0 : index
    %229 = vector.load %arg7[%c960, %c0_132] : memref<1024x32xbf16, #tpu.memory_space<vmem>>, vector<64x32xbf16>
    %cst_133 = arith.constant dense<0.000000e+00> : vector<1x32xf32>
    %230 = tpu.matmul %228, %229, %cst_133 {dimension_numbers = #tpu.dot_dimension_numbers<[1], [0], [0], [1], [0, 0, 1, 1], [], []>} : vector<1x64xbf16>, vector<64x32xbf16>, vector<1x32xf32> -> vector<1x32xf32>
    %231 = arith.addf %227, %230 : vector<1x32xf32>
    %c0_134 = arith.constant 0 : index
    %c0_135 = arith.constant 0 : index
    %232 = vector.load %arg11[%c0_134, %c0_135] : memref<1x32xf32, #tpu.memory_space<vmem>>, vector<1x32xf32>
    %233 = arith.addf %231, %232 : vector<1x32xf32>
    %c0_136 = arith.constant 0 : index
    %c0_137 = arith.constant 0 : index
    %c0_138 = arith.constant 0 : index
    %234 = vector.load %arg12[%c0_136, %c0_137, %c0_138] : memref<1x1x32xf32, #tpu.memory_space<vmem>>, vector<1x1x32xf32>
    %235 = vector.shape_cast %234 : vector<1x1x32xf32> to vector<1x32xf32>
    %236 = vector.shape_cast %233 : vector<1x32xf32> to vector<1x1x32xf32>
    tpu.vector_store %arg12[%c0_136, %c0_137, %c0_138], %236 {strides = array<i32>} : memref<1x1x32xf32, #tpu.memory_space<vmem>>, vector<1x1x32xf32>,
    return
  }
  func.func @transform_0(%arg0: i32) -> (i32, i32, i32) {
    %c0_i32 = arith.constant 0 : i32
    %c0_i32_0 = arith.constant 0 : i32
    %c0_i32_1 = arith.constant 0 : i32
    return %arg0, %c0_i32, %c0_i32_0 : i32, i32, i32
  }
  func.func @transform_1(%arg0: i32) -> (i32, i32) {
    %c0_i32 = arith.constant 0 : i32
    %c0_i32_0 = arith.constant 0 : i32
    %c0_i32_1 = arith.constant 0 : i32
    return %c0_i32, %c0_i32_0 : i32, i32
  }
  func.func @transform_2(%arg0: i32) -> (i32, i32) {
    %c0_i32 = arith.constant 0 : i32
    %c0_i32_0 = arith.constant 0 : i32
    %c0_i32_1 = arith.constant 0 : i32
    return %c0_i32, %c0_i32_0 : i32, i32
  }
  func.func @transform_3(%arg0: i32) -> (i32, i32) {
    %c0_i32 = arith.constant 0 : i32
    %c0_i32_0 = arith.constant 0 : i32
    %c0_i32_1 = arith.constant 0 : i32
    return %c0_i32, %c0_i32_0 : i32, i32
  }
  func.func @transform_4(%arg0: i32) -> (i32, i32) {
    %c0_i32 = arith.constant 0 : i32
    %c0_i32_0 = arith.constant 0 : i32
    %c0_i32_1 = arith.constant 0 : i32
    return %c0_i32, %c0_i32_0 : i32, i32
  }
  func.func @transform_5(%arg0: i32) -> (i32, i32) {
    %c0_i32 = arith.constant 0 : i32
    %c0_i32_0 = arith.constant 0 : i32
    %c0_i32_1 = arith.constant 0 : i32
    return %c0_i32, %c0_i32_0 : i32, i32
  }
  func.func @transform_6(%arg0: i32) -> (i32, i32) {
    %c0_i32 = arith.constant 0 : i32
    %c0_i32_0 = arith.constant 0 : i32
    %c0_i32_1 = arith.constant 0 : i32
    return %c0_i32, %c0_i32_0 : i32, i32
  }
  func.func @transform_7(%arg0: i32) -> (i32, i32) {
    %c0_i32 = arith.constant 0 : i32
    %c0_i32_0 = arith.constant 0 : i32
    %c0_i32_1 = arith.constant 0 : i32
    return %c0_i32, %c0_i32_0 : i32, i32
  }
  func.func @transform_8(%arg0: i32) -> (i32, i32) {
    %c0_i32 = arith.constant 0 : i32
    %c0_i32_0 = arith.constant 0 : i32
    %c0_i32_1 = arith.constant 0 : i32
    return %c0_i32, %c0_i32_0 : i32, i32
  }
  func.func @transform_9(%arg0: i32) -> (i32, i32) {
    %c0_i32 = arith.constant 0 : i32
    %c0_i32_0 = arith.constant 0 : i32
    %c0_i32_1 = arith.constant 0 : i32
    return %c0_i32, %c0_i32_0 : i32, i32
  }
  func.func @transform_10(%arg0: i32) -> (i32, i32) {
    %c0_i32 = arith.constant 0 : i32
    %c0_i32_0 = arith.constant 0 : i32
    %c0_i32_1 = arith.constant 0 : i32
    return %c0_i32, %c0_i32_0 : i32, i32
  }
  func.func @transform_11(%arg0: i32) -> (i32, i32, i32) {
    %c0_i32 = arith.constant 0 : i32
    %c0_i32_0 = arith.constant 0 : i32
    %c0_i32_1 = arith.constant 0 : i32
    return %arg0, %c0_i32, %c0_i32_0 : i32, i32, i32
  }
}

</mosaic_0001>

<bundles_post_ra>
// kernel: encoder_forward.1
= control target key start
LH: loop header
LB: loop body
LE: loop exit
PB: predicated region body
PF: predicated region fallthrough
CT: control target
= control target key end

     0   :  { %s9508_s0 = inlined_call_operand.vmem [shape: bf16[2,256,16], index: 0, kind: input, shape index: {}]   ;;  %s9509_s1 = inlined_call_operand.vmem [shape: bf16[1024,256], index: 1, kind: input, shape index: {}]   ;;  %s9510_s2 = inlined_call_operand.vmem [shape: bf16[256,64], index: 2, kind: input, shape index: {}]   ;;  %s9511_s3 = inlined_call_operand.vmem [shape: bf16[16,8], index: 3, kind: input, shape index: {}]   ;;  %s9512_s4 = inlined_call_operand.vmem [shape: bf16[128,32], index: 4, kind: input, shape index: {}]   ;;  %s9513_s5 = inlined_call_operand.vmem [shape: bf16[512,64], index: 5, kind: input, shape index: {}]   ;;  %s9514_s6 = inlined_call_operand.vmem [shape: bf16[1024,32], index: 6, kind: input, shape index: {}]   ;;  %s9515_s7 = inlined_call_operand.vmem [shape: f32[1,8], index: 7, kind: input, shape index: {}]   ;;  %s9516_s8 = inlined_call_operand.vmem [shape: f32[1,32], index: 8, kind: input, shape index: {}]   ;;  %s9517_s9 = inlined_call_operand.vmem [shape: f32[1,64], index: 9, kind: input, shape index: {}]   ;;  %s9518_s10 = inlined_call_operand.vmem [shape: f32[1,32], index: 10, kind: input, shape index: {}]   ;;  %s9519_s11 = inlined_call_operand.hbm [shape: f32[2,1,32], index: 11, kind: output, shape index: {}]  }
   0x1   :  { %9520 = sst [smem:[#allocation5_spill]] %s9508_s0 }
   0x2   :  { %16 = vsyncpa [#allocation3], 0 }
   0x3   :  { %18 = vsyncpa [#allocation3 + $0x1], 0  ;;  %s8134_s17 = smov 0   ;;  %s8136_s18 = smov 0  }
   0x4   :  { %s8138_s19 = smov 0   ;;  %s8140_s20 = smov 0  }
   0x5 LB: > { %s8155_s21 = sadd.s32 4294967295, %s8068_s20   ;;  %s6310_s22 = sadd.s32 4294967294, %s8068_s20   ;;  %s8068_s20 = sphi %s8140_s20, %s9527_s20   ;;  %s8064_s19 = sphi %s8138_s19, %s9526_s19   ;;  %s8060_s18 = sphi %s8136_s18, %s9525_s18   ;;  %s8056_s17 = sphi %s8134_s17, %s9524_s17  }
   0x6   : > { %s8159_s23 = sadd.s32 1, %s8068_s20   ;;  %s267_s24 = sadd.s32 1, %s8064_s19 }
   0x7   : > { %s264_s25 = ssub.s32 %s8068_s20, %s8159_s23  ;;  %p277_p0 = scmp.ne.s32.totalorder %s8064_s19, %s8060_s18 }
   0x8   : > { %p265_p1 = scmp.eq.s32.totalorder %s264_s25, 0  ;;  %p278_p2 = scmp.eq.s32.totalorder %s8155_s21, 1 }
   0x9   : > { %p283_p3 = scmp.ne.s32.totalorder %s8060_s18, %s8056_s17  ;;  %p284_p4 = scmp.eq.s32.totalorder %s6310_s22, 1 }
   0xa   : > { %s8170_s26 = scalar_select %p265_p1, %s8064_s19, %s267_s24  }
   0xb   : > { %p8172_p5 = por %p278_p2, %p277_p0  ;;  %p8176_p6 = por %p284_p4, %p283_p3 }
   0xc   : > { %p6313_p7 = scmp.ge.s32.totalorder %s8068_s20, 1  ;;  %p340_p8 = scmp.lt.s32.totalorder %s8068_s20, 3 }
   0xe   : > { %p341_p9 = pnand %p6313_p7, %p340_p8 }
   0xf   : > { %v7685_v0 = vld [vmem:[%s9511_s3] sm:$0xff] (!%p341_p9)   ;;  %p379_p10 = scmp.lt.s32.totalorder (!%p341_p9), %s8155_s21, 1  ;;  %s9523_s0 = sld [smem:[#allocation5_spill]] (!%p341_p9)  ;;  %vm512_vm0 = vcmask (!%p341_p9), 130048   ;;  %v8070_v17 = vmov (!%p341_p9), 0  }
  0x10   : > { %344 = sbr.rel (%p341_p9) target bundleno = 2231 (0x8b7), region = 64  ;;  %6953 = vmatprep.subr.bf16.mxu1 (!%p341_p9), %v7685_v0  ;;  %v7704_v18 = vld [vmem:[%s9509_s1 + $0x4] ss:$8 sps:$4 sm:$0xff] (!%p341_p9)   ;;  %v8231_v19 = vld [vmem:[%s9515_s7] ss:$0 sm:$0xff] (!%p341_p9)  ;;  %s377_s15 = sand.u32 (!%p341_p9), 1, %s8060_s18  }
  0x11   : > { %6954 = vmatpush3.bf16.msra.mxu1 (!%p341_p9), %v7685_v0  ;;  %s6704_s24 = sshll.u32 (!%p341_p9), %s8155_s21, 4  ;;  %s378_s25 = scalar_lea.vmem (!%p341_p9), [#allocation2], %s377_s15 }
  0x12   : > { %1602 = vmatprep.subr.bf16.mxu1 (!%p341_p9), %v8070_v17  ;;  %s6255_s29 = sshll.u32 (!%p341_p9), %s378_s25, 4  ;;  %s9468_s29 = int_to_ptr.vmem [resolvable:$true] %s6255_s29 }
  0x13   : > { %s8006_s14 = scalar_lea.vmem (!%p341_p9), %s9468_s29, 16 }
  0x14   : > { %p8007_p11 = scmp.ne.s32.totalorder (!%p341_p9), %s9468_s29, %s8006_s14 }
  0x16   : > { %p8008_p12 = pnand (!%p341_p9), %p8007_p11, %p8172_p5 }
  0x17   : > { %s380_s12 = scalar_select %p379_p10, %s8155_s21, 1 }
  0x18   : > { %s6243_s21 = scalar_lea.sflag [#allocation3], %s377_s15  ;;  %p8009_p13 = pneg %p8008_p12 }
  0x19   : > { %s6707_s13 = sshll.u32 %s380_s12, 7 }
  0x1a   : > { %s8190_s16 = scalar_lea.vmem %s9523_s0, %s6707_s13  ;;  %s9466_s13 = scalar_lea.hbm %s9519_s11, %s6704_s24 }
  0x1b   : > { %v7686_v1 = vld [vmem:[%s8190_s16] sm:$0xff]   ;;  %v7687_v2 = vld [vmem:[%s8190_s16 + $0x8] sm:$0xff]   ;;  %v7688_v3 = vld [vmem:[%s8190_s16 + $0x10] sm:$0xff]  }
  0x1c   : > { %6955 = vmatprep.mubr.msk.bf16.mxu1 %vm512_vm0, %v7686_v1  ;;  %v7689_v4 = vld [vmem:[%s8190_s16 + $0x18] sm:$0xff]   ;;  %v7690_v5 = vld [vmem:[%s8190_s16 + $0x20] sm:$0xff]   ;;  %v7691_v6 = vld [vmem:[%s8190_s16 + $0x28] sm:$0xff]  }
  0x1d   : > { %6956 = vmatmul.mubr.msk.bf16.vlgmr.msra.gmra.mrb[0].mxu1 %vm512_vm0, %v7687_v2  ;;  %v7692_v7 = vld [vmem:[%s8190_s16 + $0x30] sm:$0xff]   ;;  %v7693_v8 = vld [vmem:[%s8190_s16 + $0x38] sm:$0xff]   ;;  %v7694_v9 = vld [vmem:[%s8190_s16 + $0x40] sm:$0xff]  }
  0x1e   : > { %6959 = vmatprep.mubr.msk.bf16.mxu1 %vm512_vm0, %v7688_v3  ;;  %v7695_v10 = vld [vmem:[%s8190_s16 + $0x48] sm:$0xff]   ;;  %v7696_v11 = vld [vmem:[%s8190_s16 + $0x50] sm:$0xff]   ;;  %v7697_v12 = vld [vmem:[%s8190_s16 + $0x58] sm:$0xff]  }
  0x1f   : > { %v7698_v13 = vld [vmem:[%s8190_s16 + $0x60] sm:$0xff]   ;;  %v7699_v14 = vld [vmem:[%s8190_s16 + $0x68] sm:$0xff]   ;;  %v7700_v15 = vld [vmem:[%s8190_s16 + $0x70] sm:$0xff]  }
  0x20   : > { %v7701_v16 = vld [vmem:[%s8190_s16 + $0x78] sm:$0xff]   ;;  %s8073_s16 = smov [#allocation2]  }
  0x21   : > { %s8010_s22 = sshll.u32 %s8073_s16, 4  ;;  %s8011_s22 = int_to_ptr.vmem [resolvable:$false] %s8010_s22 }
  0x22   : > { %s8012_s0 = scalar_lea.vmem %s8011_s22, 32  ;;  %p8013_p0 = scmp.lt.s32.totalorder %s9468_s29, %s8011_s22 }
  0x23   : > { %p8014_p1 = scmp.lt.s32.totalorder %s8012_s0, %s8006_s14 }
  0x25   : > { %6960 = vmatmul.mubr.msk.bf16.gmra.mrb[4].mxu1 %vm512_vm0, %v7689_v4  ;;  %p8015_p2 = por %p8014_p1, %p8013_p0 }
  0x26   : > { %6963 = vmatprep.mubr.msk.bf16.mxu1 %vm512_vm0, %v7690_v5 }
  0x27   : > { %p8016_p3 = pnand %p8015_p2, %p8009_p13 }
  0x2d   : > { %6964 = vmatmul.mubr.msk.bf16.gmra.mrb[8].mxu1 %vm512_vm0, %v7691_v6 }
  0x2e   : > { %6967 = vmatprep.mubr.msk.bf16.mxu1 %vm512_vm0, %v7692_v7 }
  0x35   : > { %6968 = vmatmul.mubr.msk.bf16.gmra.mrb[12].mxu1 %vm512_vm0, %v7693_v8 }
  0x36   : > { %6971 = vmatprep.mubr.msk.bf16.mxu1 %vm512_vm0, %v7694_v9 }
  0x3d   : > { %6972 = vmatmul.mubr.msk.bf16.gmra.mrb[16].mxu1 %vm512_vm0, %v7695_v10 }
  0x3e   : > { %6975 = vmatprep.mubr.msk.bf16.mxu1 %vm512_vm0, %v7696_v11 }
  0x45   : > { %6976 = vmatmul.mubr.msk.bf16.gmra.mrb[20].mxu1 %vm512_vm0, %v7697_v12 }
  0x46   : > { %6979 = vmatprep.mubr.msk.bf16.mxu1 %vm512_vm0, %v7698_v13 }
  0x4d   : > { %6980 = vmatmul.mubr.msk.bf16.gmra.mrb[24].mxu1 %vm512_vm0, %v7699_v14 }
  0x4e   : > { %6983 = vmatprep.mubr.msk.bf16.mxu1 %vm512_vm0, %v7700_v15 }
  0x55   : > { %6984 = vmatmul.mubr.msk.bf16.gmra.mrb[28].mxu1 %vm512_vm0, %v7701_v16 }
  0x56   : > { %1634 = vmatprep.mubr.bf16.mxu1 %v7704_v18 }
  0xf0   : > { %v6957_v20 = vpop.f32.mrb[0].mxu1 }
  0xf1   : > { %v604_v21 = vadd.f32 %v6957_v20, %v8231_v19  ;;  %v595_v22 = vpop.f32.mrb[1].mxu1 }
  0xf2   : > { %v596_v23 = vadd.f32 %v8231_v19, %v595_v22  ;;  %v6958_v24 = vpop.f32.mrb[2].mxu1 }
  0xf3   : > { %v756_v25 = vmul.f32 0.2, %v604_v21  ;;  %v607_v26 = vadd.f32 %v6958_v24, %v8231_v19  ;;  %v598_v27 = vpop.f32.mrb[3].mxu1  ;;  %vm724_vm1 = vcmp.ge.f32.partialorder %v604_v21, 0.0 }
  0xf4   : > { %v754_v28 = vmul.f32 0.2, %v596_v23  ;;  %v599_v29 = vadd.f32 %v8231_v19, %v598_v27  ;;  %vm722_vm2 = vcmp.ge.f32.partialorder %v596_v23, 0.0 }
  0xf5   : > { %vm725_vm3 = vcmp.ge.f32.partialorder %v607_v26, 0.0  ;;  %v757_v30 = vmul.f32 0.2, %v607_v26  ;;  %v788_v32 = vsel %vm724_vm1, %v604_v21, %v756_v25 }
  0xf6   : > { %vm723_vm4 = vcmp.ge.f32.partialorder %v599_v29, 0.0  ;;  %v755_v31 = vmul.f32 0.2, %v599_v29  ;;  %v786_v34 = vsel %vm722_vm2, %v596_v23, %v754_v28 }
  0xf7   : > { %v789_v33 = vsel %vm725_vm3, %v607_v26, %v757_v30 }
  0xf8   : > { %v787_v35 = vsel %vm723_vm4, %v599_v29, %v755_v31  ;;  %v6961_v36 = vpop.f32.mrb[4].mxu1  ;;  %v819_v37 = vpack.c.bf16 %v789_v33, %v788_v32 }
  0xf9   : > { %v620_v38 = vadd.f32 %v6961_v36, %v8231_v19  ;;  %v611_v39 = vpop.f32.mrb[5].mxu1  ;;  %v818_v40 = vpack.c.bf16 %v787_v35, %v786_v34 }
  0xfa   : > { %v612_v41 = vadd.f32 %v8231_v19, %v611_v39  ;;  %v6962_v42 = vpop.f32.mrb[6].mxu1 }
  0xfb   : > { %v760_v43 = vmul.f32 0.2, %v620_v38  ;;  %v623_v44 = vadd.f32 %v6962_v42, %v8231_v19  ;;  %v614_v45 = vpop.f32.mrb[7].mxu1  ;;  %1603 = vmatpush1.bf16.msra.mxu1 %v818_v40  ;;  %vm728_vm5 = vcmp.ge.f32.partialorder %v620_v38, 0.0 }
  0xfc   : > { %v758_v46 = vmul.f32 0.2, %v612_v41  ;;  %v615_v47 = vadd.f32 %v8231_v19, %v614_v45  ;;  %1604 = vmatprep.subr.bf16.mxu1 %v8070_v17  ;;  %vm726_vm6 = vcmp.ge.f32.partialorder %v612_v41, 0.0 }
  0xfd   : > { %vm729_vm7 = vcmp.ge.f32.partialorder %v623_v44, 0.0  ;;  %v761_v48 = vmul.f32 0.2, %v623_v44  ;;  %v792_v50 = vsel %vm728_vm5, %v620_v38, %v760_v43 }
  0xfe   : > { %vm727_vm8 = vcmp.ge.f32.partialorder %v615_v47, 0.0  ;;  %v759_v49 = vmul.f32 0.2, %v615_v47  ;;  %v790_v52 = vsel %vm726_vm6, %v612_v41, %v758_v46 }
  0xff   : > { %v793_v51 = vsel %vm729_vm7, %v623_v44, %v761_v48  ;;  %1605 = vmatpush1.bf16.msra.mxu1 %v819_v37 }
 0x100   : > { %v791_v53 = vsel %vm727_vm8, %v615_v47, %v759_v49  ;;  %v6965_v54 = vpop.f32.mrb[8].mxu1  ;;  %1606 = vmatprep.subr.bf16.mxu1 %v8070_v17  ;;  %v821_v55 = vpack.c.bf16 %v793_v51, %v792_v50 }
 0x101   : > { %v636_v56 = vadd.f32 %v6965_v54, %v8231_v19  ;;  %v627_v57 = vpop.f32.mrb[9].mxu1  ;;  %v820_v58 = vpack.c.bf16 %v791_v53, %v790_v52 }
 0x102   : > { %v628_v59 = vadd.f32 %v8231_v19, %v627_v57  ;;  %v6966_v60 = vpop.f32.mrb[10].mxu1 }
 0x103   : > { %v764_v61 = vmul.f32 0.2, %v636_v56  ;;  %v639_v62 = vadd.f32 %v6966_v60, %v8231_v19  ;;  %v630_v63 = vpop.f32.mrb[11].mxu1  ;;  %1607 = vmatpush1.bf16.msra.mxu1 %v820_v58  ;;  %vm732_vm9 = vcmp.ge.f32.partialorder %v636_v56, 0.0 }
 0x104   : > { %v762_v0 = vmul.f32 0.2, %v628_v59  ;;  %v631_v1 = vadd.f32 %v8231_v19, %v630_v63  ;;  %1608 = vmatprep.subr.bf16.mxu1 %v8070_v17  ;;  %vm730_vm10 = vcmp.ge.f32.partialorder %v628_v59, 0.0 }
 0x105   : > { %vm733_vm11 = vcmp.ge.f32.partialorder %v639_v62, 0.0  ;;  %v765_v2 = vmul.f32 0.2, %v639_v62  ;;  %v796_v4 = vsel %vm732_vm9, %v636_v56, %v764_v61 }
 0x106   : > { %vm731_vm12 = vcmp.ge.f32.partialorder %v631_v1, 0.0  ;;  %v763_v3 = vmul.f32 0.2, %v631_v1  ;;  %v794_v6 = vsel %vm730_vm10, %v628_v59, %v762_v0 }
 0x107   : > { %v797_v5 = vsel %vm733_vm11, %v639_v62, %v765_v2  ;;  %1609 = vmatpush1.bf16.msra.mxu1 %v821_v55 }
 0x108   : > { %v795_v7 = vsel %vm731_vm12, %v631_v1, %v763_v3  ;;  %v6969_v8 = vpop.f32.mrb[12].mxu1  ;;  %1610 = vmatprep.subr.bf16.mxu1 %v8070_v17  ;;  %v823_v9 = vpack.c.bf16 %v797_v5, %v796_v4 }
 0x109   : > { %v652_v10 = vadd.f32 %v6969_v8, %v8231_v19  ;;  %v643_v11 = vpop.f32.mrb[13].mxu1  ;;  %v822_v12 = vpack.c.bf16 %v795_v7, %v794_v6 }
 0x10a   : > { %v644_v13 = vadd.f32 %v8231_v19, %v643_v11  ;;  %v6970_v14 = vpop.f32.mrb[14].mxu1 }
 0x10b   : > { %v768_v15 = vmul.f32 0.2, %v652_v10  ;;  %v655_v16 = vadd.f32 %v6970_v14, %v8231_v19  ;;  %v646_v18 = vpop.f32.mrb[15].mxu1  ;;  %1611 = vmatpush1.bf16.msra.mxu1 %v822_v12  ;;  %vm736_vm13 = vcmp.ge.f32.partialorder %v652_v10, 0.0 }
 0x10c   : > { %v766_v20 = vmul.f32 0.2, %v644_v13  ;;  %v647_v21 = vadd.f32 %v8231_v19, %v646_v18  ;;  %1612 = vmatprep.subr.bf16.mxu1 %v8070_v17  ;;  %vm734_vm14 = vcmp.ge.f32.partialorder %v644_v13, 0.0 }
 0x10d   : > { %vm737_vm15 = vcmp.ge.f32.partialorder %v655_v16, 0.0  ;;  %v769_v22 = vmul.f32 0.2, %v655_v16  ;;  %v800_v24 = vsel %vm736_vm13, %v652_v10, %v768_v15 }
 0x10e   : > { %vm735_vm0 = vcmp.ge.f32.partialorder %v647_v21, 0.0  ;;  %v767_v23 = vmul.f32 0.2, %v647_v21  ;;  %v798_v26 = vsel %vm734_vm14, %v644_v13, %v766_v20 }
 0x10f   : > { %v801_v25 = vsel %vm737_vm15, %v655_v16, %v769_v22  ;;  %1613 = vmatpush1.bf16.msra.mxu1 %v823_v9 }
 0x110   : > { %v799_v27 = vsel %vm735_vm0, %v647_v21, %v767_v23  ;;  %v6973_v28 = vpop.f32.mrb[16].mxu1  ;;  %1614 = vmatprep.subr.bf16.mxu1 %v8070_v17  ;;  %v825_v29 = vpack.c.bf16 %v801_v25, %v800_v24 }
 0x111   : > { %v668_v30 = vadd.f32 %v6973_v28, %v8231_v19  ;;  %v659_v31 = vpop.f32.mrb[17].mxu1  ;;  %v824_v32 = vpack.c.bf16 %v799_v27, %v798_v26 }
 0x112   : > { %v660_v33 = vadd.f32 %v8231_v19, %v659_v31  ;;  %v6974_v34 = vpop.f32.mrb[18].mxu1 }
 0x113   : > { %v772_v35 = vmul.f32 0.2, %v668_v30  ;;  %v671_v36 = vadd.f32 %v6974_v34, %v8231_v19  ;;  %v662_v37 = vpop.f32.mrb[19].mxu1  ;;  %1615 = vmatpush1.bf16.msra.mxu1 %v824_v32  ;;  %vm740_vm1 = vcmp.ge.f32.partialorder %v668_v30, 0.0 }
 0x114   : > { %v770_v38 = vmul.f32 0.2, %v660_v33  ;;  %v663_v39 = vadd.f32 %v8231_v19, %v662_v37  ;;  %1616 = vmatprep.subr.bf16.mxu1 %v8070_v17  ;;  %vm738_vm2 = vcmp.ge.f32.partialorder %v660_v33, 0.0 }
 0x115   : > { %vm741_vm3 = vcmp.ge.f32.partialorder %v671_v36, 0.0  ;;  %v773_v40 = vmul.f32 0.2, %v671_v36  ;;  %v804_v42 = vsel %vm740_vm1, %v668_v30, %v772_v35  ;;  %vm2226_vm1 = vcmask 1043456  }
 0x116   : > { %vm739_vm4 = vcmp.ge.f32.partialorder %v663_v39, 0.0  ;;  %v771_v41 = vmul.f32 0.2, %v663_v39  ;;  %v802_v44 = vsel %vm738_vm2, %v660_v33, %v770_v38  ;;  %vm2213_vm2 = vcmask 64512  }
 0x117   : > { %v805_v43 = vsel %vm741_vm3, %v671_v36, %v773_v40  ;;  %1617 = vmatpush1.bf16.msra.mxu1 %v825_v29  ;;  %v7705_v40 = vld [vmem:[%s9509_s1 + $0x14] ss:$8 sps:$4 sm:$0xff]   ;;  %vm3776_vm3 = vcmask 523264  }
 0x118   : > { %v803_v45 = vsel %vm739_vm4, %v663_v39, %v771_v41  ;;  %v6977_v46 = vpop.f32.mrb[20].mxu1  ;;  %1618 = vmatprep.subr.bf16.mxu1 %v8070_v17  ;;  %v827_v47 = vpack.c.bf16 %v805_v43, %v804_v42  ;;  %v7707_v41 = vld [vmem:[%s9509_s1 + $0x10] ss:$8 sps:$4 sm:$0xff]   ;;  %v7708_v42 = vld [vmem:[%s9509_s1 + $0x24] ss:$8 sps:$4 sm:$0xff]  }
 0x119   : > { %v684_v48 = vadd.f32 %v6977_v46, %v8231_v19  ;;  %v675_v49 = vpop.f32.mrb[21].mxu1  ;;  %v826_v50 = vpack.c.bf16 %v803_v45, %v802_v44  ;;  %v7711_v43 = vld [vmem:[%s9509_s1 + $0x34] ss:$8 sps:$4 sm:$0xff]   ;;  %v7713_v44 = vld [vmem:[%s9509_s1 + $0x30] ss:$8 sps:$4 sm:$0xff]  }
 0x11a   : > { %v676_v51 = vadd.f32 %v8231_v19, %v675_v49  ;;  %v6978_v52 = vpop.f32.mrb[22].mxu1  ;;  %v7714_v45 = vld [vmem:[%s9509_s1 + $0x44] ss:$8 sps:$4 sm:$0xff]   ;;  %v7716_v46 = vld [vmem:[%s9509_s1 + $0x40] ss:$8 sps:$4 sm:$0xff]  }
 0x11b   : > { %v776_v53 = vmul.f32 0.2, %v684_v48  ;;  %v687_v54 = vadd.f32 %v6978_v52, %v8231_v19  ;;  %v678_v55 = vpop.f32.mrb[23].mxu1  ;;  %1619 = vmatpush1.bf16.msra.mxu1 %v826_v50  ;;  %vm744_vm5 = vcmp.ge.f32.partialorder %v684_v48, 0.0  ;;  %v7720_v49 = vld [vmem:[%s9509_s1 + $0x64] ss:$8 sps:$4 sm:$0xff]  }
 0x11c   : > { %v774_v56 = vmul.f32 0.2, %v676_v51  ;;  %v679_v57 = vadd.f32 %v8231_v19, %v678_v55  ;;  %1620 = vmatprep.subr.bf16.mxu1 %v8070_v17  ;;  %vm742_vm6 = vcmp.ge.f32.partialorder %v676_v51, 0.0  ;;  %v7722_v50 = vld [vmem:[%s9509_s1 + $0x60] ss:$8 sps:$4 sm:$0xff]  }
 0x11d   : > { %vm745_vm7 = vcmp.ge.f32.partialorder %v687_v54, 0.0  ;;  %v777_v58 = vmul.f32 0.2, %v687_v54  ;;  %v808_v60 = vsel %vm744_vm5, %v684_v48, %v776_v53  ;;  %v7719_v48 = vld [vmem:[%s9509_s1 + $0x50] ss:$8 sps:$4 sm:$0xff]  }
 0x11e   : > { %vm743_vm8 = vcmp.ge.f32.partialorder %v679_v57, 0.0  ;;  %v775_v59 = vmul.f32 0.2, %v679_v57  ;;  %v806_v62 = vsel %vm742_vm6, %v676_v51, %v774_v56  ;;  %v7723_v51 = vld [vmem:[%s9509_s1 + $0x74] ss:$8 sps:$4 sm:$0xff]  }
 0x11f   : > { %v809_v61 = vsel %vm745_vm7, %v687_v54, %v777_v58  ;;  %1621 = vmatpush1.bf16.msra.mxu1 %v827_v47  ;;  %v7717_v47 = vld [vmem:[%s9509_s1 + $0x54] ss:$8 sps:$4 sm:$0xff]   ;;  %v7725_v52 = vld [vmem:[%s9509_s1 + $0x70] ss:$8 sps:$4 sm:$0xff]   ;;  %v7726_v53 = vld [vmem:[%s9509_s1 + $0x84] ss:$8 sps:$4 sm:$0xff]  }
 0x120   : > { %v807_v63 = vsel %vm743_vm8, %v679_v57, %v775_v59  ;;  %v6981_v0 = vpop.f32.mrb[24].mxu1  ;;  %1622 = vmatprep.subr.bf16.mxu1 %v8070_v17  ;;  %v829_v1 = vpack.c.bf16 %v809_v61, %v808_v60  ;;  %v7728_v54 = vld [vmem:[%s9509_s1 + $0x80] ss:$8 sps:$4 sm:$0xff]   ;;  %v7729_v55 = vld [vmem:[%s9509_s1 + $0x94] ss:$8 sps:$4 sm:$0xff]  }
 0x121   : > { %v700_v2 = vadd.f32 %v6981_v0, %v8231_v19  ;;  %v691_v3 = vpop.f32.mrb[25].mxu1  ;;  %v828_v4 = vpack.c.bf16 %v807_v63, %v806_v62  ;;  %v7731_v56 = vld [vmem:[%s9509_s1 + $0x90] ss:$8 sps:$4 sm:$0xff]   ;;  %v7732_v57 = vld [vmem:[%s9509_s1 + $0xa4] ss:$8 sps:$4 sm:$0xff]  }
 0x122   : > { %v692_v5 = vadd.f32 %v8231_v19, %v691_v3  ;;  %v6982_v6 = vpop.f32.mrb[26].mxu1  ;;  %v7734_v58 = vld [vmem:[%s9509_s1 + $0xa0] ss:$8 sps:$4 sm:$0xff]   ;;  %v7735_v59 = vld [vmem:[%s9509_s1 + $0xb4] ss:$8 sps:$4 sm:$0xff]  }
 0x123   : > { %v780_v7 = vmul.f32 0.2, %v700_v2  ;;  %v703_v8 = vadd.f32 %v6982_v6, %v8231_v19  ;;  %v694_v9 = vpop.f32.mrb[27].mxu1  ;;  %1623 = vmatpush1.bf16.msra.mxu1 %v828_v4  ;;  %vm748_vm9 = vcmp.ge.f32.partialorder %v700_v2, 0.0  ;;  %v7737_v60 = vld [vmem:[%s9509_s1 + $0xb0] ss:$8 sps:$4 sm:$0xff]  }
 0x124   : > { %v778_v10 = vmul.f32 0.2, %v692_v5  ;;  %v695_v11 = vadd.f32 %v8231_v19, %v694_v9  ;;  %1624 = vmatprep.subr.bf16.mxu1 %v8070_v17  ;;  %vm746_vm10 = vcmp.ge.f32.partialorder %v692_v5, 0.0  ;;  %v7738_v61 = vld [vmem:[%s9509_s1 + $0xc4] ss:$8 sps:$4 sm:$0xff]  }
 0x125   : > { %vm749_vm11 = vcmp.ge.f32.partialorder %v703_v8, 0.0  ;;  %v781_v12 = vmul.f32 0.2, %v703_v8  ;;  %v812_v14 = vsel %vm748_vm9, %v700_v2, %v780_v7  ;;  %v7740_v62 = vld [vmem:[%s9509_s1 + $0xc0] ss:$8 sps:$4 sm:$0xff]  }
 0x126   : > { %vm747_vm12 = vcmp.ge.f32.partialorder %v695_v11, 0.0  ;;  %v779_v13 = vmul.f32 0.2, %v695_v11  ;;  %v810_v16 = vsel %vm746_vm10, %v692_v5, %v778_v10  ;;  %v7741_v63 = vld [vmem:[%s9509_s1 + $0xd4] ss:$8 sps:$4 sm:$0xff]  }
 0x127   : > { %v813_v15 = vsel %vm749_vm11, %v703_v8, %v781_v12  ;;  %1625 = vmatpush1.bf16.msra.mxu1 %v829_v1  ;;  %v7743_v0 = vld [vmem:[%s9509_s1 + $0xd0] ss:$8 sps:$4 sm:$0xff]   ;;  %v7744_v1 = vld [vmem:[%s9509_s1 + $0xe4] ss:$8 sps:$4 sm:$0xff]   ;;  %v7746_v2 = vld [vmem:[%s9509_s1 + $0xe0] ss:$8 sps:$4 sm:$0xff]  }
 0x128   : > { %v811_v18 = vsel %vm747_vm12, %v695_v11, %v779_v13  ;;  %v6985_v20 = vpop.f32.mrb[28].mxu1  ;;  %1626 = vmatprep.subr.bf16.mxu1 %v8070_v17  ;;  %v831_v21 = vpack.c.bf16 %v813_v15, %v812_v14  ;;  %v7747_v3 = vld [vmem:[%s9509_s1 + $0xf4] ss:$8 sps:$4 sm:$0xff]   ;;  %v7749_v4 = vld [vmem:[%s9509_s1 + $0xf0] ss:$8 sps:$4 sm:$0xff]   ;;  %vm8072_vm12 = vmmov 0  }
 0x129   : > { %v716_v22 = vadd.f32 %v6985_v20, %v8231_v19  ;;  %v707_v23 = vpop.f32.mrb[29].mxu1  ;;  %v830_v24 = vpack.c.bf16 %v811_v18, %v810_v16  ;;  %v7750_v5 = vld [vmem:[%s9509_s1 + $0x104] ss:$8 sps:$4 sm:$0xff]   ;;  %v7752_v7 = vld [vmem:[%s9509_s1 + $0x100] ss:$8 sps:$4 sm:$0xff]  }
 0x12a   : > { %v708_v25 = vadd.f32 %v8231_v19, %v707_v23  ;;  %v6986_v26 = vpop.f32.mrb[30].mxu1  ;;  %v2212_v6 = vld [vmem:[%s9512_s4 + $0x4] sm:$0xf]  ;;  %v7753_v9 = vld [vmem:[%s9509_s1 + $0x114] ss:$8 sps:$4 sm:$0xff]  }
 0x12b   : > { %v784_v27 = vmul.f32 0.2, %v716_v22  ;;  %v719_v28 = vadd.f32 %v6986_v26, %v8231_v19  ;;  %v710_v29 = vpop.f32.mrb[31].mxu1  ;;  %1627 = vmatpush1.bf16.msra.mxu1 %v830_v24  ;;  %vm752_vm13 = vcmp.ge.f32.partialorder %v716_v22, 0.0  ;;  %7627 = vmatprep.subr.msk.bf16.mxu0 %vm2226_vm1, %v2212_v6  ;;  %v2228_v8 = vsel %vm2226_vm1, %v2212_v6, 0 }
 0x12c   : > { %v782_v30 = vmul.f32 0.2, %v708_v25  ;;  %v711_v31 = vadd.f32 %v8231_v19, %v710_v29  ;;  %1628 = vmatprep.subr.bf16.mxu1 %v8070_v17  ;;  %vm750_vm14 = vcmp.ge.f32.partialorder %v708_v25, 0.0  ;;  %v7702_v19 = vld [vmem:[%s9509_s1] ss:$8 sps:$4 sm:$0xff]   ;;  %6988 = vmatpush3.bf16.msra.mxu0 %v2228_v8 }
 0x12d   : > { %vm753_vm15 = vcmp.ge.f32.partialorder %v719_v28, 0.0  ;;  %v785_v32 = vmul.f32 0.2, %v719_v28  ;;  %v816_v34 = vsel %vm752_vm13, %v716_v22, %v784_v27  ;;  %v7755_v10 = vld [vmem:[%s9509_s1 + $0x110] ss:$8 sps:$4 sm:$0xff]   ;;  %vm4022_vm13 = vcmask 261120  }
 0x12e   : > { %vm751_vm0 = vcmp.ge.f32.partialorder %v711_v31, 0.0  ;;  %v783_v33 = vmul.f32 0.2, %v711_v31  ;;  %v814_v36 = vsel %vm750_vm14, %v708_v25, %v782_v30  ;;  %v7756_v11 = vld [vmem:[%s9509_s1 + $0x124] ss:$8 sps:$4 sm:$0xff]  }
 0x12f   : > { %v817_v35 = vsel %vm753_vm15, %v719_v28, %v785_v32  ;;  %1629 = vmatpush1.bf16.msra.mxu1 %v831_v21  ;;  %v7758_v12 = vld [vmem:[%s9509_s1 + $0x120] ss:$8 sps:$4 sm:$0xff]   ;;  %v7759_v13 = vld [vmem:[%s9509_s1 + $0x134] ss:$8 sps:$4 sm:$0xff]   ;;  %v7761_v15 = vld [vmem:[%s9509_s1 + $0x130] ss:$8 sps:$4 sm:$0xff]  }
 0x130   : > { %v815_v37 = vsel %vm751_vm0, %v711_v31, %v783_v33  ;;  %1630 = vmatprep.subr.bf16.mxu1 %v8070_v17  ;;  %v833_v38 = vpack.c.bf16 %v817_v35, %v816_v34  ;;  %v8402_v14 = vld [vmem:[%s9512_s4] sm:$0xf]  ;;  %v7762_v16 = vld [vmem:[%s9509_s1 + $0x144] ss:$8 sps:$4 sm:$0xff]   ;;  %v7765_v20 = vld [vmem:[%s9509_s1 + $0x154] ss:$8 sps:$4 sm:$0xff]  }
 0x131   : > { %v832_v39 = vpack.c.bf16 %v815_v37, %v814_v36  ;;  %7628 = vmatprep.subr.msk.bf16.mxu0 %vm2226_vm1, %v8402_v14  ;;  %v7764_v18 = vld [vmem:[%s9509_s1 + $0x140] ss:$8 sps:$4 sm:$0xff]   ;;  %v7767_v21 = vld [vmem:[%s9509_s1 + $0x150] ss:$8 sps:$4 sm:$0xff]   ;;  %v7768_v22 = vld [vmem:[%s9509_s1 + $0x164] ss:$8 sps:$4 sm:$0xff]  }
 0x132   : > { %v7770_v23 = vld [vmem:[%s9509_s1 + $0x160] ss:$8 sps:$4 sm:$0xff]   ;;  %v7771_v24 = vld [vmem:[%s9509_s1 + $0x174] ss:$8 sps:$4 sm:$0xff]   ;;  %v7773_v25 = vld [vmem:[%s9509_s1 + $0x170] ss:$8 sps:$4 sm:$0xff]  }
 0x133   : > { %1631 = vmatpush1.bf16.msra.mxu1 %v832_v39  ;;  %v7774_v26 = vld [vmem:[%s9509_s1 + $0x184] ss:$8 sps:$4 sm:$0xff]   ;;  %v7776_v27 = vld [vmem:[%s9509_s1 + $0x180] ss:$8 sps:$4 sm:$0xff]   ;;  %v7777_v28 = vld [vmem:[%s9509_s1 + $0x194] ss:$8 sps:$4 sm:$0xff]  }
 0x134   : > { %1632 = vmatprep.subr.bf16.mxu1 %v8070_v17  ;;  %v7710_v17 = vld [vmem:[%s9509_s1 + $0x20] ss:$8 sps:$4 sm:$0xff]   ;;  %v7779_v29 = vld [vmem:[%s9509_s1 + $0x190] ss:$8 sps:$4 sm:$0xff]   ;;  %v7780_v30 = vld [vmem:[%s9509_s1 + $0x1a4] ss:$8 sps:$4 sm:$0xff]  }
 0x135   : > { %v7782_v31 = vld [vmem:[%s9509_s1 + $0x1a0] ss:$8 sps:$4 sm:$0xff]   ;;  %v7783_v32 = vld [vmem:[%s9509_s1 + $0x1b4] ss:$8 sps:$4 sm:$0xff]   ;;  %v7785_v35 = vld [vmem:[%s9509_s1 + $0x1b0] ss:$8 sps:$4 sm:$0xff]  }
 0x136   : > { %v7786_v37 = vld [vmem:[%s9509_s1 + $0x1c4] ss:$8 sps:$4 sm:$0xff]   ;;  %v7801_v6 = vld [vmem:[%s9509_s1 + $0x214] ss:$8 sps:$4 sm:$0xff]   ;;  %vm6240_vm0 = vcmask 253952  }
 0x137   : > { %1633 = vmatpush1.bf16.msra.mxu1 %v833_v38 }
 0x13a   : > { %1635 = vmatmul.mubr.bf16.vlgmr.msra.gmra.mrb[32].mxu1 %v7702_v19 }
 0x13b   : > { %1642 = vmatprep.mubr.bf16.mxu1 %v7705_v40 }
 0x142   : > { %1643 = vmatmul.mubr.bf16.gmra.mrb[36].mxu1 %v7707_v41  ;;  %v7788_v41 = vld [vmem:[%s9509_s1 + $0x1c0] ss:$8 sps:$4 sm:$0xff]  }
 0x143   : > { %1650 = vmatprep.mubr.bf16.mxu1 %v7708_v42 }
 0x14a   : > { %1651 = vmatmul.mubr.bf16.gmra.mrb[40].mxu1 %v7710_v17  ;;  %v7789_v17 = vld [vmem:[%s9509_s1 + $0x1d4] ss:$8 sps:$4 sm:$0xff]  }
 0x14b   : > { %1658 = vmatprep.mubr.bf16.mxu1 %v7711_v43 }
 0x152   : > { %1659 = vmatmul.mubr.bf16.gmra.mrb[44].mxu1 %v7713_v44 }
 0x153   : > { %1666 = vmatprep.mubr.bf16.mxu1 %v7714_v45 }
 0x15a   : > { %1667 = vmatmul.mubr.bf16.gmra.mrb[48].mxu1 %v7716_v46 }
 0x15b   : > { %1674 = vmatprep.mubr.bf16.mxu1 %v7717_v47  ;;  %v7791_v47 = vld [vmem:[%s9509_s1 + $0x1d0] ss:$8 sps:$4 sm:$0xff]  }
 0x162   : > { %1675 = vmatmul.mubr.bf16.gmra.mrb[52].mxu1 %v7719_v48 }
 0x163   : > { %1682 = vmatprep.mubr.bf16.mxu1 %v7720_v49  ;;  %v7792_v49 = vld [vmem:[%s9509_s1 + $0x1e4] ss:$8 sps:$4 sm:$0xff]  }
 0x16a   : > { %1683 = vmatmul.mubr.bf16.gmra.mrb[56].mxu1 %v7722_v50 }
 0x16b   : > { %1690 = vmatprep.mubr.bf16.mxu1 %v7723_v51 }
 0x172   : > { %1691 = vmatmul.mubr.bf16.gmra.mrb[60].mxu1 %v7725_v52 }
 0x173   : > { %1698 = vmatprep.mubr.bf16.mxu1 %v7726_v53 }
 0x17a   : > { %1699 = vmatmul.mubr.bf16.gmra.mrb[64].mxu1 %v7728_v54  ;;  %v7794_v54 = vld [vmem:[%s9509_s1 + $0x1e0] ss:$8 sps:$4 sm:$0xff]  }
 0x17b   : > { %1706 = vmatprep.mubr.bf16.mxu1 %v7729_v55 }
 0x182   : > { %1707 = vmatmul.mubr.bf16.gmra.mrb[68].mxu1 %v7731_v56  ;;  %v7795_v56 = vld [vmem:[%s9509_s1 + $0x1f4] ss:$8 sps:$4 sm:$0xff]  }
 0x183   : > { %1714 = vmatprep.mubr.bf16.mxu1 %v7732_v57 }
 0x18a   : > { %1715 = vmatmul.mubr.bf16.gmra.mrb[72].mxu1 %v7734_v58 }
 0x18b   : > { %1722 = vmatprep.mubr.bf16.mxu1 %v7735_v59 }
 0x192   : > { %1723 = vmatmul.mubr.bf16.gmra.mrb[76].mxu1 %v7737_v60 }
 0x193   : > { %1730 = vmatprep.mubr.bf16.mxu1 %v7738_v61  ;;  %v7797_v61 = vld [vmem:[%s9509_s1 + $0x1f0] ss:$8 sps:$4 sm:$0xff]  }
 0x19a   : > { %1731 = vmatmul.mubr.bf16.gmra.mrb[80].mxu1 %v7740_v62 }
 0x19b   : > { %1738 = vmatprep.mubr.bf16.mxu1 %v7741_v63  ;;  %v7798_v63 = vld [vmem:[%s9509_s1 + $0x204] ss:$8 sps:$4 sm:$0xff]  }
 0x1a2   : > { %1739 = vmatmul.mubr.bf16.gmra.mrb[84].mxu1 %v7743_v0 }
 0x1a3   : > { %1746 = vmatprep.mubr.bf16.mxu1 %v7744_v1 }
 0x1aa   : > { %1747 = vmatmul.mubr.bf16.gmra.mrb[88].mxu1 %v7746_v2 }
 0x1ab   : > { %1754 = vmatprep.mubr.bf16.mxu1 %v7747_v3 }
 0x1b2   : > { %1755 = vmatmul.mubr.bf16.gmra.mrb[92].mxu1 %v7749_v4  ;;  %v7800_v4 = vld [vmem:[%s9509_s1 + $0x200] ss:$8 sps:$4 sm:$0xff]  }
 0x1b3   : > { %1762 = vmatprep.mubr.bf16.mxu1 %v7750_v5 }
 0x1ba   : > { %1763 = vmatmul.mubr.bf16.gmra.mrb[96].mxu1 %v7752_v7 }
 0x1bb   : > { %1770 = vmatprep.mubr.bf16.mxu1 %v7753_v9  ;;  %v2308_v9 = vsel %vm2226_vm1, %v8402_v14, 0  ;;  %v7804_v14 = vld [vmem:[%s9509_s1 + $0x224] ss:$8 sps:$4 sm:$0xff]  }
 0x1c2   : > { %1771 = vmatmul.mubr.bf16.gmra.mrb[100].mxu1 %v7755_v10  ;;  %v2375_v10 = vld [vmem:[%s9512_s4 + $0x8] sm:$0xf] }
 0x1c3   : > { %1778 = vmatprep.mubr.bf16.mxu1 %v7756_v11 }
 0x1ca   : > { %1779 = vmatmul.mubr.bf16.gmra.mrb[104].mxu1 %v7758_v12 }
 0x1cb   : > { %1786 = vmatprep.mubr.bf16.mxu1 %v7759_v13  ;;  %v7803_v13 = vld [vmem:[%s9509_s1 + $0x210] ss:$8 sps:$4 sm:$0xff]  }
 0x1d2   : > { %1787 = vmatmul.mubr.bf16.gmra.mrb[108].mxu1 %v7761_v15 }
 0x1d3   : > { %1794 = vmatprep.mubr.bf16.mxu1 %v7762_v16 }
 0x1da   : > { %1795 = vmatmul.mubr.bf16.gmra.mrb[112].mxu1 %v7764_v18 }
 0x1db   : > { %1802 = vmatprep.mubr.bf16.mxu1 %v7765_v20 }
 0x1e2   : > { %1803 = vmatmul.mubr.bf16.gmra.mrb[116].mxu1 %v7767_v21 }
 0x1e3   : > { %1810 = vmatprep.mubr.bf16.mxu1 %v7768_v22  ;;  %v7806_v22 = vld [vmem:[%s9509_s1 + $0x220] ss:$8 sps:$4 sm:$0xff]  }
 0x1ea   : > { %1811 = vmatmul.mubr.bf16.gmra.mrb[120].mxu1 %v7770_v23 }
 0x1eb   : > { %1818 = vmatprep.mubr.bf16.mxu1 %v7771_v24  ;;  %v7807_v24 = vld [vmem:[%s9509_s1 + $0x234] ss:$8 sps:$4 sm:$0xff]  }
 0x1f2   : > { %1819 = vmatmul.mubr.bf16.gmra.mrb[124].mxu1 %v7773_v25 }
 0x1f3   : > { %1826 = vmatprep.mubr.bf16.mxu1 %v7774_v26 }
 0x1fa   : > { %1827 = vmatmul.mubr.bf16.gmra.mrb[128].mxu1 %v7776_v27 }
 0x1fb   : > { %1834 = vmatprep.mubr.bf16.mxu1 %v7777_v28 }
 0x202   : > { %1835 = vmatmul.mubr.bf16.gmra.mrb[132].mxu1 %v7779_v29  ;;  %v7809_v29 = vld [vmem:[%s9509_s1 + $0x230] ss:$8 sps:$4 sm:$0xff]  }
 0x203   : > { %1842 = vmatprep.mubr.bf16.mxu1 %v7780_v30 }
 0x20a   : > { %1843 = vmatmul.mubr.bf16.gmra.mrb[136].mxu1 %v7782_v31  ;;  %v7810_v31 = vld [vmem:[%s9509_s1 + $0x244] ss:$8 sps:$4 sm:$0xff]  }
 0x20b   : > { %1850 = vmatprep.mubr.bf16.mxu1 %v7783_v32 }
 0x20d   : > { %v8454_v33 = vpop.f32.mrb[32].mxu1 }
 0x20e   : > { %v1638_v34 = vpop.f32.mrb[33].mxu1 }
 0x20f   : > { %v8459_v36 = vpop.f32.mrb[34].mxu1 }
 0x210   : > { %v2147_v38 = vpack.c.bf16 %v8459_v36, %v8454_v33  ;;  %v1641_v39 = vpop.f32.mrb[35].mxu1  ;;  %v2464_v33 = vld [vmem:[%s9512_s4 + $0xc] sm:$0xf] }
 0x212   : > { %1851 = vmatmul.mubr.bf16.gmra.mrb[140].mxu1 %v7785_v35  ;;  %v2389_v35 = vsel %vm2226_vm1, %v2375_v10, 0 }
 0x213   : > { %1858 = vmatprep.mubr.bf16.mxu1 %v7786_v37 }
 0x215   : > { %v8466_v19 = vpop.f32.mrb[36].mxu1 }
 0x216   : > { %v1646_v40 = vpop.f32.mrb[37].mxu1 }
 0x217   : > { %v8471_v42 = vpop.f32.mrb[38].mxu1 }
 0x218   : > { %v2148_v43 = vpack.c.bf16 %v8471_v42, %v8466_v19  ;;  %v1649_v44 = vpop.f32.mrb[39].mxu1  ;;  %v7813_v19 = vld [vmem:[%s9509_s1 + $0x254] ss:$8 sps:$4 sm:$0xff]  }
 0x21a   : > { %1859 = vmatmul.mubr.bf16.gmra.mrb[144].mxu1 %v7788_v41 }
 0x21b   : > { %1866 = vmatprep.mubr.bf16.mxu1 %v7789_v17 }
 0x21d   : > { %v8478_v45 = vpop.f32.mrb[40].mxu1 }
 0x21e   : > { %v1654_v46 = vpop.f32.mrb[41].mxu1 }
 0x21f   : > { %v8483_v48 = vpop.f32.mrb[42].mxu1 }
 0x220   : > { %v2149_v50 = vpack.c.bf16 %v8483_v48, %v8478_v45  ;;  %v1657_v51 = vpop.f32.mrb[43].mxu1  ;;  %v7816_v45 = vld [vmem:[%s9509_s1 + $0x264] ss:$8 sps:$4 sm:$0xff]   ;;  %v2478_v48 = vsel %vm2226_vm1, %v2464_v33, 0 }
 0x222   : > { %1867 = vmatmul.mubr.bf16.gmra.mrb[148].mxu1 %v7791_v47 }
 0x223   : > { %1874 = vmatprep.mubr.bf16.mxu1 %v7792_v49  ;;  %v2553_v49 = vld [vmem:[%s9512_s4 + $0x10] sm:$0xf] }
 0x225   : > { %v8490_v52 = vpop.f32.mrb[44].mxu1 }
 0x226   : > { %v1662_v53 = vpop.f32.mrb[45].mxu1 }
 0x227   : > { %v8495_v55 = vpop.f32.mrb[46].mxu1 }
 0x228   : > { %v2150_v57 = vpack.c.bf16 %v8495_v55, %v8490_v52  ;;  %v1665_v58 = vpop.f32.mrb[47].mxu1  ;;  %v7818_v52 = vld [vmem:[%s9509_s1 + $0x260] ss:$8 sps:$4 sm:$0xff]  }
 0x22a   : > { %1875 = vmatmul.mubr.bf16.gmra.mrb[152].mxu1 %v7794_v54  ;;  %v7819_v54 = vld [vmem:[%s9509_s1 + $0x274] ss:$8 sps:$4 sm:$0xff]  }
 0x22b   : > { %1882 = vmatprep.mubr.bf16.mxu1 %v7795_v56 }
 0x22d   : > { %v1668_v59 = vpop.f32.mrb[48].mxu1 }
 0x22e   : > { %v1670_v60 = vpop.f32.mrb[49].mxu1 }
 0x22f   : > { %v1671_v62 = vpop.f32.mrb[50].mxu1 }
 0x230   : > { %v2151_v0 = vpack.c.bf16 %v1671_v62, %v1668_v59  ;;  %v1673_v1 = vpop.f32.mrb[51].mxu1  ;;  %v7821_v59 = vld [vmem:[%s9509_s1 + $0x270] ss:$8 sps:$4 sm:$0xff]  }
 0x232   : > { %1883 = vmatmul.mubr.bf16.gmra.mrb[156].mxu1 %v7797_v61  ;;  %6989 = vmatprep.mubr.msk.bf16.mxu0 %vm2213_vm2, %v2151_v0  ;;  %v7822_v61 = vld [vmem:[%s9509_s1 + $0x284] ss:$8 sps:$4 sm:$0xff]  }
 0x233   : > { %1890 = vmatprep.mubr.bf16.mxu1 %v7798_v63 }
 0x235   : > { %v1676_v2 = vpop.f32.mrb[52].mxu1 }
 0x236   : > { %v1678_v3 = vpop.f32.mrb[53].mxu1 }
 0x237   : > { %v1679_v5 = vpop.f32.mrb[54].mxu1 }
 0x238   : > { %v2152_v7 = vpack.c.bf16 %v1679_v5, %v1676_v2  ;;  %v1681_v8 = vpop.f32.mrb[55].mxu1  ;;  %v7824_v2 = vld [vmem:[%s9509_s1 + $0x280] ss:$8 sps:$4 sm:$0xff]  }
 0x239   : > { %v2642_v8 = vld [vmem:[%s9512_s4 + $0x14] sm:$0xf] }
 0x23a   : > { %1891 = vmatmul.mubr.bf16.gmra.mrb[160].mxu1 %v7800_v4  ;;  %6990 = vmatmul.mubr.msk.bf16.vlgmr.msra.gmra.mrb[0].mxu0 %vm2213_vm2, %v2152_v7  ;;  %v7825_v4 = vld [vmem:[%s9509_s1 + $0x294] ss:$8 sps:$4 sm:$0xff]   ;;  %v2567_v7 = vsel %vm2226_vm1, %v2553_v49, 0 }
 0x23b   : > { %1898 = vmatprep.mubr.bf16.mxu1 %v7801_v6  ;;  %6998 = vmatpush3.bf16.msra.mxu0 %v2308_v9 }
 0x23c   : > { %7629 = vmatprep.subr.msk.bf16.mxu0 %vm2226_vm1, %v2375_v10 }
 0x23d   : > { %v1684_v11 = vpop.f32.mrb[56].mxu1 }
 0x23e   : > { %v1686_v12 = vpop.f32.mrb[57].mxu1 }
 0x23f   : > { %v1687_v15 = vpop.f32.mrb[58].mxu1 }
 0x240   : > { %v2153_v16 = vpack.c.bf16 %v1687_v15, %v1684_v11  ;;  %v1689_v18 = vpop.f32.mrb[59].mxu1  ;;  %v7827_v11 = vld [vmem:[%s9509_s1 + $0x290] ss:$8 sps:$4 sm:$0xff]  }
 0x242   : > { %1899 = vmatmul.mubr.bf16.gmra.mrb[164].mxu1 %v7803_v13  ;;  %6993 = vmatprep.mubr.msk.bf16.mxu0 %vm2213_vm2, %v2153_v16  ;;  %v7828_v13 = vld [vmem:[%s9509_s1 + $0x2a4] ss:$8 sps:$4 sm:$0xff]  }
 0x243   : > { %1906 = vmatprep.mubr.bf16.mxu1 %v7804_v14 }
 0x245   : > { %v1692_v20 = vpop.f32.mrb[60].mxu1 }
 0x246   : > { %v1694_v21 = vpop.f32.mrb[61].mxu1 }
 0x247   : > { %v1695_v23 = vpop.f32.mrb[62].mxu1 }
 0x248   : > { %v2154_v25 = vpack.c.bf16 %v1695_v23, %v1692_v20  ;;  %v1697_v26 = vpop.f32.mrb[63].mxu1  ;;  %v7830_v20 = vld [vmem:[%s9509_s1 + $0x2a0] ss:$8 sps:$4 sm:$0xff]  }
 0x24a   : > { %1907 = vmatmul.mubr.bf16.gmra.mrb[168].mxu1 %v7806_v22  ;;  %6994 = vmatmul.mubr.msk.bf16.gmra.mrb[4].mxu0 %vm2213_vm2, %v2154_v25  ;;  %v7831_v22 = vld [vmem:[%s9509_s1 + $0x2b4] ss:$8 sps:$4 sm:$0xff]  }
 0x24b   : > { %6999 = vmatprep.mubr.msk.bf16.mxu0 %vm2213_vm2, %v2147_v38  ;;  %1914 = vmatprep.mubr.bf16.mxu1 %v7807_v24  ;;  %v7812_v38 = vld [vmem:[%s9509_s1 + $0x240] ss:$8 sps:$4 sm:$0xff]  }
 0x24d   : > { %v1700_v27 = vpop.f32.mrb[64].mxu1 }
 0x24e   : > { %v1702_v28 = vpop.f32.mrb[65].mxu1 }
 0x24f   : > { %v1703_v30 = vpop.f32.mrb[66].mxu1 }
 0x250   : > { %v2155_v32 = vpack.c.bf16 %v1703_v30, %v1700_v27  ;;  %v1705_v34 = vpop.f32.mrb[67].mxu1  ;;  %v7833_v27 = vld [vmem:[%s9509_s1 + $0x2b0] ss:$8 sps:$4 sm:$0xff]  }
 0x252   : > { %1915 = vmatmul.mubr.bf16.gmra.mrb[172].mxu1 %v7809_v29  ;;  %7000 = vmatmul.mubr.msk.bf16.vlgmr.msra.gmra.mrb[0].mxu0 %vm2213_vm2, %v2148_v43  ;;  %v7815_v43 = vld [vmem:[%s9509_s1 + $0x250] ss:$8 sps:$4 sm:$0xff]   ;;  %v7834_v29 = vld [vmem:[%s9509_s1 + $0x2c4] ss:$8 sps:$4 sm:$0xff]  }
 0x253   : > { %7003 = vmatprep.mubr.msk.bf16.mxu0 %vm2213_vm2, %v2149_v50  ;;  %1922 = vmatprep.mubr.bf16.mxu1 %v7810_v31 }
 0x254   : > { %7008 = vmatpush3.bf16.msra.mxu0 %v2389_v35  ;;  %v7836_v35 = vld [vmem:[%s9509_s1 + $0x2c0] ss:$8 sps:$4 sm:$0xff]  }
 0x255   : > { %v1708_v36 = vpop.f32.mrb[68].mxu1  ;;  %7630 = vmatprep.subr.msk.bf16.mxu0 %vm2226_vm1, %v2464_v33 }
 0x256   : > { %v1710_v37 = vpop.f32.mrb[69].mxu1 }
 0x257   : > { %v1711_v39 = vpop.f32.mrb[70].mxu1 }
 0x258   : > { %v2156_v40 = vpack.c.bf16 %v1711_v39, %v1708_v36  ;;  %v1713_v41 = vpop.f32.mrb[71].mxu1  ;;  %v7837_v36 = vld [vmem:[%s9509_s1 + $0x2d4] ss:$8 sps:$4 sm:$0xff]   ;;  %v2656_v39 = vsel %vm2226_vm1, %v2642_v8, 0 }
 0x25a   : > { %1923 = vmatmul.mubr.bf16.gmra.mrb[176].mxu1 %v7812_v38  ;;  %7004 = vmatmul.mubr.msk.bf16.gmra.mrb[4].mxu0 %vm2213_vm2, %v2150_v57 }
 0x25b   : > { %7009 = vmatprep.mubr.msk.bf16.mxu0 %vm2213_vm2, %v2155_v32  ;;  %1930 = vmatprep.mubr.bf16.mxu1 %v7813_v19  ;;  %v2731_v19 = vld [vmem:[%s9512_s4 + $0x18] sm:$0xf] }
 0x25d   : > { %v1716_v42 = vpop.f32.mrb[72].mxu1 }
 0x25e   : > { %v1718_v17 = vpop.f32.mrb[73].mxu1 }
 0x25f   : > { %v1719_v44 = vpop.f32.mrb[74].mxu1 }
 0x260   : > { %v2157_v46 = vpack.c.bf16 %v1719_v44, %v1716_v42  ;;  %v1721_v47 = vpop.f32.mrb[75].mxu1  ;;  %v7839_v42 = vld [vmem:[%s9509_s1 + $0x2d0] ss:$8 sps:$4 sm:$0xff]  }
 0x262   : > { %1931 = vmatmul.mubr.bf16.gmra.mrb[180].mxu1 %v7815_v43  ;;  %7010 = vmatmul.mubr.msk.bf16.vlgmr.msra.gmra.mrb[0].mxu0 %vm2213_vm2, %v2156_v40  ;;  %v7840_v43 = vld [vmem:[%s9509_s1 + $0x2e4] ss:$8 sps:$4 sm:$0xff]  }
 0x263   : > { %7013 = vmatprep.mubr.msk.bf16.mxu0 %vm2213_vm2, %v2157_v46  ;;  %1938 = vmatprep.mubr.bf16.mxu1 %v7816_v45 }
 0x264   : > { %7018 = vmatpush3.bf16.msra.mxu0 %v2478_v48  ;;  %v7842_v48 = vld [vmem:[%s9509_s1 + $0x2e0] ss:$8 sps:$4 sm:$0xff]  }
 0x265   : > { %v1724_v50 = vpop.f32.mrb[76].mxu1  ;;  %7631 = vmatprep.subr.msk.bf16.mxu0 %vm2226_vm1, %v2553_v49 }
 0x266   : > { %v1726_v51 = vpop.f32.mrb[77].mxu1 }
 0x267   : > { %v1727_v53 = vpop.f32.mrb[78].mxu1 }
 0x268   : > { %v2158_v55 = vpack.c.bf16 %v1727_v53, %v1724_v50  ;;  %v1729_v56 = vpop.f32.mrb[79].mxu1  ;;  %v7843_v50 = vld [vmem:[%s9509_s1 + $0x2f4] ss:$8 sps:$4 sm:$0xff]  }
 0x26a   : > { %1939 = vmatmul.mubr.bf16.gmra.mrb[184].mxu1 %v7818_v52  ;;  %7014 = vmatmul.mubr.msk.bf16.gmra.mrb[4].mxu0 %vm2213_vm2, %v2158_v55  ;;  %v7845_v55 = vld [vmem:[%s9509_s1 + $0x2f0] ss:$8 sps:$4 sm:$0xff]  }
 0x26b   : > { %1946 = vmatprep.mubr.bf16.mxu1 %v7819_v54 }
 0x26d   : > { %v1732_v57 = vpop.f32.mrb[80].mxu1 }
 0x26e   : > { %v1734_v58 = vpop.f32.mrb[81].mxu1 }
 0x26f   : > { %v1735_v60 = vpop.f32.mrb[82].mxu1 }
 0x270   : > { %v2159_v62 = vpack.c.bf16 %v1735_v60, %v1732_v57  ;;  %v1737_v63 = vpop.f32.mrb[83].mxu1  ;;  %v7846_v57 = vld [vmem:[%s9509_s1 + $0x304] ss:$8 sps:$4 sm:$0xff]  }
 0x272   : > { %1947 = vmatmul.mubr.bf16.gmra.mrb[188].mxu1 %v7821_v59  ;;  %7019 = vmatprep.mubr.msk.bf16.mxu0 %vm2213_vm2, %v2159_v62  ;;  %v7848_v62 = vld [vmem:[%s9509_s1 + $0x300] ss:$8 sps:$4 sm:$0xff]  }
 0x273   : > { %1954 = vmatprep.mubr.bf16.mxu1 %v7822_v61 }
 0x275   : > { %v1740_v0 = vpop.f32.mrb[84].mxu1 }
 0x276   : > { %v1742_v1 = vpop.f32.mrb[85].mxu1 }
 0x277   : > { %v1743_v3 = vpop.f32.mrb[86].mxu1 }
 0x278   : > { %v2160_v5 = vpack.c.bf16 %v1743_v3, %v1740_v0  ;;  %v1745_v6 = vpop.f32.mrb[87].mxu1  ;;  %v7849_v0 = vld [vmem:[%s9509_s1 + $0x314] ss:$8 sps:$4 sm:$0xff]   ;;  %v2745_v3 = vsel %vm2226_vm1, %v2731_v19, 0 }
 0x27a   : > { %1955 = vmatmul.mubr.bf16.gmra.mrb[192].mxu1 %v7824_v2  ;;  %7020 = vmatmul.mubr.msk.bf16.vlgmr.msra.gmra.mrb[0].mxu0 %vm2213_vm2, %v2160_v5 }
 0x27b   : > { %1962 = vmatprep.mubr.bf16.mxu1 %v7825_v4  ;;  %7028 = vmatpush3.bf16.msra.mxu0 %v2567_v7  ;;  %v2820_v4 = vld [vmem:[%s9512_s4 + $0x1c] sm:$0xf]  ;;  %v7851_v7 = vld [vmem:[%s9509_s1 + $0x310] ss:$8 sps:$4 sm:$0xff]  }
 0x27c   : > { %7632 = vmatprep.subr.msk.bf16.mxu0 %vm2226_vm1, %v2642_v8 }
 0x27d   : > { %v1748_v9 = vpop.f32.mrb[88].mxu1 }
 0x27e   : > { %v1750_v10 = vpop.f32.mrb[89].mxu1 }
 0x27f   : > { %v1751_v12 = vpop.f32.mrb[90].mxu1 }
 0x280   : > { %v2161_v15 = vpack.c.bf16 %v1751_v12, %v1748_v9  ;;  %v1753_v14 = vpop.f32.mrb[91].mxu1  ;;  %v7852_v9 = vld [vmem:[%s9509_s1 + $0x324] ss:$8 sps:$4 sm:$0xff]  }
 0x282   : > { %1963 = vmatmul.mubr.bf16.gmra.mrb[196].mxu1 %v7827_v11  ;;  %7023 = vmatprep.mubr.msk.bf16.mxu0 %vm2213_vm2, %v2161_v15  ;;  %v7854_v15 = vld [vmem:[%s9509_s1 + $0x320] ss:$8 sps:$4 sm:$0xff]  }
 0x283   : > { %1970 = vmatprep.mubr.bf16.mxu1 %v7828_v13 }
 0x285   : > { %v1756_v16 = vpop.f32.mrb[92].mxu1 }
 0x286   : > { %v1758_v18 = vpop.f32.mrb[93].mxu1 }
 0x287   : > { %v1759_v21 = vpop.f32.mrb[94].mxu1 }
 0x288   : > { %v2162_v23 = vpack.c.bf16 %v1759_v21, %v1756_v16  ;;  %v1761_v24 = vpop.f32.mrb[95].mxu1  ;;  %v7855_v16 = vld [vmem:[%s9509_s1 + $0x334] ss:$8 sps:$4 sm:$0xff]  }
 0x28a   : > { %1971 = vmatmul.mubr.bf16.gmra.mrb[200].mxu1 %v7830_v20  ;;  %7024 = vmatmul.mubr.msk.bf16.gmra.mrb[4].mxu0 %vm2213_vm2, %v2162_v23  ;;  %v7857_v23 = vld [vmem:[%s9509_s1 + $0x330] ss:$8 sps:$4 sm:$0xff]  }
 0x28b   : > { %1978 = vmatprep.mubr.bf16.mxu1 %v7831_v22 }
 0x28d   : > { %v1764_v25 = vpop.f32.mrb[96].mxu1 }
 0x28e   : > { %v1766_v26 = vpop.f32.mrb[97].mxu1 }
 0x28f   : > { %v1767_v28 = vpop.f32.mrb[98].mxu1 }
 0x290   : > { %v2163_v30 = vpack.c.bf16 %v1767_v28, %v1764_v25  ;;  %v1769_v31 = vpop.f32.mrb[99].mxu1  ;;  %v7858_v25 = vld [vmem:[%s9509_s1 + $0x344] ss:$8 sps:$4 sm:$0xff]  }
 0x292   : > { %1979 = vmatmul.mubr.bf16.gmra.mrb[204].mxu1 %v7833_v27  ;;  %7029 = vmatprep.mubr.msk.bf16.mxu0 %vm2213_vm2, %v2163_v30  ;;  %v7860_v30 = vld [vmem:[%s9509_s1 + $0x340] ss:$8 sps:$4 sm:$0xff]  }
 0x293   : > { %1986 = vmatprep.mubr.bf16.mxu1 %v7834_v29 }
 0x295   : > { %v1772_v32 = vpop.f32.mrb[100].mxu1 }
 0x296   : > { %v1774_v34 = vpop.f32.mrb[101].mxu1 }
 0x297   : > { %v1775_v33 = vpop.f32.mrb[102].mxu1 }
 0x298   : > { %v2164_v37 = vpack.c.bf16 %v1775_v33, %v1772_v32  ;;  %v1777_v38 = vpop.f32.mrb[103].mxu1  ;;  %v7861_v32 = vld [vmem:[%s9509_s1 + $0x354] ss:$8 sps:$4 sm:$0xff]   ;;  %v2834_v33 = vsel %vm2226_vm1, %v2820_v4, 0 }
 0x29a   : > { %1987 = vmatmul.mubr.bf16.gmra.mrb[208].mxu1 %v7836_v35  ;;  %7030 = vmatmul.mubr.msk.bf16.vlgmr.msra.gmra.mrb[0].mxu0 %vm2213_vm2, %v2164_v37 }
 0x29b   : > { %1994 = vmatprep.mubr.bf16.mxu1 %v7837_v36  ;;  %7038 = vmatpush3.bf16.msra.mxu0 %v2656_v39  ;;  %v2909_v36 = vld [vmem:[%s9512_s4 + $0x20] sm:$0xf]  ;;  %v7863_v39 = vld [vmem:[%s9509_s1 + $0x350] ss:$8 sps:$4 sm:$0xff]  }
 0x29c   : > { %7633 = vmatprep.subr.msk.bf16.mxu0 %vm2226_vm1, %v2731_v19 }
 0x29d   : > { %v1780_v40 = vpop.f32.mrb[104].mxu1 }
 0x29e   : > { %v1782_v41 = vpop.f32.mrb[105].mxu1 }
 0x29f   : > { %v1783_v17 = vpop.f32.mrb[106].mxu1 }
 0x2a0   : > { %v2165_v44 = vpack.c.bf16 %v1783_v17, %v1780_v40  ;;  %v1785_v45 = vpop.f32.mrb[107].mxu1  ;;  %v7864_v40 = vld [vmem:[%s9509_s1 + $0x364] ss:$8 sps:$4 sm:$0xff]  }
 0x2a2   : > { %1995 = vmatmul.mubr.bf16.gmra.mrb[212].mxu1 %v7839_v42  ;;  %7033 = vmatprep.mubr.msk.bf16.mxu0 %vm2213_vm2, %v2165_v44  ;;  %v7866_v44 = vld [vmem:[%s9509_s1 + $0x360] ss:$8 sps:$4 sm:$0xff]  }
 0x2a3   : > { %2002 = vmatprep.mubr.bf16.mxu1 %v7840_v43 }
 0x2a5   : > { %v1788_v46 = vpop.f32.mrb[108].mxu1 }
 0x2a6   : > { %v1790_v47 = vpop.f32.mrb[109].mxu1 }
 0x2a7   : > { %v1791_v49 = vpop.f32.mrb[110].mxu1 }
 0x2a8   : > { %v2166_v51 = vpack.c.bf16 %v1791_v49, %v1788_v46  ;;  %v1793_v52 = vpop.f32.mrb[111].mxu1  ;;  %v7867_v46 = vld [vmem:[%s9509_s1 + $0x374] ss:$8 sps:$4 sm:$0xff]  }
 0x2aa   : > { %2003 = vmatmul.mubr.bf16.gmra.mrb[216].mxu1 %v7842_v48  ;;  %7034 = vmatmul.mubr.msk.bf16.gmra.mrb[4].mxu0 %vm2213_vm2, %v2166_v51  ;;  %v7869_v51 = vld [vmem:[%s9509_s1 + $0x370] ss:$8 sps:$4 sm:$0xff]  }
 0x2ab   : > { %2010 = vmatprep.mubr.bf16.mxu1 %v7843_v50 }
 0x2ad   : > { %v1796_v53 = vpop.f32.mrb[112].mxu1 }
 0x2ae   : > { %v1798_v54 = vpop.f32.mrb[113].mxu1 }
 0x2af   : > { %v1799_v56 = vpop.f32.mrb[114].mxu1 }
 0x2b0   : > { %v2167_v58 = vpack.c.bf16 %v1799_v56, %v1796_v53  ;;  %v1801_v59 = vpop.f32.mrb[115].mxu1  ;;  %v7872_v53 = vld [vmem:[%s9509_s1 + $0x384] ss:$8 sps:$4 sm:$0xff]  }
 0x2b2   : > { %2011 = vmatmul.mubr.bf16.gmra.mrb[220].mxu1 %v7845_v55  ;;  %7039 = vmatprep.mubr.msk.bf16.mxu0 %vm2213_vm2, %v2167_v58  ;;  %v7870_v58 = vld [vmem:[%s9509_s1 + $0x380] ss:$8 sps:$4 sm:$0xff]  }
 0x2b3   : > { %2018 = vmatprep.mubr.bf16.mxu1 %v7846_v57 }
 0x2b5   : > { %v1804_v60 = vpop.f32.mrb[116].mxu1 }
 0x2b6   : > { %v1806_v61 = vpop.f32.mrb[117].mxu1 }
 0x2b7   : > { %v1807_v63 = vpop.f32.mrb[118].mxu1 }
 0x2b8   : > { %v2168_v1 = vpack.c.bf16 %v1807_v63, %v1804_v60  ;;  %v1809_v2 = vpop.f32.mrb[119].mxu1  ;;  %v7875_v60 = vld [vmem:[%s9509_s1 + $0x394] ss:$8 sps:$4 sm:$0xff]   ;;  %v2923_v63 = vsel %vm2226_vm1, %v2909_v36, 0 }
 0x2ba   : > { %2019 = vmatmul.mubr.bf16.gmra.mrb[224].mxu1 %v7848_v62  ;;  %7040 = vmatmul.mubr.msk.bf16.vlgmr.msra.gmra.mrb[0].mxu0 %vm2213_vm2, %v2168_v1 }
 0x2bb   : > { %2026 = vmatprep.mubr.bf16.mxu1 %v7849_v0  ;;  %7048 = vmatpush3.bf16.msra.mxu0 %v2745_v3  ;;  %v2998_v0 = vld [vmem:[%s9512_s4 + $0x24] sm:$0xf]  ;;  %v7873_v3 = vld [vmem:[%s9509_s1 + $0x390] ss:$8 sps:$4 sm:$0xff]  }
 0x2bc   : > { %7634 = vmatprep.subr.msk.bf16.mxu0 %vm2226_vm1, %v2820_v4 }
 0x2bd   : > { %v1812_v5 = vpop.f32.mrb[120].mxu1 }
 0x2be   : > { %v1814_v6 = vpop.f32.mrb[121].mxu1 }
 0x2bf   : > { %v1815_v8 = vpop.f32.mrb[122].mxu1 }
 0x2c0   : > { %v2169_v10 = vpack.c.bf16 %v1815_v8, %v1812_v5  ;;  %v1817_v11 = vpop.f32.mrb[123].mxu1  ;;  %v7878_v5 = vld [vmem:[%s9509_s1 + $0x3a4] ss:$8 sps:$4 sm:$0xff]  }
 0x2c2   : > { %2027 = vmatmul.mubr.bf16.gmra.mrb[228].mxu1 %v7851_v7  ;;  %7043 = vmatprep.mubr.msk.bf16.mxu0 %vm2213_vm2, %v2169_v10  ;;  %v7876_v10 = vld [vmem:[%s9509_s1 + $0x3a0] ss:$8 sps:$4 sm:$0xff]  }
 0x2c3   : > { %2034 = vmatprep.mubr.bf16.mxu1 %v7852_v9 }
 0x2c5   : > { %v1820_v12 = vpop.f32.mrb[124].mxu1 }
 0x2c6   : > { %v1822_v13 = vpop.f32.mrb[125].mxu1 }
 0x2c7   : > { %v1823_v14 = vpop.f32.mrb[126].mxu1 }
 0x2c8   : > { %v2170_v18 = vpack.c.bf16 %v1823_v14, %v1820_v12  ;;  %v1825_v20 = vpop.f32.mrb[127].mxu1  ;;  %v7881_v12 = vld [vmem:[%s9509_s1 + $0x3b4] ss:$8 sps:$4 sm:$0xff]  }
 0x2ca   : > { %2035 = vmatmul.mubr.bf16.gmra.mrb[232].mxu1 %v7854_v15  ;;  %7044 = vmatmul.mubr.msk.bf16.gmra.mrb[4].mxu0 %vm2213_vm2, %v2170_v18  ;;  %v7879_v18 = vld [vmem:[%s9509_s1 + $0x3b0] ss:$8 sps:$4 sm:$0xff]  }
 0x2cb   : > { %2042 = vmatprep.mubr.bf16.mxu1 %v7855_v16 }
 0x2cd   : > { %v1828_v21 = vpop.f32.mrb[128].mxu1 }
 0x2ce   : > { %v1830_v22 = vpop.f32.mrb[129].mxu1 }
 0x2cf   : > { %v1831_v24 = vpop.f32.mrb[130].mxu1 }
 0x2d0   : > { %v2171_v26 = vpack.c.bf16 %v1831_v24, %v1828_v21  ;;  %v1833_v27 = vpop.f32.mrb[131].mxu1  ;;  %v7884_v21 = vld [vmem:[%s9509_s1 + $0x3c4] ss:$8 sps:$4 sm:$0xff]  }
 0x2d2   : > { %2043 = vmatmul.mubr.bf16.gmra.mrb[236].mxu1 %v7857_v23  ;;  %7049 = vmatprep.mubr.msk.bf16.mxu0 %vm2213_vm2, %v2171_v26  ;;  %v7882_v26 = vld [vmem:[%s9509_s1 + $0x3c0] ss:$8 sps:$4 sm:$0xff]  }
 0x2d3   : > { %2050 = vmatprep.mubr.bf16.mxu1 %v7858_v25 }
 0x2d5   : > { %v1836_v28 = vpop.f32.mrb[132].mxu1 }
 0x2d6   : > { %v1838_v29 = vpop.f32.mrb[133].mxu1 }
 0x2d7   : > { %v1839_v31 = vpop.f32.mrb[134].mxu1 }
 0x2d8   : > { %v2172_v34 = vpack.c.bf16 %v1839_v31, %v1836_v28  ;;  %v1841_v35 = vpop.f32.mrb[135].mxu1  ;;  %v7887_v28 = vld [vmem:[%s9509_s1 + $0x3d4] ss:$8 sps:$4 sm:$0xff]   ;;  %v3012_v31 = vsel %vm2226_vm1, %v2998_v0, 0 }
 0x2da   : > { %2051 = vmatmul.mubr.bf16.gmra.mrb[240].mxu1 %v7860_v30  ;;  %7050 = vmatmul.mubr.msk.bf16.vlgmr.msra.gmra.mrb[0].mxu0 %vm2213_vm2, %v2172_v34 }
 0x2db   : > { %2058 = vmatprep.mubr.bf16.mxu1 %v7861_v32  ;;  %7058 = vmatpush3.bf16.msra.mxu0 %v2834_v33  ;;  %v3087_v32 = vld [vmem:[%s9512_s4 + $0x28] sm:$0xf]  ;;  %v7885_v33 = vld [vmem:[%s9509_s1 + $0x3d0] ss:$8 sps:$4 sm:$0xff]  }
 0x2dc   : > { %7635 = vmatprep.subr.msk.bf16.mxu0 %vm2226_vm1, %v2909_v36 }
 0x2dd   : > { %v1844_v37 = vpop.f32.mrb[136].mxu1 }
 0x2de   : > { %v1846_v38 = vpop.f32.mrb[137].mxu1 }
 0x2df   : > { %v1847_v19 = vpop.f32.mrb[138].mxu1 }
 0x2e0   : > { %v2173_v41 = vpack.c.bf16 %v1847_v19, %v1844_v37  ;;  %v1849_v42 = vpop.f32.mrb[139].mxu1  ;;  %v7890_v37 = vld [vmem:[%s9509_s1 + $0x3e4] ss:$8 sps:$4 sm:$0xff]  }
 0x2e2   : > { %2059 = vmatmul.mubr.bf16.gmra.mrb[244].mxu1 %v7863_v39  ;;  %7053 = vmatprep.mubr.msk.bf16.mxu0 %vm2213_vm2, %v2173_v41  ;;  %v7888_v41 = vld [vmem:[%s9509_s1 + $0x3e0] ss:$8 sps:$4 sm:$0xff]  }
 0x2e3   : > { %2066 = vmatprep.mubr.bf16.mxu1 %v7864_v40 }
 0x2e5   : > { %v1852_v17 = vpop.f32.mrb[140].mxu1 }
 0x2e6   : > { %v1854_v43 = vpop.f32.mrb[141].mxu1 }
 0x2e7   : > { %v1855_v45 = vpop.f32.mrb[142].mxu1 }
 0x2e8   : > { %v2174_v47 = vpack.c.bf16 %v1855_v45, %v1852_v17  ;;  %v1857_v48 = vpop.f32.mrb[143].mxu1  ;;  %v7893_v17 = vld [vmem:[%s9509_s1 + $0x3f4] ss:$8 sps:$4 sm:$0xff]  }
 0x2ea   : > { %2067 = vmatmul.mubr.bf16.gmra.mrb[248].mxu1 %v7866_v44  ;;  %7054 = vmatmul.mubr.msk.bf16.gmra.mrb[4].mxu0 %vm2213_vm2, %v2174_v47  ;;  %v7891_v47 = vld [vmem:[%s9509_s1 + $0x3f0] ss:$8 sps:$4 sm:$0xff]  }
 0x2eb   : > { %2074 = vmatprep.mubr.bf16.mxu1 %v7867_v46 }
 0x2ed   : > { %v1860_v49 = vpop.f32.mrb[144].mxu1 }
 0x2ee   : > { %v1862_v50 = vpop.f32.mrb[145].mxu1 }
 0x2ef   : > { %v1863_v52 = vpop.f32.mrb[146].mxu1 }
 0x2f0   : > { %v2175_v54 = vpack.c.bf16 %v1863_v52, %v1860_v49  ;;  %v1865_v55 = vpop.f32.mrb[147].mxu1 }
 0x2f2   : > { %2075 = vmatmul.mubr.bf16.gmra.mrb[252].mxu1 %v7869_v51  ;;  %7059 = vmatprep.mubr.msk.bf16.mxu0 %vm2213_vm2, %v2175_v54 }
 0x2f3   : > { %2082 = vmatprep.mubr.bf16.mxu1 %v7872_v53 }
 0x2f5   : > { %v1868_v56 = vpop.f32.mrb[148].mxu1 }
 0x2f6   : > { %v1870_v57 = vpop.f32.mrb[149].mxu1 }
 0x2f7   : > { %v1871_v59 = vpop.f32.mrb[150].mxu1  ;;  %v3176_v57 = vld [vmem:[%s9512_s4 + $0x2c] sm:$0xf] }
 0x2f8   : > { %v2176_v61 = vpack.c.bf16 %v1871_v59, %v1868_v56  ;;  %v1873_v62 = vpop.f32.mrb[151].mxu1  ;;  %v3101_v56 = vsel %vm2226_vm1, %v3087_v32, 0 }
 0x2fa   : > { %2083 = vmatmul.mubr.bf16.gmra.mrb[0].mxu1 %v7870_v58  ;;  %7060 = vmatmul.mubr.msk.bf16.vlgmr.msra.gmra.mrb[0].mxu0 %vm2213_vm2, %v2176_v61 }
 0x2fb   : > { %2090 = vmatprep.mubr.bf16.mxu1 %v7875_v60  ;;  %7068 = vmatpush3.bf16.msra.mxu0 %v2923_v63 }
 0x2fc   : > { %7636 = vmatprep.subr.msk.bf16.mxu0 %vm2226_vm1, %v2998_v0 }
 0x2fd   : > { %v1876_v1 = vpop.f32.mrb[152].mxu1 }
 0x2fe   : > { %v1878_v2 = vpop.f32.mrb[153].mxu1 }
 0x2ff   : > { %v1879_v4 = vpop.f32.mrb[154].mxu1 }
 0x300   : > { %v2177_v6 = vpack.c.bf16 %v1879_v4, %v1876_v1  ;;  %v1881_v7 = vpop.f32.mrb[155].mxu1 }
 0x302   : > { %2091 = vmatmul.mubr.bf16.gmra.mrb[4].mxu1 %v7873_v3  ;;  %7063 = vmatprep.mubr.msk.bf16.mxu0 %vm2213_vm2, %v2177_v6 }
 0x303   : > { %2098 = vmatprep.mubr.bf16.mxu1 %v7878_v5 }
 0x305   : > { %v1884_v8 = vpop.f32.mrb[156].mxu1 }
 0x306   : > { %v1886_v9 = vpop.f32.mrb[157].mxu1 }
 0x307   : > { %v1887_v11 = vpop.f32.mrb[158].mxu1 }
 0x308   : > { %v2178_v13 = vpack.c.bf16 %v1887_v11, %v1884_v8  ;;  %v1889_v15 = vpop.f32.mrb[159].mxu1 }
 0x309   : > { %v3190_v15 = vsel %vm2226_vm1, %v3176_v57, 0 }
 0x30a   : > { %2099 = vmatmul.mubr.bf16.gmra.mrb[8].mxu1 %v7876_v10  ;;  %7064 = vmatmul.mubr.msk.bf16.gmra.mrb[4].mxu0 %vm2213_vm2, %v2178_v13 }
 0x30b   : > { %2106 = vmatprep.mubr.bf16.mxu1 %v7881_v12 }
 0x30d   : > { %v1892_v14 = vpop.f32.mrb[160].mxu1 }
 0x30e   : > { %v1894_v16 = vpop.f32.mrb[161].mxu1 }
 0x30f   : > { %v1895_v20 = vpop.f32.mrb[162].mxu1 }
 0x310   : > { %v2179_v22 = vpack.c.bf16 %v1895_v20, %v1892_v14  ;;  %v1897_v23 = vpop.f32.mrb[163].mxu1  ;;  %v3265_v14 = vld [vmem:[%s9512_s4 + $0x30] sm:$0xf] }
 0x312   : > { %2107 = vmatmul.mubr.bf16.gmra.mrb[12].mxu1 %v7879_v18  ;;  %7069 = vmatprep.mubr.msk.bf16.mxu0 %vm2213_vm2, %v2179_v22 }
 0x313   : > { %2114 = vmatprep.mubr.bf16.mxu1 %v7884_v21 }
 0x315   : > { %v1900_v24 = vpop.f32.mrb[164].mxu1 }
 0x316   : > { %v1902_v25 = vpop.f32.mrb[165].mxu1 }
 0x317   : > { %v1903_v27 = vpop.f32.mrb[166].mxu1 }
 0x318   : > { %v2180_v29 = vpack.c.bf16 %v1903_v27, %v1900_v24  ;;  %v1905_v30 = vpop.f32.mrb[167].mxu1 }
 0x31a   : > { %2115 = vmatmul.mubr.bf16.gmra.mrb[16].mxu1 %v7882_v26  ;;  %7070 = vmatmul.mubr.msk.bf16.vlgmr.msra.gmra.mrb[0].mxu0 %vm2213_vm2, %v2180_v29 }
 0x31b   : > { %2122 = vmatprep.mubr.bf16.mxu1 %v7887_v28  ;;  %7078 = vmatpush3.bf16.msra.mxu0 %v3012_v31 }
 0x31c   : > { %7637 = vmatprep.subr.msk.bf16.mxu0 %vm2226_vm1, %v3087_v32 }
 0x31d   : > { %v1908_v34 = vpop.f32.mrb[168].mxu1 }
 0x31e   : > { %v1910_v35 = vpop.f32.mrb[169].mxu1 }
 0x31f   : > { %v1911_v36 = vpop.f32.mrb[170].mxu1 }
 0x320   : > { %v2181_v38 = vpack.c.bf16 %v1911_v36, %v1908_v34  ;;  %v1913_v39 = vpop.f32.mrb[171].mxu1 }
 0x321   : > { %v3354_v39 = vld [vmem:[%s9512_s4 + $0x34] sm:$0xf] }
 0x322   : > { %2123 = vmatmul.mubr.bf16.gmra.mrb[20].mxu1 %v7885_v33  ;;  %7073 = vmatprep.mubr.msk.bf16.mxu0 %vm2213_vm2, %v2181_v38  ;;  %v3279_v38 = vsel %vm2226_vm1, %v3265_v14, 0 }
 0x323   : > { %2130 = vmatprep.mubr.bf16.mxu1 %v7890_v37 }
 0x325   : > { %v1916_v19 = vpop.f32.mrb[172].mxu1 }
 0x326   : > { %v1918_v40 = vpop.f32.mrb[173].mxu1 }
 0x327   : > { %v1919_v42 = vpop.f32.mrb[174].mxu1 }
 0x328   : > { %v2182_v43 = vpack.c.bf16 %v1919_v42, %v1916_v19  ;;  %v1921_v44 = vpop.f32.mrb[175].mxu1 }
 0x32a   : > { %2131 = vmatmul.mubr.bf16.gmra.mrb[24].mxu1 %v7888_v41  ;;  %7074 = vmatmul.mubr.msk.bf16.gmra.mrb[4].mxu0 %vm2213_vm2, %v2182_v43 }
 0x32b   : > { %2138 = vmatprep.mubr.bf16.mxu1 %v7893_v17 }
 0x32d   : > { %v1924_v45 = vpop.f32.mrb[176].mxu1 }
 0x32e   : > { %v1926_v46 = vpop.f32.mrb[177].mxu1 }
 0x32f   : > { %v1927_v48 = vpop.f32.mrb[178].mxu1 }
 0x330   : > { %v2183_v49 = vpack.c.bf16 %v1927_v48, %v1924_v45  ;;  %v1929_v50 = vpop.f32.mrb[179].mxu1 }
 0x332   : > { %2139 = vmatmul.mubr.bf16.gmra.mrb[28].mxu1 %v7891_v47  ;;  %7079 = vmatprep.mubr.msk.bf16.mxu0 %vm2213_vm2, %v2183_v49 }
 0x335   : > { %v1932_v51 = vpop.f32.mrb[180].mxu1 }
 0x336   : > { %v1934_v52 = vpop.f32.mrb[181].mxu1 }
 0x337   : > { %v1935_v53 = vpop.f32.mrb[182].mxu1 }
 0x338   : > { %v2184_v54 = vpack.c.bf16 %v1935_v53, %v1932_v51  ;;  %v1937_v55 = vpop.f32.mrb[183].mxu1 }
 0x33a   : > { %7080 = vmatmul.mubr.msk.bf16.vlgmr.msra.gmra.mrb[0].mxu0 %vm2213_vm2, %v2184_v54 }
 0x33b   : > { %7088 = vmatpush3.bf16.msra.mxu0 %v3101_v56 }
 0x33c   : > { %7638 = vmatprep.subr.msk.bf16.mxu0 %vm2226_vm1, %v3176_v57 }
 0x33d   : > { %v1940_v58 = vpop.f32.mrb[184].mxu1 }
 0x33e   : > { %v1942_v59 = vpop.f32.mrb[185].mxu1 }
 0x33f   : > { %v1943_v60 = vpop.f32.mrb[186].mxu1  ;;  %v3443_v59 = vld [vmem:[%s9512_s4 + $0x38] sm:$0xf] }
 0x340   : > { %v2185_v61 = vpack.c.bf16 %v1943_v60, %v1940_v58  ;;  %v1945_v62 = vpop.f32.mrb[187].mxu1  ;;  %v3368_v58 = vsel %vm2226_vm1, %v3354_v39, 0 }
 0x342   : > { %7083 = vmatprep.mubr.msk.bf16.mxu0 %vm2213_vm2, %v2185_v61 }
 0x345   : > { %v1948_v63 = vpop.f32.mrb[188].mxu1 }
 0x346   : > { %v1950_v0 = vpop.f32.mrb[189].mxu1 }
 0x347   : > { %v1951_v1 = vpop.f32.mrb[190].mxu1 }
 0x348   : > { %v2186_v2 = vpack.c.bf16 %v1951_v1, %v1948_v63  ;;  %v1953_v3 = vpop.f32.mrb[191].mxu1 }
 0x34a   : > { %7084 = vmatmul.mubr.msk.bf16.gmra.mrb[4].mxu0 %vm2213_vm2, %v2186_v2 }
 0x34d   : > { %v1956_v4 = vpop.f32.mrb[192].mxu1 }
 0x34e   : > { %v1958_v5 = vpop.f32.mrb[193].mxu1 }
 0x34f   : > { %v1959_v6 = vpop.f32.mrb[194].mxu1 }
 0x350   : > { %v2187_v7 = vpack.c.bf16 %v1959_v6, %v1956_v4  ;;  %v1961_v8 = vpop.f32.mrb[195].mxu1 }
 0x352   : > { %7089 = vmatprep.mubr.msk.bf16.mxu0 %vm2213_vm2, %v2187_v7 }
 0x355   : > { %v1964_v9 = vpop.f32.mrb[196].mxu1 }
 0x356   : > { %v1966_v10 = vpop.f32.mrb[197].mxu1 }
 0x357   : > { %v1967_v11 = vpop.f32.mrb[198].mxu1 }
 0x358   : > { %v2188_v12 = vpack.c.bf16 %v1967_v11, %v1964_v9  ;;  %v1969_v13 = vpop.f32.mrb[199].mxu1 }
 0x35a   : > { %7090 = vmatmul.mubr.msk.bf16.vlgmr.msra.gmra.mrb[0].mxu0 %vm2213_vm2, %v2188_v12 }
 0x35b   : > { %7098 = vmatpush3.bf16.msra.mxu0 %v3190_v15 }
 0x35c   : > { %7639 = vmatprep.subr.msk.bf16.mxu0 %vm2226_vm1, %v3265_v14 }
 0x35d   : > { %v1972_v16 = vpop.f32.mrb[200].mxu1 }
 0x35e   : > { %v1974_v18 = vpop.f32.mrb[201].mxu1 }
 0x35f   : > { %v1975_v20 = vpop.f32.mrb[202].mxu1  ;;  %v3532_v18 = vld [vmem:[%s9512_s4 + $0x3c] sm:$0xf] }
 0x360   : > { %v2189_v21 = vpack.c.bf16 %v1975_v20, %v1972_v16  ;;  %v1977_v22 = vpop.f32.mrb[203].mxu1  ;;  %v3457_v16 = vsel %vm2226_vm1, %v3443_v59, 0 }
 0x362   : > { %7093 = vmatprep.mubr.msk.bf16.mxu0 %vm2213_vm2, %v2189_v21 }
 0x365   : > { %v1980_v23 = vpop.f32.mrb[204].mxu1 }
 0x366   : > { %v1982_v24 = vpop.f32.mrb[205].mxu1 }
 0x367   : > { %v1983_v25 = vpop.f32.mrb[206].mxu1 }
 0x368   : > { %v2190_v26 = vpack.c.bf16 %v1983_v25, %v1980_v23  ;;  %v1985_v27 = vpop.f32.mrb[207].mxu1 }
 0x36a   : > { %7094 = vmatmul.mubr.msk.bf16.gmra.mrb[4].mxu0 %vm2213_vm2, %v2190_v26 }
 0x36d   : > { %v1988_v28 = vpop.f32.mrb[208].mxu1 }
 0x36e   : > { %v1990_v29 = vpop.f32.mrb[209].mxu1 }
 0x36f   : > { %v1991_v30 = vpop.f32.mrb[210].mxu1 }
 0x370   : > { %v2191_v31 = vpack.c.bf16 %v1991_v30, %v1988_v28  ;;  %v1993_v32 = vpop.f32.mrb[211].mxu1 }
 0x372   : > { %7099 = vmatprep.mubr.msk.bf16.mxu0 %vm2213_vm2, %v2191_v31 }
 0x375   : > { %v1996_v34 = vpop.f32.mrb[212].mxu1 }
 0x376   : > { %v1998_v35 = vpop.f32.mrb[213].mxu1 }
 0x377   : > { %v1999_v33 = vpop.f32.mrb[214].mxu1 }
 0x378   : > { %v2192_v36 = vpack.c.bf16 %v1999_v33, %v1996_v34  ;;  %v2001_v37 = vpop.f32.mrb[215].mxu1 }
 0x37a   : > { %7100 = vmatmul.mubr.msk.bf16.vlgmr.msra.gmra.mrb[0].mxu0 %vm2213_vm2, %v2192_v36 }
 0x37b   : > { %7108 = vmatpush3.bf16.msra.mxu0 %v3279_v38 }
 0x37c   : > { %7640 = vmatprep.subr.msk.bf16.mxu0 %vm2226_vm1, %v3354_v39 }
 0x37d   : > { %v2004_v19 = vpop.f32.mrb[216].mxu1 }
 0x37e   : > { %v2006_v40 = vpop.f32.mrb[217].mxu1 }
 0x37f   : > { %v2007_v41 = vpop.f32.mrb[218].mxu1 }
 0x380   : > { %v2193_v42 = vpack.c.bf16 %v2007_v41, %v2004_v19  ;;  %v2009_v17 = vpop.f32.mrb[219].mxu1  ;;  %v3546_v19 = vsel %vm2226_vm1, %v3532_v18, 0 }
 0x382   : > { %7103 = vmatprep.mubr.msk.bf16.mxu0 %vm2213_vm2, %v2193_v42 }
 0x385   : > { %v2012_v43 = vpop.f32.mrb[220].mxu1 }
 0x386   : > { %v2014_v44 = vpop.f32.mrb[221].mxu1 }
 0x387   : > { %v2015_v45 = vpop.f32.mrb[222].mxu1 }
 0x388   : > { %v2194_v46 = vpack.c.bf16 %v2015_v45, %v2012_v43  ;;  %v2017_v47 = vpop.f32.mrb[223].mxu1 }
 0x38a   : > { %7104 = vmatmul.mubr.msk.bf16.gmra.mrb[4].mxu0 %vm2213_vm2, %v2194_v46 }
 0x38d   : > { %v2020_v48 = vpop.f32.mrb[224].mxu1 }
 0x38e   : > { %v2022_v49 = vpop.f32.mrb[225].mxu1 }
 0x38f   : > { %v2023_v50 = vpop.f32.mrb[226].mxu1 }
 0x390   : > { %v2195_v51 = vpack.c.bf16 %v2023_v50, %v2020_v48  ;;  %v2025_v52 = vpop.f32.mrb[227].mxu1 }
 0x392   : > { %7109 = vmatprep.mubr.msk.bf16.mxu0 %vm2213_vm2, %v2195_v51 }
 0x395   : > { %v2028_v53 = vpop.f32.mrb[228].mxu1 }
 0x396   : > { %v2030_v54 = vpop.f32.mrb[229].mxu1 }
 0x397   : > { %v2031_v55 = vpop.f32.mrb[230].mxu1 }
 0x398   : > { %v2196_v56 = vpack.c.bf16 %v2031_v55, %v2028_v53  ;;  %v2033_v57 = vpop.f32.mrb[231].mxu1 }
 0x39a   : > { %7110 = vmatmul.mubr.msk.bf16.vlgmr.msra.gmra.mrb[0].mxu0 %vm2213_vm2, %v2196_v56 }
 0x39b   : > { %7118 = vmatpush3.bf16.msra.mxu0 %v3368_v58 }
 0x39c   : > { %7641 = vmatprep.subr.msk.bf16.mxu0 %vm2226_vm1, %v3443_v59 }
 0x39d   : > { %v2036_v60 = vpop.f32.mrb[232].mxu1 }
 0x39e   : > { %v2038_v61 = vpop.f32.mrb[233].mxu1 }
 0x39f   : > { %v2039_v62 = vpop.f32.mrb[234].mxu1 }
 0x3a0   : > { %v2197_v63 = vpack.c.bf16 %v2039_v62, %v2036_v60  ;;  %v2041_v0 = vpop.f32.mrb[235].mxu1 }
 0x3a2   : > { %7113 = vmatprep.mubr.msk.bf16.mxu0 %vm2213_vm2, %v2197_v63 }
 0x3a5   : > { %v2044_v1 = vpop.f32.mrb[236].mxu1 }
 0x3a6   : > { %v2046_v2 = vpop.f32.mrb[237].mxu1 }
 0x3a7   : > { %v2047_v3 = vpop.f32.mrb[238].mxu1 }
 0x3a8   : > { %v2198_v4 = vpack.c.bf16 %v2047_v3, %v2044_v1  ;;  %v2049_v5 = vpop.f32.mrb[239].mxu1 }
 0x3a9   : > { %v7894_v5 = vld [vmem:[%s9510_s2] sm:$0xff]  }
 0x3aa   : > { %7114 = vmatmul.mubr.msk.bf16.gmra.mrb[4].mxu0 %vm2213_vm2, %v2198_v4 }
 0x3ad   : > { %v2052_v6 = vpop.f32.mrb[240].mxu1 }
 0x3ae   : > { %v2054_v7 = vpop.f32.mrb[241].mxu1 }
 0x3af   : > { %v2055_v8 = vpop.f32.mrb[242].mxu1  ;;  %v8071_v7 = vmov 0.0  }
 0x3b0   : > { %v2199_v9 = vpack.c.bf16 %v2055_v8, %v2052_v6  ;;  %v2057_v10 = vpop.f32.mrb[243].mxu1  ;;  %v7911_v6 = vld [vmem:[%s9514_s6 + $0x100] sm:$0xff]   ;;  %7411 = vmatprep.subr.bf16.mxu1 %v8071_v7  ;;  %7419 = vmatprep.mubr.msk.bf16.mxu1 %vm8072_vm12, %v8071_v7 }
 0x3b1   : > { %7412 = vmatpush3.bf16.msra.mxu1 %v7911_v6  ;;  %v6542_v8 = vld [vmem:[%s9516_s8] ss:$0 sm:$0xff]  ;;  %v7914_v6 = vld [vmem:[%s9513_s5 + $0x8] sm:$0xff]  }
 0x3b2   : > { %7119 = vmatprep.mubr.msk.bf16.mxu0 %vm2213_vm2, %v2199_v9  ;;  %7413 = vmatprep.subr.bf16.mxu1 %v8071_v7 }
 0x3b5   : > { %v2060_v11 = vpop.f32.mrb[244].mxu1 }
 0x3b6   : > { %v2062_v12 = vpop.f32.mrb[245].mxu1 }
 0x3b7   : > { %v2063_v13 = vpop.f32.mrb[246].mxu1 }
 0x3b8   : > { %v2200_v15 = vpack.c.bf16 %v2063_v13, %v2060_v11  ;;  %v2065_v14 = vpop.f32.mrb[247].mxu1 }
 0x3ba   : > { %7120 = vmatmul.mubr.msk.bf16.vlgmr.msra.gmra.mrb[0].mxu0 %vm2213_vm2, %v2200_v15 }
 0x3bb   : > { %7128 = vmatpush3.bf16.msra.mxu0 %v3457_v16 }
 0x3bc   : > { %7642 = vmatprep.subr.msk.bf16.mxu0 %vm2226_vm1, %v3532_v18 }
 0x3bd   : > { %v2068_v20 = vpop.f32.mrb[248].mxu1 }
 0x3be   : > { %v2070_v21 = vpop.f32.mrb[249].mxu1 }
 0x3bf   : > { %v2071_v22 = vpop.f32.mrb[250].mxu1 }
 0x3c0   : > { %v2201_v23 = vpack.c.bf16 %v2071_v22, %v2068_v20  ;;  %v2073_v24 = vpop.f32.mrb[251].mxu1 }
 0x3c2   : > { %7123 = vmatprep.mubr.msk.bf16.mxu0 %vm2213_vm2, %v2201_v23 }
 0x3c5   : > { %v2076_v25 = vpop.f32.mrb[252].mxu1 }
 0x3c6   : > { %v2078_v26 = vpop.f32.mrb[253].mxu1 }
 0x3c7   : > { %v2079_v27 = vpop.f32.mrb[254].mxu1 }
 0x3c8   : > { %v2202_v28 = vpack.c.bf16 %v2079_v27, %v2076_v25  ;;  %v2081_v29 = vpop.f32.mrb[255].mxu1 }
 0x3ca   : > { %7124 = vmatmul.mubr.msk.bf16.gmra.mrb[4].mxu0 %vm2213_vm2, %v2202_v28 }
 0x3cd   : > { %v2084_v30 = vpop.f32.mrb[0].mxu1 }
 0x3ce   : > { %v2086_v31 = vpop.f32.mrb[1].mxu1 }
 0x3cf   : > { %v2087_v32 = vpop.f32.mrb[2].mxu1 }
 0x3d0   : > { %v2203_v34 = vpack.c.bf16 %v2087_v32, %v2084_v30  ;;  %v2089_v35 = vpop.f32.mrb[3].mxu1 }
 0x3d2   : > { %7129 = vmatprep.mubr.msk.bf16.mxu0 %vm2213_vm2, %v2203_v34 }
 0x3d5   : > { %v2092_v33 = vpop.f32.mrb[4].mxu1 }
 0x3d6   : > { %v2094_v36 = vpop.f32.mrb[5].mxu1 }
 0x3d7   : > { %v2095_v37 = vpop.f32.mrb[6].mxu1 }
 0x3d8   : > { %v2204_v38 = vpack.c.bf16 %v2095_v37, %v2092_v33  ;;  %v2097_v39 = vpop.f32.mrb[7].mxu1 }
 0x3da   : > { %7130 = vmatmul.mubr.msk.bf16.vlgmr.msra.gmra.mrb[0].mxu0 %vm2213_vm2, %v2204_v38 }
 0x3db   : > { %7138 = vmatpush3.bf16.msra.mxu0 %v3546_v19 }
 0x3dd   : > { %v2100_v40 = vpop.f32.mrb[8].mxu1 }
 0x3de   : > { %v2102_v41 = vpop.f32.mrb[9].mxu1 }
 0x3df   : > { %v2103_v42 = vpop.f32.mrb[10].mxu1 }
 0x3e0   : > { %v2205_v17 = vpack.c.bf16 %v2103_v42, %v2100_v40  ;;  %v2105_v43 = vpop.f32.mrb[11].mxu1 }
 0x3e2   : > { %7133 = vmatprep.mubr.msk.bf16.mxu0 %vm2213_vm2, %v2205_v17 }
 0x3e5   : > { %v2108_v44 = vpop.f32.mrb[12].mxu1 }
 0x3e6   : > { %v2110_v45 = vpop.f32.mrb[13].mxu1 }
 0x3e7   : > { %v2111_v46 = vpop.f32.mrb[14].mxu1  ;;  %v7895_v45 = vld [vmem:[%s9510_s2 + $0x8] sm:$0xff]  }
 0x3e8   : > { %v2206_v47 = vpack.c.bf16 %v2111_v46, %v2108_v44  ;;  %v2113_v48 = vpop.f32.mrb[15].mxu1  ;;  %v7896_v46 = vld [vmem:[%s9510_s2 + $0x10] sm:$0xff]  }
 0x3e9   : > { %v7912_v48 = vld [vmem:[%s9513_s5 + $0x18] sm:$0xff]  }
 0x3ea   : > { %7134 = vmatmul.mubr.msk.bf16.gmra.mrb[4].mxu0 %vm2213_vm2, %v2206_v47  ;;  %v7910_v47 = vld [vmem:[%s9513_s5 + $0x10] sm:$0xff]  }
 0x3ed   : > { %v2116_v49 = vpop.f32.mrb[16].mxu1 }
 0x3ee   : > { %v2118_v50 = vpop.f32.mrb[17].mxu1 }
 0x3ef   : > { %v2119_v51 = vpop.f32.mrb[18].mxu1  ;;  %v7898_v50 = vld [vmem:[%s9510_s2 + $0x20] sm:$0xff]  }
 0x3f0   : > { %v2207_v52 = vpack.c.bf16 %v2119_v51, %v2116_v49  ;;  %v2121_v53 = vpop.f32.mrb[19].mxu1  ;;  %v7897_v49 = vld [vmem:[%s9510_s2 + $0x18] sm:$0xff]   ;;  %v7899_v51 = vld [vmem:[%s9510_s2 + $0x28] sm:$0xff]  }
 0x3f1   : > { %v7901_v53 = vld [vmem:[%s9510_s2 + $0x38] sm:$0xff]  }
 0x3f2   : > { %7139 = vmatprep.mubr.msk.bf16.mxu0 %vm2213_vm2, %v2207_v52  ;;  %v7900_v52 = vld [vmem:[%s9510_s2 + $0x30] sm:$0xff]  }
 0x3f5   : > { %v2124_v54 = vpop.f32.mrb[20].mxu1 }
 0x3f6   : > { %v2126_v55 = vpop.f32.mrb[21].mxu1 }
 0x3f7   : > { %v2127_v56 = vpop.f32.mrb[22].mxu1  ;;  %v7903_v55 = vld [vmem:[%s9510_s2 + $0x48] sm:$0xff]  }
 0x3f8   : > { %v2208_v57 = vpack.c.bf16 %v2127_v56, %v2124_v54  ;;  %v2129_v58 = vpop.f32.mrb[23].mxu1  ;;  %v7902_v54 = vld [vmem:[%s9510_s2 + $0x40] sm:$0xff]   ;;  %v7904_v56 = vld [vmem:[%s9510_s2 + $0x50] sm:$0xff]  }
 0x3f9   : > { %v7906_v58 = vld [vmem:[%s9510_s2 + $0x60] sm:$0xff]  }
 0x3fa   : > { %7140 = vmatmul.mubr.msk.bf16.vlgmr.msra.gmra.mrb[0].mxu0 %vm2213_vm2, %v2208_v57  ;;  %v7905_v57 = vld [vmem:[%s9510_s2 + $0x58] sm:$0xff]  }
 0x3fd   : > { %v2132_v59 = vpop.f32.mrb[24].mxu1 }
 0x3fe   : > { %v2134_v60 = vpop.f32.mrb[25].mxu1 }
 0x3ff   : > { %v2135_v61 = vpop.f32.mrb[26].mxu1  ;;  %v7908_v60 = vld [vmem:[%s9510_s2 + $0x70] sm:$0xff]  }
 0x400   : > { %v2209_v62 = vpack.c.bf16 %v2135_v61, %v2132_v59  ;;  %v2137_v63 = vpop.f32.mrb[27].mxu1  ;;  %v7907_v59 = vld [vmem:[%s9510_s2 + $0x68] sm:$0xff]   ;;  %v7909_v61 = vld [vmem:[%s9510_s2 + $0x78] sm:$0xff]  }
 0x402   : > { %7143 = vmatprep.mubr.msk.bf16.mxu0 %vm2213_vm2, %v2209_v62  ;;  %v7935_v62 = vld [vmem:[%s9514_s6 + $0x108] sm:$0xff]  }
 0x403   : > { %7414 = vmatpush3.bf16.msra.mxu1 %v7935_v62 }
 0x404   : > { %7415 = vmatprep.subr.bf16.mxu1 %v8071_v7 }
 0x405   : > { %v2140_v0 = vpop.f32.mrb[28].mxu1 }
 0x406   : > { %v2142_v1 = vpop.f32.mrb[29].mxu1 }
 0x407   : > { %v2143_v2 = vpop.f32.mrb[30].mxu1 }
 0x408   : > { %v2210_v3 = vpack.c.bf16 %v2143_v2, %v2140_v0  ;;  %v2145_v4 = vpop.f32.mrb[31].mxu1  ;;  %v7913_v2 = vld [vmem:[%s9513_s5] sm:$0xff]  }
 0x40a   : > { %7144 = vmatmul.mubr.msk.bf16.gmra.mrb[4].mxu0 %vm2213_vm2, %v2210_v3 }
 0x40b   : > { %7155 = vmatprep.mubr.msk.bf16.mxu0 %vm3776_vm3, %v7894_v5 }
 0x4cd   : > { %v7141_v9 = vpop.f32.mrb[0].mxu0 }
 0x4ce   : > { %v3630_v10 = vadd.f32 %v7141_v9, %v6542_v8  ;;  %v3582_v11 = vpop.f32.mrb[1].mxu0 }
 0x4cf   : > { %v3628_v12 = vadd.f32 %v6542_v8, %v3582_v11  ;;  %v7142_v13 = vpop.f32.mrb[2].mxu0 }
 0x4d0   : > { %v3646_v15 = vmul.f32 0.2, %v3630_v10  ;;  %v3631_v14 = vadd.f32 %v7142_v13, %v6542_v8  ;;  %v3585_v16 = vpop.f32.mrb[3].mxu0  ;;  %vm3638_vm4 = vcmp.ge.f32.partialorder %v3630_v10, 0.0 }
 0x4d1   : > { %v3644_v18 = vmul.f32 0.2, %v3628_v12  ;;  %v3629_v20 = vadd.f32 %v6542_v8, %v3585_v16  ;;  %vm3636_vm5 = vcmp.ge.f32.partialorder %v3628_v12, 0.0 }
 0x4d2   : > { %vm3639_vm6 = vcmp.ge.f32.partialorder %v3631_v14, 0.0  ;;  %v3647_v21 = vmul.f32 0.2, %v3631_v14  ;;  %v3654_v23 = vsel %vm3638_vm4, %v3630_v10, %v3646_v15  ;;  %v7915_v10 = vld [vmem:[%s9513_s5 + $0x20] sm:$0xff]  }
 0x4d3   : > { %vm3637_vm7 = vcmp.ge.f32.partialorder %v3629_v20, 0.0  ;;  %v3645_v22 = vmul.f32 0.2, %v3629_v20  ;;  %v3652_v25 = vsel %vm3636_vm5, %v3628_v12, %v3644_v18 }
 0x4d4   : > { %v3655_v24 = vsel %vm3639_vm6, %v3631_v14, %v3647_v21  ;;  %v7916_v14 = vld [vmem:[%s9513_s5 + $0x28] sm:$0xff]  }
 0x4d5   : > { %v3653_v26 = vsel %vm3637_vm7, %v3629_v20, %v3645_v22  ;;  %v3661_v27 = vpack.c.bf16 %v3655_v24, %v3654_v23  ;;  %v7917_v20 = vld [vmem:[%s9513_s5 + $0x30] sm:$0xff]  }
 0x4d6   : > { %v3660_v28 = vpack.c.bf16 %v3653_v26, %v3652_v25  ;;  %v7918_v25 = vld [vmem:[%s9513_s5 + $0x38] sm:$0xff]  }
 0x4d8   : > { %7147 = vmatprep.subr.bf16.mxu0 %v3660_v28 }
 0x4d9   : > { %7148 = vmatpush3.bf16.msra.mxu0 %v3660_v28  ;;  %v7919_v28 = vld [vmem:[%s9513_s5 + $0x40] sm:$0xff]  }
 0x4da   : > { %7149 = vmatprep.subr.bf16.mxu0 %v3661_v27 }
 0x4dd   : > { %v7145_v29 = vpop.f32.mrb[4].mxu0  ;;  %7150 = vmatpush3.bf16.msra.mxu0 %v3661_v27 }
 0x4de   : > { %v3634_v30 = vadd.f32 %v7145_v29, %v6542_v8  ;;  %v3598_v31 = vpop.f32.mrb[5].mxu0 }
 0x4df   : > { %v3632_v32 = vadd.f32 %v6542_v8, %v3598_v31  ;;  %v7146_v34 = vpop.f32.mrb[6].mxu0 }
 0x4e0   : > { %v3650_v35 = vmul.f32 0.2, %v3634_v30  ;;  %v3635_v33 = vadd.f32 %v7146_v34, %v6542_v8  ;;  %v3601_v36 = vpop.f32.mrb[7].mxu0  ;;  %vm3642_vm8 = vcmp.ge.f32.partialorder %v3634_v30, 0.0  ;;  %v7920_v34 = vld [vmem:[%s9513_s5 + $0x48] sm:$0xff]  }
 0x4e1   : > { %v3648_v37 = vmul.f32 0.2, %v3632_v32  ;;  %v3633_v38 = vadd.f32 %v6542_v8, %v3601_v36  ;;  %vm3640_vm9 = vcmp.ge.f32.partialorder %v3632_v32, 0.0  ;;  %v7921_v36 = vld [vmem:[%s9513_s5 + $0x50] sm:$0xff]  }
 0x4e2   : > { %vm3643_vm10 = vcmp.ge.f32.partialorder %v3635_v33, 0.0  ;;  %v3651_v39 = vmul.f32 0.2, %v3635_v33  ;;  %v3658_v40 = vsel %vm3642_vm8, %v3634_v30, %v3650_v35 }
 0x4e3   : > { %vm3641_vm11 = vcmp.ge.f32.partialorder %v3633_v38, 0.0  ;;  %v3649_v19 = vmul.f32 0.2, %v3633_v38  ;;  %v3656_v42 = vsel %vm3640_vm9, %v3632_v32, %v3648_v37 }
 0x4e4   : > { %v3659_v41 = vsel %vm3643_vm10, %v3635_v33, %v3651_v39 }
 0x4e5   : > { %v3657_v17 = vsel %vm3641_vm11, %v3633_v38, %v3649_v19  ;;  %v3663_v43 = vpack.c.bf16 %v3659_v41, %v3658_v40  ;;  %v7922_v40 = vld [vmem:[%s9513_s5 + $0x58] sm:$0xff]  }
 0x4e6   : > { %v3662_v44 = vpack.c.bf16 %v3657_v17, %v3656_v42  ;;  %v7923_v17 = vld [vmem:[%s9513_s5 + $0x60] sm:$0xff]  }
 0x4e8   : > { %7151 = vmatprep.subr.bf16.mxu0 %v3662_v44 }
 0x4e9   : > { %7152 = vmatpush3.bf16.msra.mxu0 %v3662_v44 }
 0x4ea   : > { %7153 = vmatprep.subr.bf16.mxu0 %v3663_v43 }
 0x4ed   : > { %7154 = vmatpush3.bf16.msra.mxu0 %v3663_v43 }
 0x4ee   : > { %7187 = vmatprep.subr.bf16.mxu0 %v8071_v7 }
 0x4f0   : > { %7156 = vmatmul.mubr.msk.bf16.vlgmr.msra.gmra.mrb[8].mxu0 %vm3776_vm3, %v7895_v45 }
 0x4f1   : > { %7159 = vmatprep.mubr.msk.bf16.mxu0 %vm3776_vm3, %v7896_v46  ;;  %7188 = vmatpush3.bf16.msra.mxu0 %v7910_v47  ;;  %v7924_v47 = vld [vmem:[%s9513_s5 + $0x68] sm:$0xff]  }
 0x4f2   : > { %7189 = vmatprep.subr.bf16.mxu0 %v8071_v7 }
 0x4f5   : > { %7190 = vmatpush3.bf16.msra.mxu0 %v7912_v48 }
 0x4f6   : > { %7195 = vmatprep.subr.bf16.mxu0 %v8071_v7 }
 0x4f8   : > { %7160 = vmatmul.mubr.msk.bf16.gmra.mrb[12].mxu0 %vm3776_vm3, %v7897_v49 }
 0x4f9   : > { %7163 = vmatprep.mubr.msk.bf16.mxu0 %vm3776_vm3, %v7898_v50  ;;  %v7925_v50 = vld [vmem:[%s9513_s5 + $0x70] sm:$0xff]  }
 0x500   : > { %7164 = vmatmul.mubr.msk.bf16.gmra.mrb[16].mxu0 %vm3776_vm3, %v7899_v51 }
 0x501   : > { %7167 = vmatprep.mubr.msk.bf16.mxu0 %vm3776_vm3, %v7900_v52 }
 0x508   : > { %7168 = vmatmul.mubr.msk.bf16.gmra.mrb[20].mxu0 %vm3776_vm3, %v7901_v53 }
 0x509   : > { %7171 = vmatprep.mubr.msk.bf16.mxu0 %vm3776_vm3, %v7902_v54 }
 0x510   : > { %7172 = vmatmul.mubr.msk.bf16.gmra.mrb[24].mxu0 %vm3776_vm3, %v7903_v55  ;;  %v7926_v55 = vld [vmem:[%s9513_s5 + $0x78] sm:$0xff]  }
 0x511   : > { %7175 = vmatprep.mubr.msk.bf16.mxu0 %vm3776_vm3, %v7904_v56 }
 0x518   : > { %7176 = vmatmul.mubr.msk.bf16.gmra.mrb[28].mxu0 %vm3776_vm3, %v7905_v57 }
 0x519   : > { %7179 = vmatprep.mubr.msk.bf16.mxu0 %vm3776_vm3, %v7906_v58  ;;  %v7927_v58 = vld [vmem:[%s9513_s5 + $0x80] sm:$0xff]  }
 0x520   : > { %7180 = vmatmul.mubr.msk.bf16.gmra.mrb[32].mxu0 %vm3776_vm3, %v7907_v59 }
 0x521   : > { %7183 = vmatprep.mubr.msk.bf16.mxu0 %vm3776_vm3, %v7908_v60 }
 0x528   : > { %7184 = vmatmul.mubr.msk.bf16.gmra.mrb[36].mxu0 %vm3776_vm3, %v7909_v61 }
 0x529   : > { %7191 = vmatprep.mubr.msk.bf16.mxu0 %vm8072_vm12, %v8071_v7 }
 0x5c3   : > { %v7157_v63 = vpop.f32.mrb[8].mxu0 }
 0x5c4   : > { %v3859_v0 = vpop.f32.mrb[9].mxu0 }
 0x5c5   : > { %v7158_v1 = vpop.f32.mrb[10].mxu0 }
 0x5c6   : > { %v3987_v3 = vpack.c.bf16 %v7158_v1, %v7157_v63  ;;  %v3862_v4 = vpop.f32.mrb[11].mxu0  ;;  %v7928_v63 = vld [vmem:[%s9513_s5 + $0x88] sm:$0xff]   ;;  %v7930_v1 = vld [vmem:[%s9513_s5 + $0x98] sm:$0xff]  }
 0x5c7   : > { %v3986_v5 = vpack.c.bf16 %v3862_v4, %v3859_v0  ;;  %v7929_v0 = vld [vmem:[%s9513_s5 + $0x90] sm:$0xff]  }
 0x5c8   : > { %7192 = vmatmul.mubr.msk.bf16.vlgmr.msra.gmra.mrb[40].mxu0 %vm4022_vm13, %v3987_v3  ;;  %v7932_v3 = vld [vmem:[%s9513_s5 + $0xa8] sm:$0xff]   ;;  %v7933_v4 = vld [vmem:[%s9513_s5 + $0xb0] sm:$0xff]  }
 0x5c9   : > { %7196 = vmatpush3.bf16.msra.mxu0 %v7913_v2  ;;  %7199 = vmatprep.mubr.msk.bf16.mxu0 %vm8072_vm12, %v8071_v7  ;;  %v7931_v2 = vld [vmem:[%s9513_s5 + $0xa0] sm:$0xff]  }
 0x5ca   : > { %7197 = vmatprep.subr.bf16.mxu0 %v8071_v7 }
 0x5cb   : > { %v7161_v8 = vpop.f32.mrb[12].mxu0 }
 0x5cc   : > { %v3875_v9 = vpop.f32.mrb[13].mxu0 }
 0x5cd   : > { %7198 = vmatpush3.bf16.msra.mxu0 %v7914_v6  ;;  %v7162_v11 = vpop.f32.mrb[14].mxu0  ;;  %v7936_v6 = vld [vmem:[%s9513_s5 + $0xc0] sm:$0xff]  }
 0x5ce   : > { %7203 = vmatprep.subr.bf16.mxu0 %v8071_v7  ;;  %v3989_v12 = vpack.c.bf16 %v7162_v11, %v7161_v8  ;;  %v3878_v13 = vpop.f32.mrb[15].mxu0  ;;  %v7944_v8 = vld [vmem:[%s9514_s6 + $0x110] sm:$0xff]   ;;  %v7939_v11 = vld [vmem:[%s9513_s5 + $0xd8] sm:$0xff]  }
 0x5cf   : > { %v3988_v15 = vpack.c.bf16 %v3878_v13, %v3875_v9  ;;  %7416 = vmatpush3.bf16.msra.mxu1 %v7944_v8  ;;  %v7937_v9 = vld [vmem:[%s9513_s5 + $0xc8] sm:$0xff]  }
 0x5d0   : > { %7200 = vmatmul.mubr.msk.bf16.vlgmr.msra.gmra.mrb[44].mxu0 %vm4022_vm13, %v3986_v5  ;;  %v7934_v5 = vld [vmem:[%s9513_s5 + $0xb8] sm:$0xff]   ;;  %7417 = vmatprep.subr.bf16.mxu1 %v8071_v7  ;;  %v7941_v13 = vld [vmem:[%s9513_s5 + $0xe8] sm:$0xff]  }
 0x5d1   : > { %7204 = vmatpush3.bf16.msra.mxu0 %v7915_v10  ;;  %7207 = vmatprep.mubr.msk.bf16.mxu0 %vm8072_vm12, %v8071_v7  ;;  %v7938_v10 = vld [vmem:[%s9513_s5 + $0xd0] sm:$0xff]  }
 0x5d2   : > { %7205 = vmatprep.subr.bf16.mxu0 %v8071_v7 }
 0x5d3   : > { %v7165_v16 = vpop.f32.mrb[16].mxu0 }
 0x5d4   : > { %v3891_v18 = vpop.f32.mrb[17].mxu0 }
 0x5d5   : > { %7206 = vmatpush3.bf16.msra.mxu0 %v7916_v14  ;;  %v7166_v21 = vpop.f32.mrb[18].mxu0  ;;  %v7943_v14 = vld [vmem:[%s9513_s5 + $0xf8] sm:$0xff]  }
 0x5d6   : > { %7211 = vmatprep.subr.bf16.mxu0 %v8071_v7  ;;  %v3991_v22 = vpack.c.bf16 %v7166_v21, %v7165_v16  ;;  %v3894_v23 = vpop.f32.mrb[19].mxu0  ;;  %v7945_v16 = vld [vmem:[%s9514_s6 + $0x20] sm:$0xff]  }
 0x5d7   : > { %v3990_v24 = vpack.c.bf16 %v3894_v23, %v3891_v18  ;;  %v7946_v18 = vld [vmem:[%s9514_s6 + $0x28] sm:$0xff]   ;;  %v7949_v23 = vld [vmem:[%s9514_s6 + $0x118] sm:$0xff]  }
 0x5d8   : > { %7208 = vmatmul.mubr.msk.bf16.vlgmr.msra.gmra.mrb[48].mxu0 %vm4022_vm13, %v3988_v15  ;;  %v7942_v15 = vld [vmem:[%s9513_s5 + $0xf0] sm:$0xff]   ;;  %7418 = vmatpush3.bf16.msra.mxu1 %v7949_v23 }
 0x5d9   : > { %7212 = vmatpush3.bf16.msra.mxu0 %v7917_v20  ;;  %7215 = vmatprep.mubr.msk.bf16.mxu0 %vm8072_vm12, %v8071_v7  ;;  %v7947_v20 = vld [vmem:[%s9514_s6 + $0x30] sm:$0xff]  }
 0x5da   : > { %7213 = vmatprep.subr.bf16.mxu0 %v8071_v7  ;;  %7435 = vmatprep.subr.bf16.mxu1 %v8071_v7 }
 0x5db   : > { %v8966_v26 = vpop.f32.mrb[20].mxu0 }
 0x5dc   : > { %v3907_v27 = vpop.f32.mrb[21].mxu0 }
 0x5dd   : > { %7214 = vmatpush3.bf16.msra.mxu0 %v7918_v25  ;;  %v7170_v29 = vpop.f32.mrb[22].mxu0 }
 0x5de   : > { %7219 = vmatprep.subr.bf16.mxu0 %v8071_v7  ;;  %v3993_v30 = vpack.c.bf16 %v7170_v29, %v8966_v26  ;;  %v3910_v31 = vpop.f32.mrb[23].mxu0 }
 0x5df   : > { %v3992_v32 = vpack.c.bf16 %v3910_v31, %v3907_v27 }
 0x5e0   : > { %7216 = vmatmul.mubr.msk.bf16.vlgmr.msra.gmra.mrb[52].mxu0 %vm4022_vm13, %v3989_v12  ;;  %v7940_v12 = vld [vmem:[%s9513_s5 + $0xe0] sm:$0xff]  }
 0x5e1   : > { %7220 = vmatpush3.bf16.msra.mxu0 %v7919_v28  ;;  %7223 = vmatprep.mubr.msk.bf16.mxu0 %vm8072_vm12, %v8071_v7 }
 0x5e2   : > { %7221 = vmatprep.subr.bf16.mxu0 %v8071_v7 }
 0x5e3   : > { %v8980_v35 = vpop.f32.mrb[24].mxu0 }
 0x5e4   : > { %v3923_v33 = vpop.f32.mrb[25].mxu0 }
 0x5e5   : > { %7222 = vmatpush3.bf16.msra.mxu0 %v7920_v34  ;;  %v8985_v37 = vpop.f32.mrb[26].mxu0 }
 0x5e6   : > { %7227 = vmatprep.subr.bf16.mxu0 %v8071_v7  ;;  %v3995_v38 = vpack.c.bf16 %v8985_v37, %v8980_v35  ;;  %v3926_v39 = vpop.f32.mrb[27].mxu0 }
 0x5e7   : > { %v3994_v19 = vpack.c.bf16 %v3926_v39, %v3923_v33 }
 0x5e8   : > { %7224 = vmatmul.mubr.msk.bf16.vlgmr.msra.gmra.mrb[56].mxu0 %vm4022_vm13, %v3990_v24 }
 0x5e9   : > { %7228 = vmatpush3.bf16.msra.mxu0 %v7921_v36  ;;  %7231 = vmatprep.mubr.msk.bf16.mxu0 %vm8072_vm12, %v8071_v7 }
 0x5ea   : > { %7229 = vmatprep.subr.bf16.mxu0 %v8071_v7 }
 0x5eb   : > { %v8997_v41 = vpop.f32.mrb[28].mxu0 }
 0x5ec   : > { %v3939_v42 = vpop.f32.mrb[29].mxu0 }
 0x5ed   : > { %7230 = vmatpush3.bf16.msra.mxu0 %v7922_v40  ;;  %v9002_v43 = vpop.f32.mrb[30].mxu0 }
 0x5ee   : > { %7235 = vmatprep.subr.bf16.mxu0 %v8071_v7  ;;  %v3997_v44 = vpack.c.bf16 %v9002_v43, %v8997_v41  ;;  %v3942_v45 = vpop.f32.mrb[31].mxu0 }
 0x5ef   : > { %v3996_v46 = vpack.c.bf16 %v3942_v45, %v3939_v42 }
 0x5f0   : > { %7232 = vmatmul.mubr.msk.bf16.vlgmr.msra.gmra.mrb[60].mxu0 %vm4022_vm13, %v3991_v22  ;;  %v7948_v22 = vld [vmem:[%s9514_s6 + $0x38] sm:$0xff]  }
 0x5f1   : > { %7236 = vmatpush3.bf16.msra.mxu0 %v7923_v17  ;;  %7239 = vmatprep.mubr.msk.bf16.mxu0 %vm8072_vm12, %v8071_v7 }
 0x5f2   : > { %7237 = vmatprep.subr.bf16.mxu0 %v8071_v7 }
 0x5f3   : > { %v9014_v48 = vpop.f32.mrb[32].mxu0 }
 0x5f4   : > { %v9016_v49 = vpop.f32.mrb[33].mxu0 }
 0x5f5   : > { %7238 = vmatpush3.bf16.msra.mxu0 %v7924_v47  ;;  %v9021_v51 = vpop.f32.mrb[34].mxu0 }
 0x5f6   : > { %7243 = vmatprep.subr.bf16.mxu0 %v8071_v7  ;;  %v3999_v52 = vpack.c.bf16 %v9021_v51, %v9014_v48  ;;  %v3958_v53 = vpop.f32.mrb[35].mxu0 }
 0x5f7   : > { %v3998_v54 = vpack.c.bf16 %v3958_v53, %v9016_v49 }
 0x5f8   : > { %7240 = vmatmul.mubr.msk.bf16.vlgmr.msra.gmra.mrb[64].mxu0 %vm4022_vm13, %v3992_v32 }
 0x5f9   : > { %7244 = vmatpush3.bf16.msra.mxu0 %v7925_v50  ;;  %7247 = vmatprep.mubr.msk.bf16.mxu0 %vm8072_vm12, %v8071_v7 }
 0x5fa   : > { %7245 = vmatprep.subr.bf16.mxu0 %v8071_v7 }
 0x5fb   : > { %v9034_v56 = vpop.f32.mrb[36].mxu0 }
 0x5fc   : > { %v9036_v57 = vpop.f32.mrb[37].mxu0 }
 0x5fd   : > { %7246 = vmatpush3.bf16.msra.mxu0 %v7926_v55  ;;  %v9041_v59 = vpop.f32.mrb[38].mxu0 }
 0x5fe   : > { %7251 = vmatprep.subr.bf16.mxu0 %v8071_v7  ;;  %v4001_v60 = vpack.c.bf16 %v9041_v59, %v9034_v56  ;;  %v3974_v61 = vpop.f32.mrb[39].mxu0 }
 0x5ff   : > { %v4000_v62 = vpack.c.bf16 %v3974_v61, %v9036_v57 }
 0x600   : > { %7248 = vmatmul.mubr.msk.bf16.vlgmr.msra.gmra.mrb[68].mxu0 %vm4022_vm13, %v3993_v30 }
 0x601   : > { %7252 = vmatpush3.bf16.msra.mxu0 %v7927_v58  ;;  %7255 = vmatprep.mubr.msk.bf16.mxu0 %vm8072_vm12, %v8071_v7 }
 0x602   : > { %7253 = vmatprep.subr.bf16.mxu0 %v8071_v7 }
 0x605   : > { %7254 = vmatpush3.bf16.msra.mxu0 %v7928_v63 }
 0x606   : > { %7259 = vmatprep.subr.bf16.mxu0 %v8071_v7 }
 0x608   : > { %7256 = vmatmul.mubr.msk.bf16.vlgmr.msra.gmra.mrb[72].mxu0 %vm4022_vm13, %v3994_v19 }
 0x609   : > { %7260 = vmatpush3.bf16.msra.mxu0 %v7929_v0  ;;  %7263 = vmatprep.mubr.msk.bf16.mxu0 %vm8072_vm12, %v8071_v7 }
 0x60a   : > { %7261 = vmatprep.subr.bf16.mxu0 %v8071_v7 }
 0x60d   : > { %7262 = vmatpush3.bf16.msra.mxu0 %v7930_v1 }
 0x60e   : > { %7267 = vmatprep.subr.bf16.mxu0 %v8071_v7 }
 0x610   : > { %7264 = vmatmul.mubr.msk.bf16.vlgmr.msra.gmra.mrb[76].mxu0 %vm4022_vm13, %v3995_v38 }
 0x611   : > { %7268 = vmatpush3.bf16.msra.mxu0 %v7931_v2  ;;  %7271 = vmatprep.mubr.msk.bf16.mxu0 %vm8072_vm12, %v8071_v7 }
 0x612   : > { %7269 = vmatprep.subr.bf16.mxu0 %v8071_v7 }
 0x615   : > { %7270 = vmatpush3.bf16.msra.mxu0 %v7932_v3 }
 0x616   : > { %7275 = vmatprep.subr.bf16.mxu0 %v8071_v7 }
 0x618   : > { %7272 = vmatmul.mubr.msk.bf16.vlgmr.msra.gmra.mrb[80].mxu0 %vm4022_vm13, %v3996_v46 }
 0x619   : > { %7276 = vmatpush3.bf16.msra.mxu0 %v7933_v4  ;;  %7279 = vmatprep.mubr.msk.bf16.mxu0 %vm8072_vm12, %v8071_v7 }
 0x61a   : > { %7277 = vmatprep.subr.bf16.mxu0 %v8071_v7 }
 0x61d   : > { %7278 = vmatpush3.bf16.msra.mxu0 %v7934_v5 }
 0x61e   : > { %7283 = vmatprep.subr.bf16.mxu0 %v8071_v7 }
 0x620   : > { %7280 = vmatmul.mubr.msk.bf16.vlgmr.msra.gmra.mrb[84].mxu0 %vm4022_vm13, %v3997_v44 }
 0x621   : > { %7284 = vmatpush3.bf16.msra.mxu0 %v7936_v6  ;;  %7287 = vmatprep.mubr.msk.bf16.mxu0 %vm8072_vm12, %v8071_v7 }
 0x622   : > { %7285 = vmatprep.subr.bf16.mxu0 %v8071_v7 }
 0x625   : > { %7286 = vmatpush3.bf16.msra.mxu0 %v7937_v9 }
 0x626   : > { %7291 = vmatprep.subr.bf16.mxu0 %v8071_v7 }
 0x628   : > { %7288 = vmatmul.mubr.msk.bf16.vlgmr.msra.gmra.mrb[88].mxu0 %vm4022_vm13, %v3998_v54 }
 0x629   : > { %7292 = vmatpush3.bf16.msra.mxu0 %v7938_v10  ;;  %7295 = vmatprep.mubr.msk.bf16.mxu0 %vm8072_vm12, %v8071_v7 }
 0x62a   : > { %7293 = vmatprep.subr.bf16.mxu0 %v8071_v7 }
 0x62d   : > { %7294 = vmatpush3.bf16.msra.mxu0 %v7939_v11 }
 0x62e   : > { %7299 = vmatprep.subr.bf16.mxu0 %v8071_v7 }
 0x630   : > { %7296 = vmatmul.mubr.msk.bf16.vlgmr.msra.gmra.mrb[92].mxu0 %vm4022_vm13, %v3999_v52 }
 0x631   : > { %7300 = vmatpush3.bf16.msra.mxu0 %v7940_v12  ;;  %7303 = vmatprep.mubr.msk.bf16.mxu0 %vm8072_vm12, %v8071_v7 }
 0x632   : > { %7301 = vmatprep.subr.bf16.mxu0 %v8071_v7 }
 0x635   : > { %7302 = vmatpush3.bf16.msra.mxu0 %v7941_v13 }
 0x636   : > { %7307 = vmatprep.subr.bf16.mxu0 %v8071_v7 }
 0x638   : > { %7304 = vmatmul.mubr.msk.bf16.vlgmr.msra.gmra.mrb[96].mxu0 %vm4022_vm13, %v4000_v62 }
 0x639   : > { %7308 = vmatpush3.bf16.msra.mxu0 %v7942_v15  ;;  %7311 = vmatprep.mubr.msk.bf16.mxu0 %vm8072_vm12, %v8071_v7 }
 0x63a   : > { %7309 = vmatprep.subr.bf16.mxu0 %v8071_v7 }
 0x63d   : > { %7310 = vmatpush3.bf16.msra.mxu0 %v7943_v14 }
 0x63e   : > { %7315 = vmatprep.subr.bf16.mxu0 %v8071_v7 }
 0x640   : > { %7312 = vmatmul.mubr.msk.bf16.vlgmr.msra.gmra.mrb[100].mxu0 %vm4022_vm13, %v4001_v60 }
 0x641   : > { %7323 = vmatprep.mubr.msk.bf16.mxu0 %vm8072_vm12, %v8071_v7  ;;  %7316 = vmatpush3.bf16.msra.mxu0 %v7945_v16 }
 0x642   : > { %7317 = vmatprep.subr.bf16.mxu0 %v8071_v7 }
 0x645   : > { %7318 = vmatpush3.bf16.msra.mxu0 %v7946_v18 }
 0x646   : > { %7319 = vmatprep.subr.bf16.mxu0 %v8071_v7 }
 0x649   : > { %7320 = vmatpush3.bf16.msra.mxu0 %v7947_v20 }
 0x64a   : > { %7321 = vmatprep.subr.bf16.mxu0 %v8071_v7 }
 0x64d   : > { %7322 = vmatpush3.bf16.msra.mxu0 %v7948_v22 }
 0x64e   : > { %7327 = vmatprep.subr.bf16.mxu0 %v8071_v7 }
 0x69b   : > { %v4060_v21 = vpop.f32.mrb[40].mxu0 }
 0x69c   : > { %v7193_v24 = vpop.f32.mrb[41].mxu0 }
 0x69d   : > { %v4063_v25 = vpop.f32.mrb[42].mxu0 }
 0x69e   : > { %v7194_v26 = vpop.f32.mrb[43].mxu0 }
 0x6a3   : > { %v4116_v27 = vpop.f32.mrb[44].mxu0 }
 0x6a4   : > { %v4117_v28 = vadd.f32 %v4116_v27, %v4060_v21  ;;  %v7201_v29 = vpop.f32.mrb[45].mxu0 }
 0x6a5   : > { %v4119_v30 = vpop.f32.mrb[46].mxu0 }
 0x6a6   : > { %v4120_v31 = vadd.f32 %v4119_v30, %v4063_v25  ;;  %v7202_v32 = vpop.f32.mrb[47].mxu0 }
 0x6ab   : > { %v4176_v34 = vpop.f32.mrb[48].mxu0 }
 0x6ac   : > { %v4183_v35 = vadd.f32 %v4176_v34, %v4117_v28  ;;  %v7209_v33 = vpop.f32.mrb[49].mxu0 }
 0x6ad   : > { %v4179_v36 = vpop.f32.mrb[50].mxu0 }
 0x6ae   : > { %v4184_v37 = vadd.f32 %v4179_v36, %v4120_v31  ;;  %v7210_v38 = vpop.f32.mrb[51].mxu0 }
 0x6b3   : > { %v4238_v39 = vpop.f32.mrb[52].mxu0 }
 0x6b4   : > { %v4245_v19 = vadd.f32 %v4238_v39, %v4183_v35  ;;  %v7217_v40 = vpop.f32.mrb[53].mxu0 }
 0x6b5   : > { %v4241_v41 = vpop.f32.mrb[54].mxu0 }
 0x6b6   : > { %v4246_v42 = vadd.f32 %v4241_v41, %v4184_v37  ;;  %v7218_v17 = vpop.f32.mrb[55].mxu0 }
 0x6bb   : > { %v4300_v43 = vpop.f32.mrb[56].mxu0 }
 0x6bc   : > { %v4307_v44 = vadd.f32 %v4300_v43, %v4245_v19  ;;  %v7225_v45 = vpop.f32.mrb[57].mxu0 }
 0x6bd   : > { %v4303_v46 = vpop.f32.mrb[58].mxu0 }
 0x6be   : > { %v4308_v47 = vadd.f32 %v4303_v46, %v4246_v42  ;;  %v7226_v48 = vpop.f32.mrb[59].mxu0 }
 0x6c3   : > { %v4362_v49 = vpop.f32.mrb[60].mxu0 }
 0x6c4   : > { %v4369_v50 = vadd.f32 %v4362_v49, %v4307_v44  ;;  %v7233_v51 = vpop.f32.mrb[61].mxu0 }
 0x6c5   : > { %v4365_v52 = vpop.f32.mrb[62].mxu0 }
 0x6c6   : > { %v4370_v53 = vadd.f32 %v4365_v52, %v4308_v47  ;;  %v7234_v54 = vpop.f32.mrb[63].mxu0  ;;  %v6623_v47 = vld [vmem:[%s9517_s9] ss:$0 sm:$0xff] }
 0x6cb   : > { %v4424_v55 = vpop.f32.mrb[64].mxu0 }
 0x6cc   : > { %v4431_v56 = vadd.f32 %v4424_v55, %v4369_v50  ;;  %v7241_v57 = vpop.f32.mrb[65].mxu0 }
 0x6cd   : > { %v4427_v58 = vpop.f32.mrb[66].mxu0 }
 0x6ce   : > { %v4432_v59 = vadd.f32 %v4427_v58, %v4370_v53  ;;  %v7242_v60 = vpop.f32.mrb[67].mxu0 }
 0x6cf   : > { %v7950_v60 = vld [vmem:[%s9514_s6] sm:$0xff]  }
 0x6d3   : > { %v4486_v61 = vpop.f32.mrb[68].mxu0 }
 0x6d4   : > { %v4493_v62 = vadd.f32 %v4486_v61, %v4431_v56  ;;  %v7249_v63 = vpop.f32.mrb[69].mxu0  ;;  %v7951_v61 = vld [vmem:[%s9514_s6 + $0x140] sm:$0xff]  }
 0x6d5   : > { %v4489_v0 = vpop.f32.mrb[70].mxu0 }
 0x6d6   : > { %v4494_v1 = vadd.f32 %v4489_v0, %v4432_v59  ;;  %v7250_v2 = vpop.f32.mrb[71].mxu0  ;;  %v7952_v0 = vld [vmem:[%s9514_s6 + $0x8] sm:$0xff]  }
 0x6d7   : > { %v7954_v2 = vld [vmem:[%s9514_s6 + $0x10] sm:$0xff]  }
 0x6db   : > { %v4548_v3 = vpop.f32.mrb[72].mxu0 }
 0x6dc   : > { %v4555_v4 = vadd.f32 %v4548_v3, %v4493_v62  ;;  %v7257_v5 = vpop.f32.mrb[73].mxu0  ;;  %v7955_v3 = vld [vmem:[%s9514_s6 + $0x150] sm:$0xff]  }
 0x6dd   : > { %v4551_v6 = vpop.f32.mrb[74].mxu0  ;;  %v7957_v5 = vld [vmem:[%s9514_s6 + $0x158] sm:$0xff]  }
 0x6de   : > { %v4556_v8 = vadd.f32 %v4551_v6, %v4494_v1  ;;  %v7258_v9 = vpop.f32.mrb[75].mxu0  ;;  %v7953_v1 = vld [vmem:[%s9514_s6 + $0x148] sm:$0xff]   ;;  %v7958_v6 = vld [vmem:[%s9514_s6 + $0x40] sm:$0xff]  }
 0x6e3   : > { %v4610_v10 = vpop.f32.mrb[76].mxu0 }
 0x6e4   : > { %v4617_v11 = vadd.f32 %v4610_v10, %v4555_v4  ;;  %v7265_v12 = vpop.f32.mrb[77].mxu0  ;;  %v7956_v4 = vld [vmem:[%s9514_s6 + $0x18] sm:$0xff]   ;;  %v7960_v10 = vld [vmem:[%s9514_s6 + $0x48] sm:$0xff]  }
 0x6e5   : > { %v4613_v13 = vpop.f32.mrb[78].mxu0  ;;  %v7962_v12 = vld [vmem:[%s9514_s6 + $0x50] sm:$0xff]  }
 0x6e6   : > { %v4618_v15 = vadd.f32 %v4613_v13, %v4556_v8  ;;  %v7266_v14 = vpop.f32.mrb[79].mxu0  ;;  %v7959_v8 = vld [vmem:[%s9514_s6 + $0x180] sm:$0xff]   ;;  %v7963_v13 = vld [vmem:[%s9514_s6 + $0x190] sm:$0xff]  }
 0x6e7   : > { %v7965_v14 = vld [vmem:[%s9514_s6 + $0x198] sm:$0xff]  }
 0x6eb   : > { %v4672_v16 = vpop.f32.mrb[80].mxu0 }
 0x6ec   : > { %v4679_v18 = vadd.f32 %v4672_v16, %v4617_v11  ;;  %v7273_v20 = vpop.f32.mrb[81].mxu0  ;;  %v7961_v11 = vld [vmem:[%s9514_s6 + $0x188] sm:$0xff]   ;;  %v7966_v16 = vld [vmem:[%s9514_s6 + $0x60] sm:$0xff]  }
 0x6ed   : > { %v4675_v21 = vpop.f32.mrb[82].mxu0 }
 0x6ee   : > { %v4680_v22 = vadd.f32 %v4675_v21, %v4618_v15  ;;  %v7274_v23 = vpop.f32.mrb[83].mxu0  ;;  %v7964_v15 = vld [vmem:[%s9514_s6 + $0x58] sm:$0xff]  }
 0x6ef   : > { %v7969_v23 = vld [vmem:[%s9514_s6 + $0x1c8] sm:$0xff]  }
 0x6f3   : > { %v4734_v24 = vpop.f32.mrb[84].mxu0 }
 0x6f4   : > { %v4741_v25 = vadd.f32 %v4734_v24, %v4679_v18  ;;  %v7281_v26 = vpop.f32.mrb[85].mxu0  ;;  %v7967_v18 = vld [vmem:[%s9514_s6 + $0x1c0] sm:$0xff]   ;;  %v7970_v24 = vld [vmem:[%s9514_s6 + $0x70] sm:$0xff]  }
 0x6f5   : > { %v4737_v27 = vpop.f32.mrb[86].mxu0  ;;  %v7972_v26 = vld [vmem:[%s9514_s6 + $0x78] sm:$0xff]  }
 0x6f6   : > { %v4742_v28 = vadd.f32 %v4737_v27, %v4680_v22  ;;  %v7282_v29 = vpop.f32.mrb[87].mxu0  ;;  %v7968_v22 = vld [vmem:[%s9514_s6 + $0x68] sm:$0xff]   ;;  %v7973_v27 = vld [vmem:[%s9514_s6 + $0x1d8] sm:$0xff]  }
 0x6fb   : > { %v4796_v30 = vpop.f32.mrb[88].mxu0 }
 0x6fc   : > { %v4803_v31 = vadd.f32 %v4796_v30, %v4741_v25  ;;  %v7289_v32 = vpop.f32.mrb[89].mxu0  ;;  %v7971_v25 = vld [vmem:[%s9514_s6 + $0x1d0] sm:$0xff]  }
 0x6fd   : > { %v4799_v34 = vpop.f32.mrb[90].mxu0  ;;  %v7976_v32 = vld [vmem:[%s9514_s6 + $0x90] sm:$0xff]  }
 0x6fe   : > { %v4804_v35 = vadd.f32 %v4799_v34, %v4742_v28  ;;  %v7290_v33 = vpop.f32.mrb[91].mxu0  ;;  %v7974_v28 = vld [vmem:[%s9514_s6 + $0x80] sm:$0xff]   ;;  %v7977_v34 = vld [vmem:[%s9514_s6 + $0x98] sm:$0xff]  }
 0x703   : > { %v4858_v36 = vpop.f32.mrb[92].mxu0 }
 0x704   : > { %v4865_v37 = vadd.f32 %v4858_v36, %v4803_v31  ;;  %v7297_v38 = vpop.f32.mrb[93].mxu0  ;;  %v7975_v31 = vld [vmem:[%s9514_s6 + $0x88] sm:$0xff]  }
 0x705   : > { %v4861_v39 = vpop.f32.mrb[94].mxu0  ;;  %v7979_v36 = vld [vmem:[%s9514_s6 + $0xa8] sm:$0xff]   ;;  %v7981_v38 = vld [vmem:[%s9514_s6 + $0xb8] sm:$0xff]  }
 0x706   : > { %v4866_v19 = vadd.f32 %v4861_v39, %v4804_v35  ;;  %v7298_v40 = vpop.f32.mrb[95].mxu0  ;;  %v7978_v35 = vld [vmem:[%s9514_s6 + $0xa0] sm:$0xff]  }
 0x707   : > { %v7982_v39 = vld [vmem:[%s9514_s6 + $0xc0] sm:$0xff]   ;;  %v7983_v40 = vld [vmem:[%s9514_s6 + $0xc8] sm:$0xff]  }
 0x70b   : > { %v4920_v41 = vpop.f32.mrb[96].mxu0 }
 0x70c   : > { %v4927_v42 = vadd.f32 %v4920_v41, %v4865_v37  ;;  %v7305_v17 = vpop.f32.mrb[97].mxu0  ;;  %v7980_v37 = vld [vmem:[%s9514_s6 + $0xb0] sm:$0xff]  }
 0x70d   : > { %v4923_v43 = vpop.f32.mrb[98].mxu0  ;;  %v7984_v41 = vld [vmem:[%s9514_s6 + $0xd0] sm:$0xff]   ;;  %v7986_v17 = vld [vmem:[%s9514_s6 + $0xe0] sm:$0xff]  }
 0x70e   : > { %v4928_v44 = vadd.f32 %v4923_v43, %v4866_v19  ;;  %v7306_v45 = vpop.f32.mrb[99].mxu0 }
 0x70f   : > { %v7988_v45 = vld [vmem:[%s9514_s6 + $0xf0] sm:$0xff]  }
 0x713   : > { %v4982_v46 = vpop.f32.mrb[100].mxu0 }
 0x714   : > { %v4989_v48 = vadd.f32 %v4982_v46, %v4927_v42  ;;  %v7313_v49 = vpop.f32.mrb[101].mxu0  ;;  %v7985_v42 = vld [vmem:[%s9514_s6 + $0xd8] sm:$0xff]  }
 0x715   : > { %v4985_v50 = vpop.f32.mrb[102].mxu0  ;;  %v7989_v46 = vld [vmem:[%s9514_s6 + $0xf8] sm:$0xff]   ;;  %v7991_v49 = vld [vmem:[%s9514_s6 + $0x128] sm:$0xff]  }
 0x716   : > { %v4998_v51 = vadd.f32 %v6623_v47, %v4989_v48  ;;  %v4990_v52 = vadd.f32 %v4985_v50, %v4928_v44  ;;  %v7314_v53 = vpop.f32.mrb[103].mxu0  ;;  %v7987_v44 = vld [vmem:[%s9514_s6 + $0xe8] sm:$0xff]   ;;  %v7992_v50 = vld [vmem:[%s9514_s6 + $0x130] sm:$0xff]  }
 0x718   : > { %v5002_v54 = vmul.f32 0.2, %v4998_v51  ;;  %v4999_v55 = vadd.f32 %v6623_v47, %v4990_v52  ;;  %vm5000_vm14 = vcmp.ge.f32.partialorder %v4998_v51, 0.0  ;;  %v7990_v47 = vld [vmem:[%s9514_s6 + $0x120] sm:$0xff]  }
 0x719   : > { %v7994_v52 = vld [vmem:[%s9514_s6 + $0x160] sm:$0xff]  }
 0x71a   : > { %vm5001_vm15 = vcmp.ge.f32.partialorder %v4999_v55, 0.0  ;;  %v5003_v56 = vmul.f32 0.2, %v4999_v55  ;;  %v5004_v57 = vsel %vm5000_vm14, %v4998_v51, %v5002_v54  ;;  %v7993_v51 = vld [vmem:[%s9514_s6 + $0x138] sm:$0xff]   ;;  %v7995_v54 = vld [vmem:[%s9514_s6 + $0x168] sm:$0xff]  }
 0x71c   : > { %v5005_v58 = vsel %vm5001_vm15, %v4999_v55, %v5003_v56  ;;  %v7996_v55 = vld [vmem:[%s9514_s6 + $0x170] sm:$0xff]   ;;  %v7997_v56 = vld [vmem:[%s9514_s6 + $0x178] sm:$0xff]  }
 0x71d   : > { %v9171_v59 = vpack.c.bf16 %v5005_v58, %v5004_v57  ;;  %v7998_v57 = vld [vmem:[%s9514_s6 + $0x1a0] sm:$0xff]  }
 0x71f   : > { %v5630_v62 = vrot.slane %v9171_v59, 4  ;;  %v9181_v63 = vshrl.u32 %v9171_v59, 16  ;;  %v5784_v9 = vrot.slane %v9171_v59, 5  ;;  %v5168_v20 = vrot.slane %v9171_v59, 1 }
 0x720   : > { %v5938_v21 = vrot.slane %v9171_v59, 6  ;;  %v6092_v30 = vrot.slane %v9171_v59, 7  ;;  %v5322_v33 = vrot.slane %v9171_v59, 2  ;;  %v5476_v43 = vrot.slane %v9171_v59, 3 }
 0x721   : > { %7324 = vmatmul.mubr.msk.bf16.vlgmr.msra.gmra.mrb[104].mxu0 %vm3776_vm3, %v9181_v63  ;;  %7420 = vmatmul.mubr.msk.bf16.vlgmr.msra.gmra.mrb[32].mxu1 %vm3776_vm3, %v5630_v62  ;;  %v5245_v29 = vrot.slane %v9181_v63, 1  ;;  %v5399_v19 = vrot.slane %v9181_v63, 2  ;;  %v5553_v48 = vrot.slane %v9181_v63, 3  ;;  %v5707_v53 = vrot.slane %v9181_v63, 4  ;;  %v8002_v62 = vld [vmem:[%s9514_s6 + $0x1e0] sm:$0xff]  }
 0x722   : > { %7328 = vmatpush3.bf16.msra.mxu0 %v7950_v60  ;;  %7436 = vmatpush3.bf16.msra.mxu1 %v7951_v61  ;;  %v5861_v58 = vrot.slane %v9181_v63, 5  ;;  %v8000_v60 = vld [vmem:[%s9514_s6 + $0x1b0] sm:$0xff]   ;;  %v8001_v61 = vld [vmem:[%s9514_s6 + $0x1b8] sm:$0xff]  }
 0x723   : > { %7329 = vmatprep.subr.bf16.mxu0 %v8071_v7  ;;  %7437 = vmatprep.subr.bf16.mxu1 %v8071_v7 }
 0x724   : > { %7335 = vmatprep.mubr.msk.bf16.mxu0 %vm8072_vm12, %v8071_v7  ;;  %7443 = vmatprep.mubr.msk.bf16.mxu1 %vm8072_vm12, %v8071_v7 }
 0x726   : > { %7330 = vmatpush3.bf16.msra.mxu0 %v7952_v0  ;;  %7438 = vmatpush3.bf16.msra.mxu1 %v7953_v1  ;;  %v6015_v0 = vrot.slane %v9181_v63, 6  ;;  %v8003_v1 = vld [vmem:[%s9514_s6 + $0x1e8] sm:$0xff]  }
 0x727   : > { %7331 = vmatprep.subr.bf16.mxu0 %v8071_v7  ;;  %7439 = vmatprep.subr.bf16.mxu1 %v8071_v7 }
 0x72a   : > { %7332 = vmatpush3.bf16.msra.mxu0 %v7954_v2  ;;  %7440 = vmatpush3.bf16.msra.mxu1 %v7955_v3  ;;  %v8004_v2 = vld [vmem:[%s9514_s6 + $0x1f0] sm:$0xff]   ;;  %v8005_v3 = vld [vmem:[%s9514_s6 + $0x1f8] sm:$0xff]  }
 0x72b   : > { %7333 = vmatprep.subr.bf16.mxu0 %v8071_v7  ;;  %7441 = vmatprep.subr.bf16.mxu1 %v8071_v7 }
 0x72e   : > { %7334 = vmatpush3.bf16.msra.mxu0 %v7956_v4  ;;  %7442 = vmatpush3.bf16.msra.mxu1 %v7957_v5  ;;  %v6169_v4 = vrot.slane %v9181_v63, 7 }
 0x72f   : > { %7339 = vmatprep.subr.bf16.mxu0 %v8071_v7  ;;  %7459 = vmatprep.subr.bf16.mxu1 %v8071_v7 }
 0x731   : > { %7336 = vmatmul.mubr.msk.bf16.vlgmr.msra.gmra.mrb[108].mxu0 %vm3776_vm3, %v9171_v59  ;;  %7444 = vmatmul.mubr.msk.bf16.vlgmr.msra.gmra.mrb[36].mxu1 %vm3776_vm3, %v5784_v9  ;;  %v7999_v59 = vld [vmem:[%s9514_s6 + $0x1a8] sm:$0xff]  }
 0x732   : > { %7340 = vmatpush3.bf16.msra.mxu0 %v7958_v6  ;;  %7460 = vmatpush3.bf16.msra.mxu1 %v7959_v8 }
 0x733   : > { %7341 = vmatprep.subr.bf16.mxu0 %v8071_v7  ;;  %7461 = vmatprep.subr.bf16.mxu1 %v8071_v7 }
 0x734   : > { %7347 = vmatprep.mubr.msk.bf16.mxu0 %vm8072_vm12, %v8071_v7  ;;  %7467 = vmatprep.mubr.msk.bf16.mxu1 %vm8072_vm12, %v8071_v7 }
 0x736   : > { %7342 = vmatpush3.bf16.msra.mxu0 %v7960_v10  ;;  %7462 = vmatpush3.bf16.msra.mxu1 %v7961_v11 }
 0x737   : > { %7343 = vmatprep.subr.bf16.mxu0 %v8071_v7  ;;  %7463 = vmatprep.subr.bf16.mxu1 %v8071_v7 }
 0x73a   : > { %7344 = vmatpush3.bf16.msra.mxu0 %v7962_v12  ;;  %7464 = vmatpush3.bf16.msra.mxu1 %v7963_v13 }
 0x73b   : > { %7345 = vmatprep.subr.bf16.mxu0 %v8071_v7  ;;  %7465 = vmatprep.subr.bf16.mxu1 %v8071_v7 }
 0x73e   : > { %7346 = vmatpush3.bf16.msra.mxu0 %v7964_v15  ;;  %7466 = vmatpush3.bf16.msra.mxu1 %v7965_v14 }
 0x73f   : > { %7351 = vmatprep.subr.bf16.mxu0 %v8071_v7  ;;  %7483 = vmatprep.subr.bf16.mxu1 %v8071_v7 }
 0x741   : > { %7348 = vmatmul.mubr.msk.bf16.vlgmr.msra.gmra.mrb[112].mxu0 %vm3776_vm3, %v5168_v20  ;;  %7468 = vmatmul.mubr.msk.bf16.vlgmr.msra.gmra.mrb[40].mxu1 %vm3776_vm3, %v5938_v21 }
 0x742   : > { %7352 = vmatpush3.bf16.msra.mxu0 %v7966_v16  ;;  %7484 = vmatpush3.bf16.msra.mxu1 %v7967_v18 }
 0x743   : > { %7353 = vmatprep.subr.bf16.mxu0 %v8071_v7  ;;  %7485 = vmatprep.subr.bf16.mxu1 %v8071_v7 }
 0x744   : > { %7359 = vmatprep.mubr.msk.bf16.mxu0 %vm8072_vm12, %v8071_v7  ;;  %7491 = vmatprep.mubr.msk.bf16.mxu1 %vm8072_vm12, %v8071_v7 }
 0x746   : > { %7354 = vmatpush3.bf16.msra.mxu0 %v7968_v22  ;;  %7486 = vmatpush3.bf16.msra.mxu1 %v7969_v23 }
 0x747   : > { %7355 = vmatprep.subr.bf16.mxu0 %v8071_v7  ;;  %7487 = vmatprep.subr.bf16.mxu1 %v8071_v7 }
 0x74a   : > { %7356 = vmatpush3.bf16.msra.mxu0 %v7970_v24  ;;  %7488 = vmatpush3.bf16.msra.mxu1 %v7971_v25 }
 0x74b   : > { %7357 = vmatprep.subr.bf16.mxu0 %v8071_v7  ;;  %7489 = vmatprep.subr.bf16.mxu1 %v8071_v7 }
 0x74e   : > { %7358 = vmatpush3.bf16.msra.mxu0 %v7972_v26  ;;  %7490 = vmatpush3.bf16.msra.mxu1 %v7973_v27 }
 0x74f   : > { %7363 = vmatprep.subr.bf16.mxu0 %v8071_v7 }
 0x751   : > { %7360 = vmatmul.mubr.msk.bf16.vlgmr.msra.gmra.mrb[116].mxu0 %vm3776_vm3, %v5245_v29  ;;  %7492 = vmatmul.mubr.msk.bf16.vlgmr.msra.gmra.mrb[44].mxu1 %vm3776_vm3, %v6092_v30 }
 0x752   : > { %7364 = vmatpush3.bf16.msra.mxu0 %v7974_v28  ;;  %7371 = vmatprep.mubr.msk.bf16.mxu0 %vm8072_vm12, %v8071_v7 }
 0x753   : > { %7365 = vmatprep.subr.bf16.mxu0 %v8071_v7 }
 0x756   : > { %7366 = vmatpush3.bf16.msra.mxu0 %v7975_v31 }
 0x757   : > { %7367 = vmatprep.subr.bf16.mxu0 %v8071_v7 }
 0x75a   : > { %7368 = vmatpush3.bf16.msra.mxu0 %v7976_v32 }
 0x75b   : > { %7369 = vmatprep.subr.bf16.mxu0 %v8071_v7 }
 0x75e   : > { %7370 = vmatpush3.bf16.msra.mxu0 %v7977_v34 }
 0x75f   : > { %7375 = vmatprep.subr.bf16.mxu0 %v8071_v7 }
 0x761   : > { %7372 = vmatmul.mubr.msk.bf16.vlgmr.msra.gmra.mrb[120].mxu0 %vm3776_vm3, %v5322_v33 }
 0x762   : > { %7376 = vmatpush3.bf16.msra.mxu0 %v7978_v35  ;;  %7383 = vmatprep.mubr.msk.bf16.mxu0 %vm8072_vm12, %v8071_v7 }
 0x763   : > { %7377 = vmatprep.subr.bf16.mxu0 %v8071_v7 }
 0x766   : > { %7378 = vmatpush3.bf16.msra.mxu0 %v7979_v36 }
 0x767   : > { %7379 = vmatprep.subr.bf16.mxu0 %v8071_v7 }
 0x76a   : > { %7380 = vmatpush3.bf16.msra.mxu0 %v7980_v37 }
 0x76b   : > { %7381 = vmatprep.subr.bf16.mxu0 %v8071_v7 }
 0x76e   : > { %7382 = vmatpush3.bf16.msra.mxu0 %v7981_v38 }
 0x76f   : > { %7387 = vmatprep.subr.bf16.mxu0 %v8071_v7 }
 0x771   : > { %7384 = vmatmul.mubr.msk.bf16.vlgmr.msra.gmra.mrb[124].mxu0 %vm3776_vm3, %v5399_v19 }
 0x772   : > { %7388 = vmatpush3.bf16.msra.mxu0 %v7982_v39  ;;  %7395 = vmatprep.mubr.msk.bf16.mxu0 %vm8072_vm12, %v8071_v7 }
 0x773   : > { %7389 = vmatprep.subr.bf16.mxu0 %v8071_v7 }
 0x776   : > { %7390 = vmatpush3.bf16.msra.mxu0 %v7983_v40 }
 0x777   : > { %7391 = vmatprep.subr.bf16.mxu0 %v8071_v7 }
 0x77a   : > { %7392 = vmatpush3.bf16.msra.mxu0 %v7984_v41 }
 0x77b   : > { %7393 = vmatprep.subr.bf16.mxu0 %v8071_v7 }
 0x77e   : > { %7394 = vmatpush3.bf16.msra.mxu0 %v7985_v42 }
 0x77f   : > { %7399 = vmatprep.subr.bf16.mxu0 %v8071_v7 }
 0x781   : > { %7396 = vmatmul.mubr.msk.bf16.vlgmr.msra.gmra.mrb[128].mxu0 %vm3776_vm3, %v5476_v43 }
 0x782   : > { %7400 = vmatpush3.bf16.msra.mxu0 %v7986_v17  ;;  %7407 = vmatprep.mubr.msk.bf16.mxu0 %vm8072_vm12, %v8071_v7 }
 0x783   : > { %7401 = vmatprep.subr.bf16.mxu0 %v8071_v7 }
 0x786   : > { %7402 = vmatpush3.bf16.msra.mxu0 %v7987_v44 }
 0x787   : > { %7403 = vmatprep.subr.bf16.mxu0 %v8071_v7 }
 0x78a   : > { %7404 = vmatpush3.bf16.msra.mxu0 %v7988_v45 }
 0x78b   : > { %7405 = vmatprep.subr.bf16.mxu0 %v8071_v7 }
 0x78e   : > { %7406 = vmatpush3.bf16.msra.mxu0 %v7989_v46 }
 0x78f   : > { %7423 = vmatprep.subr.bf16.mxu0 %v8071_v7 }
 0x791   : > { %7408 = vmatmul.mubr.msk.bf16.vlgmr.msra.gmra.mrb[132].mxu0 %vm3776_vm3, %v5553_v48 }
 0x792   : > { %7424 = vmatpush3.bf16.msra.mxu0 %v7990_v47  ;;  %7431 = vmatprep.mubr.msk.bf16.mxu0 %vm8072_vm12, %v8071_v7 }
 0x793   : > { %7425 = vmatprep.subr.bf16.mxu0 %v8071_v7 }
 0x796   : > { %7426 = vmatpush3.bf16.msra.mxu0 %v7991_v49 }
 0x797   : > { %7427 = vmatprep.subr.bf16.mxu0 %v8071_v7 }
 0x79a   : > { %7428 = vmatpush3.bf16.msra.mxu0 %v7992_v50 }
 0x79b   : > { %7429 = vmatprep.subr.bf16.mxu0 %v8071_v7 }
 0x79e   : > { %7430 = vmatpush3.bf16.msra.mxu0 %v7993_v51 }
 0x79f   : > { %7447 = vmatprep.subr.bf16.mxu0 %v8071_v7 }
 0x7a1   : > { %7432 = vmatmul.mubr.msk.bf16.vlgmr.msra.gmra.mrb[136].mxu0 %vm3776_vm3, %v5707_v53 }
 0x7a2   : > { %7448 = vmatpush3.bf16.msra.mxu0 %v7994_v52  ;;  %7455 = vmatprep.mubr.msk.bf16.mxu0 %vm8072_vm12, %v8071_v7 }
 0x7a3   : > { %7449 = vmatprep.subr.bf16.mxu0 %v8071_v7 }
 0x7a6   : > { %7450 = vmatpush3.bf16.msra.mxu0 %v7995_v54 }
 0x7a7   : > { %7451 = vmatprep.subr.bf16.mxu0 %v8071_v7 }
 0x7aa   : > { %7452 = vmatpush3.bf16.msra.mxu0 %v7996_v55 }
 0x7ab   : > { %7453 = vmatprep.subr.bf16.mxu0 %v8071_v7 }
 0x7ae   : > { %7454 = vmatpush3.bf16.msra.mxu0 %v7997_v56 }
 0x7af   : > { %7471 = vmatprep.subr.bf16.mxu0 %v8071_v7 }
 0x7b1   : > { %7456 = vmatmul.mubr.msk.bf16.vlgmr.msra.gmra.mrb[140].mxu0 %vm3776_vm3, %v5861_v58 }
 0x7b2   : > { %7472 = vmatpush3.bf16.msra.mxu0 %v7998_v57  ;;  %7479 = vmatprep.mubr.msk.bf16.mxu0 %vm8072_vm12, %v8071_v7 }
 0x7b3   : > { %7473 = vmatprep.subr.bf16.mxu0 %v8071_v7 }
 0x7b6   : > { %7474 = vmatpush3.bf16.msra.mxu0 %v7999_v59 }
 0x7b7   : > { %7475 = vmatprep.subr.bf16.mxu0 %v8071_v7 }
 0x7ba   : > { %7476 = vmatpush3.bf16.msra.mxu0 %v8000_v60 }
 0x7bb   : > { %7477 = vmatprep.subr.bf16.mxu0 %v8071_v7 }
 0x7be   : > { %7478 = vmatpush3.bf16.msra.mxu0 %v8001_v61 }
 0x7bf   : > { %7495 = vmatprep.subr.bf16.mxu0 %v8071_v7 }
 0x7c1   : > { %7480 = vmatmul.mubr.msk.bf16.vlgmr.msra.gmra.mrb[144].mxu0 %vm3776_vm3, %v6015_v0 }
 0x7c2   : > { %7496 = vmatpush3.bf16.msra.mxu0 %v8002_v62  ;;  %7503 = vmatprep.mubr.msk.bf16.mxu0 %vm8072_vm12, %v8071_v7 }
 0x7c3   : > { %7497 = vmatprep.subr.bf16.mxu0 %v8071_v7 }
 0x7c6   : > { %7498 = vmatpush3.bf16.msra.mxu0 %v8003_v1 }
 0x7c7   : > { %7499 = vmatprep.subr.bf16.mxu0 %v8071_v7 }
 0x7ca   : > { %7500 = vmatpush3.bf16.msra.mxu0 %v8004_v2 }
 0x7cb   : > { %7501 = vmatprep.subr.bf16.mxu0 %v8071_v7 }
 0x7ce   : > { %7502 = vmatpush3.bf16.msra.mxu0 %v8005_v3 }
 0x7d1   : > { %7504 = vmatmul.mubr.msk.bf16.vlgmr.msra.gmra.mrb[148].mxu0 %vm3776_vm3, %v6169_v4 }
 0x7f4   : > { %v5087_v5 = vpop.f32.mrb[104].mxu0  ;;  %v5692_v6 = vpop.f32.mrb[32].mxu1 }
 0x7f5   : > { %v7325_v8 = vpop.f32.mrb[105].mxu0  ;;  %v7421_v9 = vpop.f32.mrb[33].mxu1 }
 0x7f6   : > { %v5090_v10 = vpop.f32.mrb[106].mxu0  ;;  %v5695_v11 = vpop.f32.mrb[34].mxu1 }
 0x7f7   : > { %v7326_v12 = vpop.f32.mrb[107].mxu0  ;;  %v7422_v13 = vpop.f32.mrb[35].mxu1 }
 0x804   : > { %v5153_v15 = vpop.f32.mrb[108].mxu0  ;;  %v5846_v14 = vpop.f32.mrb[36].mxu1 }
 0x805   : > { %v5154_v16 = vadd.f32 %v5153_v15, %v5087_v5  ;;  %v7337_v18 = vpop.f32.mrb[109].mxu0  ;;  %v7445_v20 = vpop.f32.mrb[37].mxu1 }
 0x806   : > { %v5156_v21 = vpop.f32.mrb[110].mxu0  ;;  %v5849_v7 = vpop.f32.mrb[38].mxu1  ;;  %v6238_v20 = vld [vmem:[%s9518_s10] sm:$0x1] }
 0x807   : > { %v7338_v22 = vpop.f32.mrb[111].mxu0  ;;  %v7446_v23 = vpop.f32.mrb[39].mxu1 }
 0x814   : > { %v5230_v63 = vpop.f32.mrb[112].mxu0  ;;  %v6000_v24 = vpop.f32.mrb[40].mxu1 }
 0x815   : > { %v5236_v25 = vadd.f32 %v5230_v63, %v5154_v16  ;;  %v7349_v26 = vpop.f32.mrb[113].mxu0  ;;  %v7469_v27 = vpop.f32.mrb[41].mxu1 }
 0x816   : > { %v5233_v28 = vpop.f32.mrb[114].mxu0  ;;  %v6003_v29 = vpop.f32.mrb[42].mxu1 }
 0x817   : > { %v7350_v30 = vpop.f32.mrb[115].mxu0  ;;  %v7470_v31 = vpop.f32.mrb[43].mxu1 }
 0x824   : > { %v5307_v32 = vpop.f32.mrb[116].mxu0  ;;  %v6154_v34 = vpop.f32.mrb[44].mxu1 }
 0x825   : > { %v5313_v35 = vadd.f32 %v5307_v32, %v5236_v25  ;;  %v7361_v33 = vpop.f32.mrb[117].mxu0  ;;  %v7493_v36 = vpop.f32.mrb[45].mxu1 }
 0x826   : > { %v5310_v37 = vpop.f32.mrb[118].mxu0  ;;  %v6157_v38 = vpop.f32.mrb[46].mxu1 }
 0x827   : > { %v7362_v39 = vpop.f32.mrb[119].mxu0  ;;  %v7494_v19 = vpop.f32.mrb[47].mxu1 }
 0x834   : > { %v5384_v40 = vpop.f32.mrb[120].mxu0 }
 0x835   : > { %v5390_v41 = vadd.f32 %v5384_v40, %v5313_v35  ;;  %v7373_v42 = vpop.f32.mrb[121].mxu0 }
 0x836   : > { %v5387_v17 = vpop.f32.mrb[122].mxu0 }
 0x837   : > { %v7374_v43 = vpop.f32.mrb[123].mxu0 }
 0x844   : > { %v5461_v44 = vpop.f32.mrb[124].mxu0 }
 0x845   : > { %v5467_v45 = vadd.f32 %v5461_v44, %v5390_v41  ;;  %v7385_v46 = vpop.f32.mrb[125].mxu0 }
 0x846   : > { %v5464_v47 = vpop.f32.mrb[126].mxu0 }
 0x847   : > { %v7386_v48 = vpop.f32.mrb[127].mxu0 }
 0x854   : > { %v5538_v49 = vpop.f32.mrb[128].mxu0 }
 0x855   : > { %v5544_v50 = vadd.f32 %v5538_v49, %v5467_v45  ;;  %v7397_v51 = vpop.f32.mrb[129].mxu0 }
 0x856   : > { %v5541_v52 = vpop.f32.mrb[130].mxu0 }
 0x857   : > { %v7398_v53 = vpop.f32.mrb[131].mxu0 }
 0x864   : > { %v5615_v54 = vpop.f32.mrb[132].mxu0 }
 0x865   : > { %v5621_v55 = vadd.f32 %v5615_v54, %v5544_v50  ;;  %v7409_v56 = vpop.f32.mrb[133].mxu0 }
 0x866   : > { %v5618_v57 = vpop.f32.mrb[134].mxu0 }
 0x867   : > { %v7410_v58 = vpop.f32.mrb[135].mxu0  ;;  %v5698_v59 = vadd.f32 %v5692_v6, %v5621_v55 }
 0x874   : > { %v5769_v60 = vpop.f32.mrb[136].mxu0 }
 0x875   : > { %v5775_v61 = vadd.f32 %v5769_v60, %v5698_v59  ;;  %v7433_v62 = vpop.f32.mrb[137].mxu0 }
 0x876   : > { %v5772_v0 = vpop.f32.mrb[138].mxu0 }
 0x877   : > { %v7434_v1 = vpop.f32.mrb[139].mxu0  ;;  %v5852_v2 = vadd.f32 %v5846_v14, %v5775_v61 }
 0x884   : > { %v5923_v3 = vpop.f32.mrb[140].mxu0 }
 0x885   : > { %v5929_v4 = vadd.f32 %v5923_v3, %v5852_v2  ;;  %v7457_v5 = vpop.f32.mrb[141].mxu0 }
 0x886   : > { %v5926_v8 = vpop.f32.mrb[142].mxu0 }
 0x887   : > { %v7458_v9 = vpop.f32.mrb[143].mxu0  ;;  %v6006_v10 = vadd.f32 %v6000_v24, %v5929_v4 }
 0x894   : > { %v6077_v11 = vpop.f32.mrb[144].mxu0 }
 0x895   : > { %v6083_v12 = vadd.f32 %v6077_v11, %v6006_v10  ;;  %v7481_v13 = vpop.f32.mrb[145].mxu0 }
 0x896   : > { %v6080_v15 = vpop.f32.mrb[146].mxu0 }
 0x897   : > { %v7482_v16 = vpop.f32.mrb[147].mxu0  ;;  %v6160_v6 = vadd.f32 %v6154_v34, %v6083_v12 }
 0x8a4   : > { %v6231_v18 = vpop.f32.mrb[148].mxu0 }
 0x8a5   : > { %v6237_v14 = vadd.f32 %v6231_v18, %v6160_v6  ;;  %v7505_v21 = vpop.f32.mrb[149].mxu0 }
 0x8a6   : > { %v6234_v7 = vpop.f32.mrb[150].mxu0 }
 0x8a7   : > { %v6239_v22 = vadd.f32 %v6238_v20, %v6237_v14  ;;  %v7506_v23 = vpop.f32.mrb[151].mxu0 }
 0x8a9   : > { %6241 = vst.msk [vmem:[%s378_s25] sm:$0x1] %vm6240_vm0, %v6239_v22 }
 0x8aa   : > { %8019 = shalt.err (!%p8016_p3)
}
 0x8ab   : > { %s8020_s15 = scalar_lea.hbm %s9466_s13, 16  ;;  %s8024_s30 = scalar_lea.hbm %s9519_s11, 32 }
 0x8ac   : > { %p8021_p4 = scmp.ne.s32.totalorder %s9466_s13, %s8020_s15  ;;  %p8025_p9 = scmp.lt.u32.totalorder %s9466_s13, %s9519_s11 }
 0x8ad   : > { %p8026_p10 = scmp.lt.u32.totalorder %s8024_s30, %s8020_s15  ;;  %p8028_p12 = scmp.lt.u32.totalorder %s8020_s15, %s9466_s13 }
 0x8ae   : > { %p8022_p7 = pnand %p8021_p4, %p8172_p5 }
 0x8af   : > { %p8027_p11 = por %p8026_p10, %p8025_p9 }
 0x8b0   : > { %p8023_p8 = pneg %p8022_p7 }
 0x8b1   : > { %p8029_p13 = por %p8028_p12, %p8027_p11 }
 0x8b3   : > { %p8030_p0 = pnand %p8029_p13, %p8023_p8 }
 0x8b5   : > { %8033 = shalt.err (!%p8030_p0)
}
 0x8b6   : > { %7643 = dma.vmem_to_hbm [thread:$0]  (%p8172_p5), %s9468_s29, 16, %s9466_s13, %s6243_s21  }
 0x8b7 PF: > { %p7649_p1 = scmp.ge.s32.totalorder %s8068_s20, 2  ;;  %s6267_s0 = sand.u32 1, %s8056_s17  }
 0x8b8   : > { %s6268_s14 = scalar_lea.sflag [#allocation3], %s6267_s0 }
 0x8b9   : > { %p7646_p2 = pnand %p7649_p1, %p8176_p6 }
 0x8bb   : > { %8051 = dma.done.wait (!%p7646_p2), %s6268_s14, 16  }
 0x8bc   : > { %8053 = vsyncadd (!%p7646_p2), %s6268_s14, 4294967280  ;;  %p21_p3 = scmp.ge.s32.totalorder %s8159_s23, 4   ;;  %s9524_s17 = smov %s8060_s18 }
 0x8bd   : > { %s9525_s18 = smov %s8064_s19  ;;  %s9526_s19 = smov %s8170_s26 }
 0x8be   : > { %s9527_s20 = smov %s8159_s23  ;;  %23 = sbr.rel (!%p21_p3) target bundleno = 5 (0x5), region = 99 }
 0x8c5   :  { %6272 = vsyncpa [#allocation3], 1 }
 0x8c6   :  { %6274 = vsyncpa [#allocation3 + $0x1], 1 }

</bundles_post_ra>
